<compile_context>
chip_gen: v7x
topology: tpu7x:2x2x1
jax: 0.10.0
libtpu: 0.0.40
codegen_flags: <defaults>
</compile_context>

<pallas_src>
import jax
import jax.numpy as jnp
from jax.experimental import pallas as pl
from jax.experimental.pallas import tpu as pltpu

# CGNN layer sizes: 1 -> 5 -> 10 -> 20 -> 5 -> 9, ReLU between hidden layers.
_LAYER_SIZES = [(1, 5), (5, 10), (10, 20), (20, 5), (5, 9)]

_LANE = 128            # lane width of a vreg
_CHUNK_ROWS = 8        # sublanes of a f32 vreg -> 1024 samples per MLP eval
_MAX_TILE_ROWS = 128   # 16384 samples / 192 KiB per (3, rows, 128) f32 block


def _param_offsets():
    """Static offsets of [w1,b1,w2,b2,...,w5,b5] inside the flat param vector."""
    offs, p = [], 0
    for fin, fout in _LAYER_SIZES:
        offs.append((p, p + fin * fout))       # (w_offset, b_offset)
        p += fin * fout + fout
    return offs, p


_OFFSETS, _TOTAL_PARAMS = _param_offsets()     # 449 floats total


def _mlp_dyn(wv, u_in, u_a, u_b):
    """Unrolled CGNN + dynamics on one chunk.

    wv: list of 449 scalar params (hoisted SMEM reads).
    u_in/u_a/u_b: (rows, 128) lane/sublane-dense activations."""
    h = [u_in]
    last = len(_LAYER_SIZES) - 1
    for li, (fin, fout) in enumerate(_LAYER_SIZES):
        w_off, b_off = _OFFSETS[li]
        outs = []
        for j in range(fout):
            acc = h[0] * wv[w_off + j]                       # i = 0
            for i in range(1, fin):
                acc = acc + h[i] * wv[w_off + i * fout + j]  # scalar-bcast FMA
            acc = acc + wv[b_off + j]
            if li < last:
                acc = jnp.maximum(acc, 0.0)
            outs.append(acc)
        h = outs
    o = h                                                    # outnet[:, 0..8]
    x_dyn = o[0] + o[3] * u_a + o[4] * u_b
    y_dyn = o[1] + o[5] * u_a + o[6] * u_b
    # NOTE: the reference module uses u[:, 1] for BOTH terms of z_dyn.
    z_dyn = o[2] + (o[7] + o[8]) * u_a
    return x_dyn, y_dyn, z_dyn


def _make_kernel(tile_rows):
    """Kernel for one (3, tile_rows, 128) block; tile_rows is static."""
    n_full = tile_rows // _CHUNK_ROWS
    rem = tile_rows % _CHUNK_ROWS

    def kernel(w_ref, u_ref, out_ref):
        # Hoist all 449 scalar weight reads out of the chunk loop.
        wv = [w_ref[k] for k in range(_TOTAL_PARAMS)]

        def run_chunk(r0, rows):
            u_in = u_ref[0, pl.ds(r0, rows), :]
            u_a = u_ref[1, pl.ds(r0, rows), :]
            u_b = u_ref[2, pl.ds(r0, rows), :]
            x_dyn, y_dyn, z_dyn = _mlp_dyn(wv, u_in, u_a, u_b)
            out_ref[0, pl.ds(r0, rows), :] = x_dyn
            out_ref[1, pl.ds(r0, rows), :] = y_dyn
            out_ref[2, pl.ds(r0, rows), :] = z_dyn

        if n_full > 0:
            def chunk_body(c, carry):
                r0 = pl.multiple_of(c * _CHUNK_ROWS, _CHUNK_ROWS)
                run_chunk(r0, _CHUNK_ROWS)
                return carry
            jax.lax.fori_loop(0, n_full, chunk_body, 0)
        if rem > 0:
            run_chunk(n_full * _CHUNK_ROWS, rem)   # static start, partial vreg

    return kernel


def flatten_params(params):
    """Concatenate all weights/biases into one flat f32 vector (SMEM operand)."""
    flat = []
    for i in range(1, 6):
        flat.append(params[f"w{i}"].reshape(-1).astype(jnp.float32))
        flat.append(params[f"b{i}"].reshape(-1).astype(jnp.float32))
    return jnp.concatenate(flat)


def pack_u(u):
    """(N, 3) -> (3, rows, 128) with rows = ceil(N/128), zero-padded lanes."""
    n = u.shape[0]
    rows = pl.cdiv(n, _LANE)
    n_pad = rows * _LANE
    u_t = jnp.asarray(u, jnp.float32).T
    if n_pad != n:
        u_t = jnp.pad(u_t, ((0, 0), (0, n_pad - n)))
    return u_t.reshape(3, rows, _LANE)


def nnmodel_forward_packed(u_packed, w_flat):
    """Native-layout entry point: (3, rows, 128) -> (3, rows, 128)."""
    assert u_packed.shape[0] == 3 and u_packed.shape[2] == _LANE
    rows = u_packed.shape[1]

    if rows <= _MAX_TILE_ROWS:
        # Single tile covering exactly the data (no extra padding / grid step).
        tile_rows, n_tiles, rows_pad = rows, 1, rows
    else:
        # Multiple tiles, each a multiple of 8 rows; pad rows minimally.
        rows8 = pl.cdiv(rows, _CHUNK_ROWS) * _CHUNK_ROWS
        n_tiles = pl.cdiv(rows8, _MAX_TILE_ROWS)
        tile_rows = pl.cdiv(pl.cdiv(rows8, n_tiles), _CHUNK_ROWS) * _CHUNK_ROWS
        rows_pad = n_tiles * tile_rows

    if rows_pad != rows:
        u_packed = jnp.pad(u_packed, ((0, 0), (0, rows_pad - rows), (0, 0)))

    smem_spec = pl.BlockSpec(memory_space=pltpu.MemorySpace.SMEM)
    out = pl.pallas_call(
        _make_kernel(tile_rows),
        out_shape=jax.ShapeDtypeStruct((3, rows_pad, _LANE), jnp.float32),
        grid=(n_tiles,),
        in_specs=[smem_spec,
                  pl.BlockSpec((3, tile_rows, _LANE), lambda i: (0, i, 0))],
        out_specs=pl.BlockSpec((3, tile_rows, _LANE), lambda i: (0, i, 0)),
        compiler_params=pltpu.CompilerParams(
            dimension_semantics=("parallel",)),
    )(w_flat, u_packed)
    return out[:, :rows, :]


def nnmodel_forward(t, u, params):
    """Pallas equivalent of NNModel.forward(t, u); u is (N, 3), returns (N, 3).
    `t` is unused, as in the reference module."""
    del t
    n = u.shape[0]
    out_packed = nnmodel_forward_packed(pack_u(u), flatten_params(params))
    # TODO(synk): for the ODE/solver use case, keep data in the packed
    # (3, rows, 128) layout end-to-end and fuse many solver steps into one
    # pallas_call (weights stay SMEM-resident) instead of one launch + one
    # transpose/pad round-trip per RHS evaluation.
    return out_packed.reshape(3, -1)[:, :n].T


def init_params(key):
    """Deterministic CGNN params, layout (in_features, out_features)."""
    params = {}
    for i, (fin, fout) in enumerate(_LAYER_SIZES, start=1):
        key, kw, kb = jax.random.split(key, 3)
        bound = 1.0 / jnp.sqrt(jnp.float32(fin))
        params[f"w{i}"] = jax.random.uniform(kw, (fin, fout), jnp.float32, -bound, bound)
        params[f"b{i}"] = jax.random.uniform(kb, (fout,), jnp.float32, -bound, bound)
    return params


def nnmodel_forward_ref(t, u, params):
    """Pure-JAX reference (mirrors the PyTorch module) for verification."""
    del t
    h = u[:, 0:1]
    for i in range(1, 5):
        h = jnp.maximum(h @ params[f"w{i}"] + params[f"b{i}"], 0.0)
    outnet = h @ params["w5"] + params["b5"]
    u1, u2 = u[:, 1:2], u[:, 2:3]
    x_dyn = outnet[:, 0:1] + outnet[:, 3:4] * u1 + outnet[:, 4:5] * u2
    y_dyn = outnet[:, 1:2] + outnet[:, 5:6] * u1 + outnet[:, 6:7] * u2
    z_dyn = outnet[:, 2:3] + outnet[:, 7:8] * u1 + outnet[:, 8:9] * u1
    return jnp.concatenate([x_dyn, y_dyn, z_dyn], axis=1)


if __name__ == "__main__":
    key = jax.random.PRNGKey(0)
    key, k1, k2 = jax.random.split(key, 3)
    params = init_params(key)
    t = jnp.float32(0.0)   # unused, matches the torch signature

    # N=600: single 5-row tile, remainder-only path (no extra padding beyond 640).
    # N=2500: single 20-row tile, exercises the fori_loop chunks + remainder.
    for n, ku in ((600, k1), (2500, k2)):
        u = jax.random.normal(ku, (n, 3), jnp.float32)
        out = jax.block_until_ready(nnmodel_forward(t, u, params))
        ref = nnmodel_forward_ref(t, u, params)
        assert out.shape == (n, 3)
        assert jnp.allclose(out, ref, atol=1e-5, rtol=1e-4), f"mismatch vs reference at N={n}"

    print("KERNEL_OK")
</pallas_src>

<mosaic_0001>
module attributes {stable_mosaic.version = 11 : i64} {
  func.func @kernel(%arg0: i32, %arg1: memref<449xf32, #tpu.memory_space<smem>>, %arg2: memref<3x5x128xf32, #tpu.memory_space<vmem>>, %arg3: memref<3x5x128xf32, #tpu.memory_space<vmem>>) attributes {dimension_semantics = [#tpu.dimension_semantics<parallel>], iteration_bounds = array<i64: 1>, scalar_prefetch = 0 : i64, scratch_operands = 0 : i64, tpu.core_type = #tpu.core_type<tc>, window_params = [{transform_indices = @transform_0, window_bounds = array<i64: 449>}, {transform_indices = @transform_1, window_bounds = array<i64: 3, 5, 128>}, {transform_indices = @transform_2, window_bounds = array<i64: 3, 5, 128>}]} {
    %c0 = arith.constant 0 : index
    %0 = memref.load %arg1[%c0] : memref<449xf32, #tpu.memory_space<smem>>
    %c1 = arith.constant 1 : index
    %1 = memref.load %arg1[%c1] : memref<449xf32, #tpu.memory_space<smem>>
    %c2 = arith.constant 2 : index
    %2 = memref.load %arg1[%c2] : memref<449xf32, #tpu.memory_space<smem>>
    %c3 = arith.constant 3 : index
    %3 = memref.load %arg1[%c3] : memref<449xf32, #tpu.memory_space<smem>>
    %c4 = arith.constant 4 : index
    %4 = memref.load %arg1[%c4] : memref<449xf32, #tpu.memory_space<smem>>
    %c5 = arith.constant 5 : index
    %5 = memref.load %arg1[%c5] : memref<449xf32, #tpu.memory_space<smem>>
    %c6 = arith.constant 6 : index
    %6 = memref.load %arg1[%c6] : memref<449xf32, #tpu.memory_space<smem>>
    %c7 = arith.constant 7 : index
    %7 = memref.load %arg1[%c7] : memref<449xf32, #tpu.memory_space<smem>>
    %c8 = arith.constant 8 : index
    %8 = memref.load %arg1[%c8] : memref<449xf32, #tpu.memory_space<smem>>
    %c9 = arith.constant 9 : index
    %9 = memref.load %arg1[%c9] : memref<449xf32, #tpu.memory_space<smem>>
    %c10 = arith.constant 10 : index
    %10 = memref.load %arg1[%c10] : memref<449xf32, #tpu.memory_space<smem>>
    %c11 = arith.constant 11 : index
    %11 = memref.load %arg1[%c11] : memref<449xf32, #tpu.memory_space<smem>>
    %c12 = arith.constant 12 : index
    %12 = memref.load %arg1[%c12] : memref<449xf32, #tpu.memory_space<smem>>
    %c13 = arith.constant 13 : index
    %13 = memref.load %arg1[%c13] : memref<449xf32, #tpu.memory_space<smem>>
    %c14 = arith.constant 14 : index
    %14 = memref.load %arg1[%c14] : memref<449xf32, #tpu.memory_space<smem>>
    %c15 = arith.constant 15 : index
    %15 = memref.load %arg1[%c15] : memref<449xf32, #tpu.memory_space<smem>>
    %c16 = arith.constant 16 : index
    %16 = memref.load %arg1[%c16] : memref<449xf32, #tpu.memory_space<smem>>
    %c17 = arith.constant 17 : index
    %17 = memref.load %arg1[%c17] : memref<449xf32, #tpu.memory_space<smem>>
    %c18 = arith.constant 18 : index
    %18 = memref.load %arg1[%c18] : memref<449xf32, #tpu.memory_space<smem>>
    %c19 = arith.constant 19 : index
    %19 = memref.load %arg1[%c19] : memref<449xf32, #tpu.memory_space<smem>>
    %c20 = arith.constant 20 : index
    %20 = memref.load %arg1[%c20] : memref<449xf32, #tpu.memory_space<smem>>
    %c21 = arith.constant 21 : index
    %21 = memref.load %arg1[%c21] : memref<449xf32, #tpu.memory_space<smem>>
    %c22 = arith.constant 22 : index
    %22 = memref.load %arg1[%c22] : memref<449xf32, #tpu.memory_space<smem>>
    %c23 = arith.constant 23 : index
    %23 = memref.load %arg1[%c23] : memref<449xf32, #tpu.memory_space<smem>>
    %c24 = arith.constant 24 : index
    %24 = memref.load %arg1[%c24] : memref<449xf32, #tpu.memory_space<smem>>
    %c25 = arith.constant 25 : index
    %25 = memref.load %arg1[%c25] : memref<449xf32, #tpu.memory_space<smem>>
    %c26 = arith.constant 26 : index
    %26 = memref.load %arg1[%c26] : memref<449xf32, #tpu.memory_space<smem>>
    %c27 = arith.constant 27 : index
    %27 = memref.load %arg1[%c27] : memref<449xf32, #tpu.memory_space<smem>>
    %c28 = arith.constant 28 : index
    %28 = memref.load %arg1[%c28] : memref<449xf32, #tpu.memory_space<smem>>
    %c29 = arith.constant 29 : index
    %29 = memref.load %arg1[%c29] : memref<449xf32, #tpu.memory_space<smem>>
    %c30 = arith.constant 30 : index
    %30 = memref.load %arg1[%c30] : memref<449xf32, #tpu.memory_space<smem>>
    %c31 = arith.constant 31 : index
    %31 = memref.load %arg1[%c31] : memref<449xf32, #tpu.memory_space<smem>>
    %c32 = arith.constant 32 : index
    %32 = memref.load %arg1[%c32] : memref<449xf32, #tpu.memory_space<smem>>
    %c33 = arith.constant 33 : index
    %33 = memref.load %arg1[%c33] : memref<449xf32, #tpu.memory_space<smem>>
    %c34 = arith.constant 34 : index
    %34 = memref.load %arg1[%c34] : memref<449xf32, #tpu.memory_space<smem>>
    %c35 = arith.constant 35 : index
    %35 = memref.load %arg1[%c35] : memref<449xf32, #tpu.memory_space<smem>>
    %c36 = arith.constant 36 : index
    %36 = memref.load %arg1[%c36] : memref<449xf32, #tpu.memory_space<smem>>
    %c37 = arith.constant 37 : index
    %37 = memref.load %arg1[%c37] : memref<449xf32, #tpu.memory_space<smem>>
    %c38 = arith.constant 38 : index
    %38 = memref.load %arg1[%c38] : memref<449xf32, #tpu.memory_space<smem>>
    %c39 = arith.constant 39 : index
    %39 = memref.load %arg1[%c39] : memref<449xf32, #tpu.memory_space<smem>>
    %c40 = arith.constant 40 : index
    %40 = memref.load %arg1[%c40] : memref<449xf32, #tpu.memory_space<smem>>
    %c41 = arith.constant 41 : index
    %41 = memref.load %arg1[%c41] : memref<449xf32, #tpu.memory_space<smem>>
    %c42 = arith.constant 42 : index
    %42 = memref.load %arg1[%c42] : memref<449xf32, #tpu.memory_space<smem>>
    %c43 = arith.constant 43 : index
    %43 = memref.load %arg1[%c43] : memref<449xf32, #tpu.memory_space<smem>>
    %c44 = arith.constant 44 : index
    %44 = memref.load %arg1[%c44] : memref<449xf32, #tpu.memory_space<smem>>
    %c45 = arith.constant 45 : index
    %45 = memref.load %arg1[%c45] : memref<449xf32, #tpu.memory_space<smem>>
    %c46 = arith.constant 46 : index
    %46 = memref.load %arg1[%c46] : memref<449xf32, #tpu.memory_space<smem>>
    %c47 = arith.constant 47 : index
    %47 = memref.load %arg1[%c47] : memref<449xf32, #tpu.memory_space<smem>>
    %c48 = arith.constant 48 : index
    %48 = memref.load %arg1[%c48] : memref<449xf32, #tpu.memory_space<smem>>
    %c49 = arith.constant 49 : index
    %49 = memref.load %arg1[%c49] : memref<449xf32, #tpu.memory_space<smem>>
    %c50 = arith.constant 50 : index
    %50 = memref.load %arg1[%c50] : memref<449xf32, #tpu.memory_space<smem>>
    %c51 = arith.constant 51 : index
    %51 = memref.load %arg1[%c51] : memref<449xf32, #tpu.memory_space<smem>>
    %c52 = arith.constant 52 : index
    %52 = memref.load %arg1[%c52] : memref<449xf32, #tpu.memory_space<smem>>
    %c53 = arith.constant 53 : index
    %53 = memref.load %arg1[%c53] : memref<449xf32, #tpu.memory_space<smem>>
    %c54 = arith.constant 54 : index
    %54 = memref.load %arg1[%c54] : memref<449xf32, #tpu.memory_space<smem>>
    %c55 = arith.constant 55 : index
    %55 = memref.load %arg1[%c55] : memref<449xf32, #tpu.memory_space<smem>>
    %c56 = arith.constant 56 : index
    %56 = memref.load %arg1[%c56] : memref<449xf32, #tpu.memory_space<smem>>
    %c57 = arith.constant 57 : index
    %57 = memref.load %arg1[%c57] : memref<449xf32, #tpu.memory_space<smem>>
    %c58 = arith.constant 58 : index
    %58 = memref.load %arg1[%c58] : memref<449xf32, #tpu.memory_space<smem>>
    %c59 = arith.constant 59 : index
    %59 = memref.load %arg1[%c59] : memref<449xf32, #tpu.memory_space<smem>>
    %c60 = arith.constant 60 : index
    %60 = memref.load %arg1[%c60] : memref<449xf32, #tpu.memory_space<smem>>
    %c61 = arith.constant 61 : index
    %61 = memref.load %arg1[%c61] : memref<449xf32, #tpu.memory_space<smem>>
    %c62 = arith.constant 62 : index
    %62 = memref.load %arg1[%c62] : memref<449xf32, #tpu.memory_space<smem>>
    %c63 = arith.constant 63 : index
    %63 = memref.load %arg1[%c63] : memref<449xf32, #tpu.memory_space<smem>>
    %c64 = arith.constant 64 : index
    %64 = memref.load %arg1[%c64] : memref<449xf32, #tpu.memory_space<smem>>
    %c65 = arith.constant 65 : index
    %65 = memref.load %arg1[%c65] : memref<449xf32, #tpu.memory_space<smem>>
    %c66 = arith.constant 66 : index
    %66 = memref.load %arg1[%c66] : memref<449xf32, #tpu.memory_space<smem>>
    %c67 = arith.constant 67 : index
    %67 = memref.load %arg1[%c67] : memref<449xf32, #tpu.memory_space<smem>>
    %c68 = arith.constant 68 : index
    %68 = memref.load %arg1[%c68] : memref<449xf32, #tpu.memory_space<smem>>
    %c69 = arith.constant 69 : index
    %69 = memref.load %arg1[%c69] : memref<449xf32, #tpu.memory_space<smem>>
    %c70 = arith.constant 70 : index
    %70 = memref.load %arg1[%c70] : memref<449xf32, #tpu.memory_space<smem>>
    %c71 = arith.constant 71 : index
    %71 = memref.load %arg1[%c71] : memref<449xf32, #tpu.memory_space<smem>>
    %c72 = arith.constant 72 : index
    %72 = memref.load %arg1[%c72] : memref<449xf32, #tpu.memory_space<smem>>
    %c73 = arith.constant 73 : index
    %73 = memref.load %arg1[%c73] : memref<449xf32, #tpu.memory_space<smem>>
    %c74 = arith.constant 74 : index
    %74 = memref.load %arg1[%c74] : memref<449xf32, #tpu.memory_space<smem>>
    %c75 = arith.constant 75 : index
    %75 = memref.load %arg1[%c75] : memref<449xf32, #tpu.memory_space<smem>>
    %c76 = arith.constant 76 : index
    %76 = memref.load %arg1[%c76] : memref<449xf32, #tpu.memory_space<smem>>
    %c77 = arith.constant 77 : index
    %77 = memref.load %arg1[%c77] : memref<449xf32, #tpu.memory_space<smem>>
    %c78 = arith.constant 78 : index
    %78 = memref.load %arg1[%c78] : memref<449xf32, #tpu.memory_space<smem>>
    %c79 = arith.constant 79 : index
    %79 = memref.load %arg1[%c79] : memref<449xf32, #tpu.memory_space<smem>>
    %c80 = arith.constant 80 : index
    %80 = memref.load %arg1[%c80] : memref<449xf32, #tpu.memory_space<smem>>
    %c81 = arith.constant 81 : index
    %81 = memref.load %arg1[%c81] : memref<449xf32, #tpu.memory_space<smem>>
    %c82 = arith.constant 82 : index
    %82 = memref.load %arg1[%c82] : memref<449xf32, #tpu.memory_space<smem>>
    %c83 = arith.constant 83 : index
    %83 = memref.load %arg1[%c83] : memref<449xf32, #tpu.memory_space<smem>>
    %c84 = arith.constant 84 : index
    %84 = memref.load %arg1[%c84] : memref<449xf32, #tpu.memory_space<smem>>
    %c85 = arith.constant 85 : index
    %85 = memref.load %arg1[%c85] : memref<449xf32, #tpu.memory_space<smem>>
    %c86 = arith.constant 86 : index
    %86 = memref.load %arg1[%c86] : memref<449xf32, #tpu.memory_space<smem>>
    %c87 = arith.constant 87 : index
    %87 = memref.load %arg1[%c87] : memref<449xf32, #tpu.memory_space<smem>>
    %c88 = arith.constant 88 : index
    %88 = memref.load %arg1[%c88] : memref<449xf32, #tpu.memory_space<smem>>
    %c89 = arith.constant 89 : index
    %89 = memref.load %arg1[%c89] : memref<449xf32, #tpu.memory_space<smem>>
    %c90 = arith.constant 90 : index
    %90 = memref.load %arg1[%c90] : memref<449xf32, #tpu.memory_space<smem>>
    %c91 = arith.constant 91 : index
    %91 = memref.load %arg1[%c91] : memref<449xf32, #tpu.memory_space<smem>>
    %c92 = arith.constant 92 : index
    %92 = memref.load %arg1[%c92] : memref<449xf32, #tpu.memory_space<smem>>
    %c93 = arith.constant 93 : index
    %93 = memref.load %arg1[%c93] : memref<449xf32, #tpu.memory_space<smem>>
    %c94 = arith.constant 94 : index
    %94 = memref.load %arg1[%c94] : memref<449xf32, #tpu.memory_space<smem>>
    %c95 = arith.constant 95 : index
    %95 = memref.load %arg1[%c95] : memref<449xf32, #tpu.memory_space<smem>>
    %c96 = arith.constant 96 : index
    %96 = memref.load %arg1[%c96] : memref<449xf32, #tpu.memory_space<smem>>
    %c97 = arith.constant 97 : index
    %97 = memref.load %arg1[%c97] : memref<449xf32, #tpu.memory_space<smem>>
    %c98 = arith.constant 98 : index
    %98 = memref.load %arg1[%c98] : memref<449xf32, #tpu.memory_space<smem>>
    %c99 = arith.constant 99 : index
    %99 = memref.load %arg1[%c99] : memref<449xf32, #tpu.memory_space<smem>>
    %c100 = arith.constant 100 : index
    %100 = memref.load %arg1[%c100] : memref<449xf32, #tpu.memory_space<smem>>
    %c101 = arith.constant 101 : index
    %101 = memref.load %arg1[%c101] : memref<449xf32, #tpu.memory_space<smem>>
    %c102 = arith.constant 102 : index
    %102 = memref.load %arg1[%c102] : memref<449xf32, #tpu.memory_space<smem>>
    %c103 = arith.constant 103 : index
    %103 = memref.load %arg1[%c103] : memref<449xf32, #tpu.memory_space<smem>>
    %c104 = arith.constant 104 : index
    %104 = memref.load %arg1[%c104] : memref<449xf32, #tpu.memory_space<smem>>
    %c105 = arith.constant 105 : index
    %105 = memref.load %arg1[%c105] : memref<449xf32, #tpu.memory_space<smem>>
    %c106 = arith.constant 106 : index
    %106 = memref.load %arg1[%c106] : memref<449xf32, #tpu.memory_space<smem>>
    %c107 = arith.constant 107 : index
    %107 = memref.load %arg1[%c107] : memref<449xf32, #tpu.memory_space<smem>>
    %c108 = arith.constant 108 : index
    %108 = memref.load %arg1[%c108] : memref<449xf32, #tpu.memory_space<smem>>
    %c109 = arith.constant 109 : index
    %109 = memref.load %arg1[%c109] : memref<449xf32, #tpu.memory_space<smem>>
    %c110 = arith.constant 110 : index
    %110 = memref.load %arg1[%c110] : memref<449xf32, #tpu.memory_space<smem>>
    %c111 = arith.constant 111 : index
    %111 = memref.load %arg1[%c111] : memref<449xf32, #tpu.memory_space<smem>>
    %c112 = arith.constant 112 : index
    %112 = memref.load %arg1[%c112] : memref<449xf32, #tpu.memory_space<smem>>
    %c113 = arith.constant 113 : index
    %113 = memref.load %arg1[%c113] : memref<449xf32, #tpu.memory_space<smem>>
    %c114 = arith.constant 114 : index
    %114 = memref.load %arg1[%c114] : memref<449xf32, #tpu.memory_space<smem>>
    %c115 = arith.constant 115 : index
    %115 = memref.load %arg1[%c115] : memref<449xf32, #tpu.memory_space<smem>>
    %c116 = arith.constant 116 : index
    %116 = memref.load %arg1[%c116] : memref<449xf32, #tpu.memory_space<smem>>
    %c117 = arith.constant 117 : index
    %117 = memref.load %arg1[%c117] : memref<449xf32, #tpu.memory_space<smem>>
    %c118 = arith.constant 118 : index
    %118 = memref.load %arg1[%c118] : memref<449xf32, #tpu.memory_space<smem>>
    %c119 = arith.constant 119 : index
    %119 = memref.load %arg1[%c119] : memref<449xf32, #tpu.memory_space<smem>>
    %c120 = arith.constant 120 : index
    %120 = memref.load %arg1[%c120] : memref<449xf32, #tpu.memory_space<smem>>
    %c121 = arith.constant 121 : index
    %121 = memref.load %arg1[%c121] : memref<449xf32, #tpu.memory_space<smem>>
    %c122 = arith.constant 122 : index
    %122 = memref.load %arg1[%c122] : memref<449xf32, #tpu.memory_space<smem>>
    %c123 = arith.constant 123 : index
    %123 = memref.load %arg1[%c123] : memref<449xf32, #tpu.memory_space<smem>>
    %c124 = arith.constant 124 : index
    %124 = memref.load %arg1[%c124] : memref<449xf32, #tpu.memory_space<smem>>
    %c125 = arith.constant 125 : index
    %125 = memref.load %arg1[%c125] : memref<449xf32, #tpu.memory_space<smem>>
    %c126 = arith.constant 126 : index
    %126 = memref.load %arg1[%c126] : memref<449xf32, #tpu.memory_space<smem>>
    %c127 = arith.constant 127 : index
    %127 = memref.load %arg1[%c127] : memref<449xf32, #tpu.memory_space<smem>>
    %c128 = arith.constant 128 : index
    %128 = memref.load %arg1[%c128] : memref<449xf32, #tpu.memory_space<smem>>
    %c129 = arith.constant 129 : index
    %129 = memref.load %arg1[%c129] : memref<449xf32, #tpu.memory_space<smem>>
    %c130 = arith.constant 130 : index
    %130 = memref.load %arg1[%c130] : memref<449xf32, #tpu.memory_space<smem>>
    %c131 = arith.constant 131 : index
    %131 = memref.load %arg1[%c131] : memref<449xf32, #tpu.memory_space<smem>>
    %c132 = arith.constant 132 : index
    %132 = memref.load %arg1[%c132] : memref<449xf32, #tpu.memory_space<smem>>
    %c133 = arith.constant 133 : index
    %133 = memref.load %arg1[%c133] : memref<449xf32, #tpu.memory_space<smem>>
    %c134 = arith.constant 134 : index
    %134 = memref.load %arg1[%c134] : memref<449xf32, #tpu.memory_space<smem>>
    %c135 = arith.constant 135 : index
    %135 = memref.load %arg1[%c135] : memref<449xf32, #tpu.memory_space<smem>>
    %c136 = arith.constant 136 : index
    %136 = memref.load %arg1[%c136] : memref<449xf32, #tpu.memory_space<smem>>
    %c137 = arith.constant 137 : index
    %137 = memref.load %arg1[%c137] : memref<449xf32, #tpu.memory_space<smem>>
    %c138 = arith.constant 138 : index
    %138 = memref.load %arg1[%c138] : memref<449xf32, #tpu.memory_space<smem>>
    %c139 = arith.constant 139 : index
    %139 = memref.load %arg1[%c139] : memref<449xf32, #tpu.memory_space<smem>>
    %c140 = arith.constant 140 : index
    %140 = memref.load %arg1[%c140] : memref<449xf32, #tpu.memory_space<smem>>
    %c141 = arith.constant 141 : index
    %141 = memref.load %arg1[%c141] : memref<449xf32, #tpu.memory_space<smem>>
    %c142 = arith.constant 142 : index
    %142 = memref.load %arg1[%c142] : memref<449xf32, #tpu.memory_space<smem>>
    %c143 = arith.constant 143 : index
    %143 = memref.load %arg1[%c143] : memref<449xf32, #tpu.memory_space<smem>>
    %c144 = arith.constant 144 : index
    %144 = memref.load %arg1[%c144] : memref<449xf32, #tpu.memory_space<smem>>
    %c145 = arith.constant 145 : index
    %145 = memref.load %arg1[%c145] : memref<449xf32, #tpu.memory_space<smem>>
    %c146 = arith.constant 146 : index
    %146 = memref.load %arg1[%c146] : memref<449xf32, #tpu.memory_space<smem>>
    %c147 = arith.constant 147 : index
    %147 = memref.load %arg1[%c147] : memref<449xf32, #tpu.memory_space<smem>>
    %c148 = arith.constant 148 : index
    %148 = memref.load %arg1[%c148] : memref<449xf32, #tpu.memory_space<smem>>
    %c149 = arith.constant 149 : index
    %149 = memref.load %arg1[%c149] : memref<449xf32, #tpu.memory_space<smem>>
    %c150 = arith.constant 150 : index
    %150 = memref.load %arg1[%c150] : memref<449xf32, #tpu.memory_space<smem>>
    %c151 = arith.constant 151 : index
    %151 = memref.load %arg1[%c151] : memref<449xf32, #tpu.memory_space<smem>>
    %c152 = arith.constant 152 : index
    %152 = memref.load %arg1[%c152] : memref<449xf32, #tpu.memory_space<smem>>
    %c153 = arith.constant 153 : index
    %153 = memref.load %arg1[%c153] : memref<449xf32, #tpu.memory_space<smem>>
    %c154 = arith.constant 154 : index
    %154 = memref.load %arg1[%c154] : memref<449xf32, #tpu.memory_space<smem>>
    %c155 = arith.constant 155 : index
    %155 = memref.load %arg1[%c155] : memref<449xf32, #tpu.memory_space<smem>>
    %c156 = arith.constant 156 : index
    %156 = memref.load %arg1[%c156] : memref<449xf32, #tpu.memory_space<smem>>
    %c157 = arith.constant 157 : index
    %157 = memref.load %arg1[%c157] : memref<449xf32, #tpu.memory_space<smem>>
    %c158 = arith.constant 158 : index
    %158 = memref.load %arg1[%c158] : memref<449xf32, #tpu.memory_space<smem>>
    %c159 = arith.constant 159 : index
    %159 = memref.load %arg1[%c159] : memref<449xf32, #tpu.memory_space<smem>>
    %c160 = arith.constant 160 : index
    %160 = memref.load %arg1[%c160] : memref<449xf32, #tpu.memory_space<smem>>
    %c161 = arith.constant 161 : index
    %161 = memref.load %arg1[%c161] : memref<449xf32, #tpu.memory_space<smem>>
    %c162 = arith.constant 162 : index
    %162 = memref.load %arg1[%c162] : memref<449xf32, #tpu.memory_space<smem>>
    %c163 = arith.constant 163 : index
    %163 = memref.load %arg1[%c163] : memref<449xf32, #tpu.memory_space<smem>>
    %c164 = arith.constant 164 : index
    %164 = memref.load %arg1[%c164] : memref<449xf32, #tpu.memory_space<smem>>
    %c165 = arith.constant 165 : index
    %165 = memref.load %arg1[%c165] : memref<449xf32, #tpu.memory_space<smem>>
    %c166 = arith.constant 166 : index
    %166 = memref.load %arg1[%c166] : memref<449xf32, #tpu.memory_space<smem>>
    %c167 = arith.constant 167 : index
    %167 = memref.load %arg1[%c167] : memref<449xf32, #tpu.memory_space<smem>>
    %c168 = arith.constant 168 : index
    %168 = memref.load %arg1[%c168] : memref<449xf32, #tpu.memory_space<smem>>
    %c169 = arith.constant 169 : index
    %169 = memref.load %arg1[%c169] : memref<449xf32, #tpu.memory_space<smem>>
    %c170 = arith.constant 170 : index
    %170 = memref.load %arg1[%c170] : memref<449xf32, #tpu.memory_space<smem>>
    %c171 = arith.constant 171 : index
    %171 = memref.load %arg1[%c171] : memref<449xf32, #tpu.memory_space<smem>>
    %c172 = arith.constant 172 : index
    %172 = memref.load %arg1[%c172] : memref<449xf32, #tpu.memory_space<smem>>
    %c173 = arith.constant 173 : index
    %173 = memref.load %arg1[%c173] : memref<449xf32, #tpu.memory_space<smem>>
    %c174 = arith.constant 174 : index
    %174 = memref.load %arg1[%c174] : memref<449xf32, #tpu.memory_space<smem>>
    %c175 = arith.constant 175 : index
    %175 = memref.load %arg1[%c175] : memref<449xf32, #tpu.memory_space<smem>>
    %c176 = arith.constant 176 : index
    %176 = memref.load %arg1[%c176] : memref<449xf32, #tpu.memory_space<smem>>
    %c177 = arith.constant 177 : index
    %177 = memref.load %arg1[%c177] : memref<449xf32, #tpu.memory_space<smem>>
    %c178 = arith.constant 178 : index
    %178 = memref.load %arg1[%c178] : memref<449xf32, #tpu.memory_space<smem>>
    %c179 = arith.constant 179 : index
    %179 = memref.load %arg1[%c179] : memref<449xf32, #tpu.memory_space<smem>>
    %c180 = arith.constant 180 : index
    %180 = memref.load %arg1[%c180] : memref<449xf32, #tpu.memory_space<smem>>
    %c181 = arith.constant 181 : index
    %181 = memref.load %arg1[%c181] : memref<449xf32, #tpu.memory_space<smem>>
    %c182 = arith.constant 182 : index
    %182 = memref.load %arg1[%c182] : memref<449xf32, #tpu.memory_space<smem>>
    %c183 = arith.constant 183 : index
    %183 = memref.load %arg1[%c183] : memref<449xf32, #tpu.memory_space<smem>>
    %c184 = arith.constant 184 : index
    %184 = memref.load %arg1[%c184] : memref<449xf32, #tpu.memory_space<smem>>
    %c185 = arith.constant 185 : index
    %185 = memref.load %arg1[%c185] : memref<449xf32, #tpu.memory_space<smem>>
    %c186 = arith.constant 186 : index
    %186 = memref.load %arg1[%c186] : memref<449xf32, #tpu.memory_space<smem>>
    %c187 = arith.constant 187 : index
    %187 = memref.load %arg1[%c187] : memref<449xf32, #tpu.memory_space<smem>>
    %c188 = arith.constant 188 : index
    %188 = memref.load %arg1[%c188] : memref<449xf32, #tpu.memory_space<smem>>
    %c189 = arith.constant 189 : index
    %189 = memref.load %arg1[%c189] : memref<449xf32, #tpu.memory_space<smem>>
    %c190 = arith.constant 190 : index
    %190 = memref.load %arg1[%c190] : memref<449xf32, #tpu.memory_space<smem>>
    %c191 = arith.constant 191 : index
    %191 = memref.load %arg1[%c191] : memref<449xf32, #tpu.memory_space<smem>>
    %c192 = arith.constant 192 : index
    %192 = memref.load %arg1[%c192] : memref<449xf32, #tpu.memory_space<smem>>
    %c193 = arith.constant 193 : index
    %193 = memref.load %arg1[%c193] : memref<449xf32, #tpu.memory_space<smem>>
    %c194 = arith.constant 194 : index
    %194 = memref.load %arg1[%c194] : memref<449xf32, #tpu.memory_space<smem>>
    %c195 = arith.constant 195 : index
    %195 = memref.load %arg1[%c195] : memref<449xf32, #tpu.memory_space<smem>>
    %c196 = arith.constant 196 : index
    %196 = memref.load %arg1[%c196] : memref<449xf32, #tpu.memory_space<smem>>
    %c197 = arith.constant 197 : index
    %197 = memref.load %arg1[%c197] : memref<449xf32, #tpu.memory_space<smem>>
    %c198 = arith.constant 198 : index
    %198 = memref.load %arg1[%c198] : memref<449xf32, #tpu.memory_space<smem>>
    %c199 = arith.constant 199 : index
    %199 = memref.load %arg1[%c199] : memref<449xf32, #tpu.memory_space<smem>>
    %c200 = arith.constant 200 : index
    %200 = memref.load %arg1[%c200] : memref<449xf32, #tpu.memory_space<smem>>
    %c201 = arith.constant 201 : index
    %201 = memref.load %arg1[%c201] : memref<449xf32, #tpu.memory_space<smem>>
    %c202 = arith.constant 202 : index
    %202 = memref.load %arg1[%c202] : memref<449xf32, #tpu.memory_space<smem>>
    %c203 = arith.constant 203 : index
    %203 = memref.load %arg1[%c203] : memref<449xf32, #tpu.memory_space<smem>>
    %c204 = arith.constant 204 : index
    %204 = memref.load %arg1[%c204] : memref<449xf32, #tpu.memory_space<smem>>
    %c205 = arith.constant 205 : index
    %205 = memref.load %arg1[%c205] : memref<449xf32, #tpu.memory_space<smem>>
    %c206 = arith.constant 206 : index
    %206 = memref.load %arg1[%c206] : memref<449xf32, #tpu.memory_space<smem>>
    %c207 = arith.constant 207 : index
    %207 = memref.load %arg1[%c207] : memref<449xf32, #tpu.memory_space<smem>>
    %c208 = arith.constant 208 : index
    %208 = memref.load %arg1[%c208] : memref<449xf32, #tpu.memory_space<smem>>
    %c209 = arith.constant 209 : index
    %209 = memref.load %arg1[%c209] : memref<449xf32, #tpu.memory_space<smem>>
    %c210 = arith.constant 210 : index
    %210 = memref.load %arg1[%c210] : memref<449xf32, #tpu.memory_space<smem>>
    %c211 = arith.constant 211 : index
    %211 = memref.load %arg1[%c211] : memref<449xf32, #tpu.memory_space<smem>>
    %c212 = arith.constant 212 : index
    %212 = memref.load %arg1[%c212] : memref<449xf32, #tpu.memory_space<smem>>
    %c213 = arith.constant 213 : index
    %213 = memref.load %arg1[%c213] : memref<449xf32, #tpu.memory_space<smem>>
    %c214 = arith.constant 214 : index
    %214 = memref.load %arg1[%c214] : memref<449xf32, #tpu.memory_space<smem>>
    %c215 = arith.constant 215 : index
    %215 = memref.load %arg1[%c215] : memref<449xf32, #tpu.memory_space<smem>>
    %c216 = arith.constant 216 : index
    %216 = memref.load %arg1[%c216] : memref<449xf32, #tpu.memory_space<smem>>
    %c217 = arith.constant 217 : index
    %217 = memref.load %arg1[%c217] : memref<449xf32, #tpu.memory_space<smem>>
    %c218 = arith.constant 218 : index
    %218 = memref.load %arg1[%c218] : memref<449xf32, #tpu.memory_space<smem>>
    %c219 = arith.constant 219 : index
    %219 = memref.load %arg1[%c219] : memref<449xf32, #tpu.memory_space<smem>>
    %c220 = arith.constant 220 : index
    %220 = memref.load %arg1[%c220] : memref<449xf32, #tpu.memory_space<smem>>
    %c221 = arith.constant 221 : index
    %221 = memref.load %arg1[%c221] : memref<449xf32, #tpu.memory_space<smem>>
    %c222 = arith.constant 222 : index
    %222 = memref.load %arg1[%c222] : memref<449xf32, #tpu.memory_space<smem>>
    %c223 = arith.constant 223 : index
    %223 = memref.load %arg1[%c223] : memref<449xf32, #tpu.memory_space<smem>>
    %c224 = arith.constant 224 : index
    %224 = memref.load %arg1[%c224] : memref<449xf32, #tpu.memory_space<smem>>
    %c225 = arith.constant 225 : index
    %225 = memref.load %arg1[%c225] : memref<449xf32, #tpu.memory_space<smem>>
    %c226 = arith.constant 226 : index
    %226 = memref.load %arg1[%c226] : memref<449xf32, #tpu.memory_space<smem>>
    %c227 = arith.constant 227 : index
    %227 = memref.load %arg1[%c227] : memref<449xf32, #tpu.memory_space<smem>>
    %c228 = arith.constant 228 : index
    %228 = memref.load %arg1[%c228] : memref<449xf32, #tpu.memory_space<smem>>
    %c229 = arith.constant 229 : index
    %229 = memref.load %arg1[%c229] : memref<449xf32, #tpu.memory_space<smem>>
    %c230 = arith.constant 230 : index
    %230 = memref.load %arg1[%c230] : memref<449xf32, #tpu.memory_space<smem>>
    %c231 = arith.constant 231 : index
    %231 = memref.load %arg1[%c231] : memref<449xf32, #tpu.memory_space<smem>>
    %c232 = arith.constant 232 : index
    %232 = memref.load %arg1[%c232] : memref<449xf32, #tpu.memory_space<smem>>
    %c233 = arith.constant 233 : index
    %233 = memref.load %arg1[%c233] : memref<449xf32, #tpu.memory_space<smem>>
    %c234 = arith.constant 234 : index
    %234 = memref.load %arg1[%c234] : memref<449xf32, #tpu.memory_space<smem>>
    %c235 = arith.constant 235 : index
    %235 = memref.load %arg1[%c235] : memref<449xf32, #tpu.memory_space<smem>>
    %c236 = arith.constant 236 : index
    %236 = memref.load %arg1[%c236] : memref<449xf32, #tpu.memory_space<smem>>
    %c237 = arith.constant 237 : index
    %237 = memref.load %arg1[%c237] : memref<449xf32, #tpu.memory_space<smem>>
    %c238 = arith.constant 238 : index
    %238 = memref.load %arg1[%c238] : memref<449xf32, #tpu.memory_space<smem>>
    %c239 = arith.constant 239 : index
    %239 = memref.load %arg1[%c239] : memref<449xf32, #tpu.memory_space<smem>>
    %c240 = arith.constant 240 : index
    %240 = memref.load %arg1[%c240] : memref<449xf32, #tpu.memory_space<smem>>
    %c241 = arith.constant 241 : index
    %241 = memref.load %arg1[%c241] : memref<449xf32, #tpu.memory_space<smem>>
    %c242 = arith.constant 242 : index
    %242 = memref.load %arg1[%c242] : memref<449xf32, #tpu.memory_space<smem>>
    %c243 = arith.constant 243 : index
    %243 = memref.load %arg1[%c243] : memref<449xf32, #tpu.memory_space<smem>>
    %c244 = arith.constant 244 : index
    %244 = memref.load %arg1[%c244] : memref<449xf32, #tpu.memory_space<smem>>
    %c245 = arith.constant 245 : index
    %245 = memref.load %arg1[%c245] : memref<449xf32, #tpu.memory_space<smem>>
    %c246 = arith.constant 246 : index
    %246 = memref.load %arg1[%c246] : memref<449xf32, #tpu.memory_space<smem>>
    %c247 = arith.constant 247 : index
    %247 = memref.load %arg1[%c247] : memref<449xf32, #tpu.memory_space<smem>>
    %c248 = arith.constant 248 : index
    %248 = memref.load %arg1[%c248] : memref<449xf32, #tpu.memory_space<smem>>
    %c249 = arith.constant 249 : index
    %249 = memref.load %arg1[%c249] : memref<449xf32, #tpu.memory_space<smem>>
    %c250 = arith.constant 250 : index
    %250 = memref.load %arg1[%c250] : memref<449xf32, #tpu.memory_space<smem>>
    %c251 = arith.constant 251 : index
    %251 = memref.load %arg1[%c251] : memref<449xf32, #tpu.memory_space<smem>>
    %c252 = arith.constant 252 : index
    %252 = memref.load %arg1[%c252] : memref<449xf32, #tpu.memory_space<smem>>
    %c253 = arith.constant 253 : index
    %253 = memref.load %arg1[%c253] : memref<449xf32, #tpu.memory_space<smem>>
    %c254 = arith.constant 254 : index
    %254 = memref.load %arg1[%c254] : memref<449xf32, #tpu.memory_space<smem>>
    %c255 = arith.constant 255 : index
    %255 = memref.load %arg1[%c255] : memref<449xf32, #tpu.memory_space<smem>>
    %c256 = arith.constant 256 : index
    %256 = memref.load %arg1[%c256] : memref<449xf32, #tpu.memory_space<smem>>
    %c257 = arith.constant 257 : index
    %257 = memref.load %arg1[%c257] : memref<449xf32, #tpu.memory_space<smem>>
    %c258 = arith.constant 258 : index
    %258 = memref.load %arg1[%c258] : memref<449xf32, #tpu.memory_space<smem>>
    %c259 = arith.constant 259 : index
    %259 = memref.load %arg1[%c259] : memref<449xf32, #tpu.memory_space<smem>>
    %c260 = arith.constant 260 : index
    %260 = memref.load %arg1[%c260] : memref<449xf32, #tpu.memory_space<smem>>
    %c261 = arith.constant 261 : index
    %261 = memref.load %arg1[%c261] : memref<449xf32, #tpu.memory_space<smem>>
    %c262 = arith.constant 262 : index
    %262 = memref.load %arg1[%c262] : memref<449xf32, #tpu.memory_space<smem>>
    %c263 = arith.constant 263 : index
    %263 = memref.load %arg1[%c263] : memref<449xf32, #tpu.memory_space<smem>>
    %c264 = arith.constant 264 : index
    %264 = memref.load %arg1[%c264] : memref<449xf32, #tpu.memory_space<smem>>
    %c265 = arith.constant 265 : index
    %265 = memref.load %arg1[%c265] : memref<449xf32, #tpu.memory_space<smem>>
    %c266 = arith.constant 266 : index
    %266 = memref.load %arg1[%c266] : memref<449xf32, #tpu.memory_space<smem>>
    %c267 = arith.constant 267 : index
    %267 = memref.load %arg1[%c267] : memref<449xf32, #tpu.memory_space<smem>>
    %c268 = arith.constant 268 : index
    %268 = memref.load %arg1[%c268] : memref<449xf32, #tpu.memory_space<smem>>
    %c269 = arith.constant 269 : index
    %269 = memref.load %arg1[%c269] : memref<449xf32, #tpu.memory_space<smem>>
    %c270 = arith.constant 270 : index
    %270 = memref.load %arg1[%c270] : memref<449xf32, #tpu.memory_space<smem>>
    %c271 = arith.constant 271 : index
    %271 = memref.load %arg1[%c271] : memref<449xf32, #tpu.memory_space<smem>>
    %c272 = arith.constant 272 : index
    %272 = memref.load %arg1[%c272] : memref<449xf32, #tpu.memory_space<smem>>
    %c273 = arith.constant 273 : index
    %273 = memref.load %arg1[%c273] : memref<449xf32, #tpu.memory_space<smem>>
    %c274 = arith.constant 274 : index
    %274 = memref.load %arg1[%c274] : memref<449xf32, #tpu.memory_space<smem>>
    %c275 = arith.constant 275 : index
    %275 = memref.load %arg1[%c275] : memref<449xf32, #tpu.memory_space<smem>>
    %c276 = arith.constant 276 : index
    %276 = memref.load %arg1[%c276] : memref<449xf32, #tpu.memory_space<smem>>
    %c277 = arith.constant 277 : index
    %277 = memref.load %arg1[%c277] : memref<449xf32, #tpu.memory_space<smem>>
    %c278 = arith.constant 278 : index
    %278 = memref.load %arg1[%c278] : memref<449xf32, #tpu.memory_space<smem>>
    %c279 = arith.constant 279 : index
    %279 = memref.load %arg1[%c279] : memref<449xf32, #tpu.memory_space<smem>>
    %c280 = arith.constant 280 : index
    %280 = memref.load %arg1[%c280] : memref<449xf32, #tpu.memory_space<smem>>
    %c281 = arith.constant 281 : index
    %281 = memref.load %arg1[%c281] : memref<449xf32, #tpu.memory_space<smem>>
    %c282 = arith.constant 282 : index
    %282 = memref.load %arg1[%c282] : memref<449xf32, #tpu.memory_space<smem>>
    %c283 = arith.constant 283 : index
    %283 = memref.load %arg1[%c283] : memref<449xf32, #tpu.memory_space<smem>>
    %c284 = arith.constant 284 : index
    %284 = memref.load %arg1[%c284] : memref<449xf32, #tpu.memory_space<smem>>
    %c285 = arith.constant 285 : index
    %285 = memref.load %arg1[%c285] : memref<449xf32, #tpu.memory_space<smem>>
    %c286 = arith.constant 286 : index
    %286 = memref.load %arg1[%c286] : memref<449xf32, #tpu.memory_space<smem>>
    %c287 = arith.constant 287 : index
    %287 = memref.load %arg1[%c287] : memref<449xf32, #tpu.memory_space<smem>>
    %c288 = arith.constant 288 : index
    %288 = memref.load %arg1[%c288] : memref<449xf32, #tpu.memory_space<smem>>
    %c289 = arith.constant 289 : index
    %289 = memref.load %arg1[%c289] : memref<449xf32, #tpu.memory_space<smem>>
    %c290 = arith.constant 290 : index
    %290 = memref.load %arg1[%c290] : memref<449xf32, #tpu.memory_space<smem>>
    %c291 = arith.constant 291 : index
    %291 = memref.load %arg1[%c291] : memref<449xf32, #tpu.memory_space<smem>>
    %c292 = arith.constant 292 : index
    %292 = memref.load %arg1[%c292] : memref<449xf32, #tpu.memory_space<smem>>
    %c293 = arith.constant 293 : index
    %293 = memref.load %arg1[%c293] : memref<449xf32, #tpu.memory_space<smem>>
    %c294 = arith.constant 294 : index
    %294 = memref.load %arg1[%c294] : memref<449xf32, #tpu.memory_space<smem>>
    %c295 = arith.constant 295 : index
    %295 = memref.load %arg1[%c295] : memref<449xf32, #tpu.memory_space<smem>>
    %c296 = arith.constant 296 : index
    %296 = memref.load %arg1[%c296] : memref<449xf32, #tpu.memory_space<smem>>
    %c297 = arith.constant 297 : index
    %297 = memref.load %arg1[%c297] : memref<449xf32, #tpu.memory_space<smem>>
    %c298 = arith.constant 298 : index
    %298 = memref.load %arg1[%c298] : memref<449xf32, #tpu.memory_space<smem>>
    %c299 = arith.constant 299 : index
    %299 = memref.load %arg1[%c299] : memref<449xf32, #tpu.memory_space<smem>>
    %c300 = arith.constant 300 : index
    %300 = memref.load %arg1[%c300] : memref<449xf32, #tpu.memory_space<smem>>
    %c301 = arith.constant 301 : index
    %301 = memref.load %arg1[%c301] : memref<449xf32, #tpu.memory_space<smem>>
    %c302 = arith.constant 302 : index
    %302 = memref.load %arg1[%c302] : memref<449xf32, #tpu.memory_space<smem>>
    %c303 = arith.constant 303 : index
    %303 = memref.load %arg1[%c303] : memref<449xf32, #tpu.memory_space<smem>>
    %c304 = arith.constant 304 : index
    %304 = memref.load %arg1[%c304] : memref<449xf32, #tpu.memory_space<smem>>
    %c305 = arith.constant 305 : index
    %305 = memref.load %arg1[%c305] : memref<449xf32, #tpu.memory_space<smem>>
    %c306 = arith.constant 306 : index
    %306 = memref.load %arg1[%c306] : memref<449xf32, #tpu.memory_space<smem>>
    %c307 = arith.constant 307 : index
    %307 = memref.load %arg1[%c307] : memref<449xf32, #tpu.memory_space<smem>>
    %c308 = arith.constant 308 : index
    %308 = memref.load %arg1[%c308] : memref<449xf32, #tpu.memory_space<smem>>
    %c309 = arith.constant 309 : index
    %309 = memref.load %arg1[%c309] : memref<449xf32, #tpu.memory_space<smem>>
    %c310 = arith.constant 310 : index
    %310 = memref.load %arg1[%c310] : memref<449xf32, #tpu.memory_space<smem>>
    %c311 = arith.constant 311 : index
    %311 = memref.load %arg1[%c311] : memref<449xf32, #tpu.memory_space<smem>>
    %c312 = arith.constant 312 : index
    %312 = memref.load %arg1[%c312] : memref<449xf32, #tpu.memory_space<smem>>
    %c313 = arith.constant 313 : index
    %313 = memref.load %arg1[%c313] : memref<449xf32, #tpu.memory_space<smem>>
    %c314 = arith.constant 314 : index
    %314 = memref.load %arg1[%c314] : memref<449xf32, #tpu.memory_space<smem>>
    %c315 = arith.constant 315 : index
    %315 = memref.load %arg1[%c315] : memref<449xf32, #tpu.memory_space<smem>>
    %c316 = arith.constant 316 : index
    %316 = memref.load %arg1[%c316] : memref<449xf32, #tpu.memory_space<smem>>
    %c317 = arith.constant 317 : index
    %317 = memref.load %arg1[%c317] : memref<449xf32, #tpu.memory_space<smem>>
    %c318 = arith.constant 318 : index
    %318 = memref.load %arg1[%c318] : memref<449xf32, #tpu.memory_space<smem>>
    %c319 = arith.constant 319 : index
    %319 = memref.load %arg1[%c319] : memref<449xf32, #tpu.memory_space<smem>>
    %c320 = arith.constant 320 : index
    %320 = memref.load %arg1[%c320] : memref<449xf32, #tpu.memory_space<smem>>
    %c321 = arith.constant 321 : index
    %321 = memref.load %arg1[%c321] : memref<449xf32, #tpu.memory_space<smem>>
    %c322 = arith.constant 322 : index
    %322 = memref.load %arg1[%c322] : memref<449xf32, #tpu.memory_space<smem>>
    %c323 = arith.constant 323 : index
    %323 = memref.load %arg1[%c323] : memref<449xf32, #tpu.memory_space<smem>>
    %c324 = arith.constant 324 : index
    %324 = memref.load %arg1[%c324] : memref<449xf32, #tpu.memory_space<smem>>
    %c325 = arith.constant 325 : index
    %325 = memref.load %arg1[%c325] : memref<449xf32, #tpu.memory_space<smem>>
    %c326 = arith.constant 326 : index
    %326 = memref.load %arg1[%c326] : memref<449xf32, #tpu.memory_space<smem>>
    %c327 = arith.constant 327 : index
    %327 = memref.load %arg1[%c327] : memref<449xf32, #tpu.memory_space<smem>>
    %c328 = arith.constant 328 : index
    %328 = memref.load %arg1[%c328] : memref<449xf32, #tpu.memory_space<smem>>
    %c329 = arith.constant 329 : index
    %329 = memref.load %arg1[%c329] : memref<449xf32, #tpu.memory_space<smem>>
    %c330 = arith.constant 330 : index
    %330 = memref.load %arg1[%c330] : memref<449xf32, #tpu.memory_space<smem>>
    %c331 = arith.constant 331 : index
    %331 = memref.load %arg1[%c331] : memref<449xf32, #tpu.memory_space<smem>>
    %c332 = arith.constant 332 : index
    %332 = memref.load %arg1[%c332] : memref<449xf32, #tpu.memory_space<smem>>
    %c333 = arith.constant 333 : index
    %333 = memref.load %arg1[%c333] : memref<449xf32, #tpu.memory_space<smem>>
    %c334 = arith.constant 334 : index
    %334 = memref.load %arg1[%c334] : memref<449xf32, #tpu.memory_space<smem>>
    %c335 = arith.constant 335 : index
    %335 = memref.load %arg1[%c335] : memref<449xf32, #tpu.memory_space<smem>>
    %c336 = arith.constant 336 : index
    %336 = memref.load %arg1[%c336] : memref<449xf32, #tpu.memory_space<smem>>
    %c337 = arith.constant 337 : index
    %337 = memref.load %arg1[%c337] : memref<449xf32, #tpu.memory_space<smem>>
    %c338 = arith.constant 338 : index
    %338 = memref.load %arg1[%c338] : memref<449xf32, #tpu.memory_space<smem>>
    %c339 = arith.constant 339 : index
    %339 = memref.load %arg1[%c339] : memref<449xf32, #tpu.memory_space<smem>>
    %c340 = arith.constant 340 : index
    %340 = memref.load %arg1[%c340] : memref<449xf32, #tpu.memory_space<smem>>
    %c341 = arith.constant 341 : index
    %341 = memref.load %arg1[%c341] : memref<449xf32, #tpu.memory_space<smem>>
    %c342 = arith.constant 342 : index
    %342 = memref.load %arg1[%c342] : memref<449xf32, #tpu.memory_space<smem>>
    %c343 = arith.constant 343 : index
    %343 = memref.load %arg1[%c343] : memref<449xf32, #tpu.memory_space<smem>>
    %c344 = arith.constant 344 : index
    %344 = memref.load %arg1[%c344] : memref<449xf32, #tpu.memory_space<smem>>
    %c345 = arith.constant 345 : index
    %345 = memref.load %arg1[%c345] : memref<449xf32, #tpu.memory_space<smem>>
    %c346 = arith.constant 346 : index
    %346 = memref.load %arg1[%c346] : memref<449xf32, #tpu.memory_space<smem>>
    %c347 = arith.constant 347 : index
    %347 = memref.load %arg1[%c347] : memref<449xf32, #tpu.memory_space<smem>>
    %c348 = arith.constant 348 : index
    %348 = memref.load %arg1[%c348] : memref<449xf32, #tpu.memory_space<smem>>
    %c349 = arith.constant 349 : index
    %349 = memref.load %arg1[%c349] : memref<449xf32, #tpu.memory_space<smem>>
    %c350 = arith.constant 350 : index
    %350 = memref.load %arg1[%c350] : memref<449xf32, #tpu.memory_space<smem>>
    %c351 = arith.constant 351 : index
    %351 = memref.load %arg1[%c351] : memref<449xf32, #tpu.memory_space<smem>>
    %c352 = arith.constant 352 : index
    %352 = memref.load %arg1[%c352] : memref<449xf32, #tpu.memory_space<smem>>
    %c353 = arith.constant 353 : index
    %353 = memref.load %arg1[%c353] : memref<449xf32, #tpu.memory_space<smem>>
    %c354 = arith.constant 354 : index
    %354 = memref.load %arg1[%c354] : memref<449xf32, #tpu.memory_space<smem>>
    %c355 = arith.constant 355 : index
    %355 = memref.load %arg1[%c355] : memref<449xf32, #tpu.memory_space<smem>>
    %c356 = arith.constant 356 : index
    %356 = memref.load %arg1[%c356] : memref<449xf32, #tpu.memory_space<smem>>
    %c357 = arith.constant 357 : index
    %357 = memref.load %arg1[%c357] : memref<449xf32, #tpu.memory_space<smem>>
    %c358 = arith.constant 358 : index
    %358 = memref.load %arg1[%c358] : memref<449xf32, #tpu.memory_space<smem>>
    %c359 = arith.constant 359 : index
    %359 = memref.load %arg1[%c359] : memref<449xf32, #tpu.memory_space<smem>>
    %c360 = arith.constant 360 : index
    %360 = memref.load %arg1[%c360] : memref<449xf32, #tpu.memory_space<smem>>
    %c361 = arith.constant 361 : index
    %361 = memref.load %arg1[%c361] : memref<449xf32, #tpu.memory_space<smem>>
    %c362 = arith.constant 362 : index
    %362 = memref.load %arg1[%c362] : memref<449xf32, #tpu.memory_space<smem>>
    %c363 = arith.constant 363 : index
    %363 = memref.load %arg1[%c363] : memref<449xf32, #tpu.memory_space<smem>>
    %c364 = arith.constant 364 : index
    %364 = memref.load %arg1[%c364] : memref<449xf32, #tpu.memory_space<smem>>
    %c365 = arith.constant 365 : index
    %365 = memref.load %arg1[%c365] : memref<449xf32, #tpu.memory_space<smem>>
    %c366 = arith.constant 366 : index
    %366 = memref.load %arg1[%c366] : memref<449xf32, #tpu.memory_space<smem>>
    %c367 = arith.constant 367 : index
    %367 = memref.load %arg1[%c367] : memref<449xf32, #tpu.memory_space<smem>>
    %c368 = arith.constant 368 : index
    %368 = memref.load %arg1[%c368] : memref<449xf32, #tpu.memory_space<smem>>
    %c369 = arith.constant 369 : index
    %369 = memref.load %arg1[%c369] : memref<449xf32, #tpu.memory_space<smem>>
    %c370 = arith.constant 370 : index
    %370 = memref.load %arg1[%c370] : memref<449xf32, #tpu.memory_space<smem>>
    %c371 = arith.constant 371 : index
    %371 = memref.load %arg1[%c371] : memref<449xf32, #tpu.memory_space<smem>>
    %c372 = arith.constant 372 : index
    %372 = memref.load %arg1[%c372] : memref<449xf32, #tpu.memory_space<smem>>
    %c373 = arith.constant 373 : index
    %373 = memref.load %arg1[%c373] : memref<449xf32, #tpu.memory_space<smem>>
    %c374 = arith.constant 374 : index
    %374 = memref.load %arg1[%c374] : memref<449xf32, #tpu.memory_space<smem>>
    %c375 = arith.constant 375 : index
    %375 = memref.load %arg1[%c375] : memref<449xf32, #tpu.memory_space<smem>>
    %c376 = arith.constant 376 : index
    %376 = memref.load %arg1[%c376] : memref<449xf32, #tpu.memory_space<smem>>
    %c377 = arith.constant 377 : index
    %377 = memref.load %arg1[%c377] : memref<449xf32, #tpu.memory_space<smem>>
    %c378 = arith.constant 378 : index
    %378 = memref.load %arg1[%c378] : memref<449xf32, #tpu.memory_space<smem>>
    %c379 = arith.constant 379 : index
    %379 = memref.load %arg1[%c379] : memref<449xf32, #tpu.memory_space<smem>>
    %c380 = arith.constant 380 : index
    %380 = memref.load %arg1[%c380] : memref<449xf32, #tpu.memory_space<smem>>
    %c381 = arith.constant 381 : index
    %381 = memref.load %arg1[%c381] : memref<449xf32, #tpu.memory_space<smem>>
    %c382 = arith.constant 382 : index
    %382 = memref.load %arg1[%c382] : memref<449xf32, #tpu.memory_space<smem>>
    %c383 = arith.constant 383 : index
    %383 = memref.load %arg1[%c383] : memref<449xf32, #tpu.memory_space<smem>>
    %c384 = arith.constant 384 : index
    %384 = memref.load %arg1[%c384] : memref<449xf32, #tpu.memory_space<smem>>
    %c385 = arith.constant 385 : index
    %385 = memref.load %arg1[%c385] : memref<449xf32, #tpu.memory_space<smem>>
    %c386 = arith.constant 386 : index
    %386 = memref.load %arg1[%c386] : memref<449xf32, #tpu.memory_space<smem>>
    %c387 = arith.constant 387 : index
    %387 = memref.load %arg1[%c387] : memref<449xf32, #tpu.memory_space<smem>>
    %c388 = arith.constant 388 : index
    %388 = memref.load %arg1[%c388] : memref<449xf32, #tpu.memory_space<smem>>
    %c389 = arith.constant 389 : index
    %389 = memref.load %arg1[%c389] : memref<449xf32, #tpu.memory_space<smem>>
    %c390 = arith.constant 390 : index
    %390 = memref.load %arg1[%c390] : memref<449xf32, #tpu.memory_space<smem>>
    %c391 = arith.constant 391 : index
    %391 = memref.load %arg1[%c391] : memref<449xf32, #tpu.memory_space<smem>>
    %c392 = arith.constant 392 : index
    %392 = memref.load %arg1[%c392] : memref<449xf32, #tpu.memory_space<smem>>
    %c393 = arith.constant 393 : index
    %393 = memref.load %arg1[%c393] : memref<449xf32, #tpu.memory_space<smem>>
    %c394 = arith.constant 394 : index
    %394 = memref.load %arg1[%c394] : memref<449xf32, #tpu.memory_space<smem>>
    %c395 = arith.constant 395 : index
    %395 = memref.load %arg1[%c395] : memref<449xf32, #tpu.memory_space<smem>>
    %c396 = arith.constant 396 : index
    %396 = memref.load %arg1[%c396] : memref<449xf32, #tpu.memory_space<smem>>
    %c397 = arith.constant 397 : index
    %397 = memref.load %arg1[%c397] : memref<449xf32, #tpu.memory_space<smem>>
    %c398 = arith.constant 398 : index
    %398 = memref.load %arg1[%c398] : memref<449xf32, #tpu.memory_space<smem>>
    %c399 = arith.constant 399 : index
    %399 = memref.load %arg1[%c399] : memref<449xf32, #tpu.memory_space<smem>>
    %c400 = arith.constant 400 : index
    %400 = memref.load %arg1[%c400] : memref<449xf32, #tpu.memory_space<smem>>
    %c401 = arith.constant 401 : index
    %401 = memref.load %arg1[%c401] : memref<449xf32, #tpu.memory_space<smem>>
    %c402 = arith.constant 402 : index
    %402 = memref.load %arg1[%c402] : memref<449xf32, #tpu.memory_space<smem>>
    %c403 = arith.constant 403 : index
    %403 = memref.load %arg1[%c403] : memref<449xf32, #tpu.memory_space<smem>>
    %c404 = arith.constant 404 : index
    %404 = memref.load %arg1[%c404] : memref<449xf32, #tpu.memory_space<smem>>
    %c405 = arith.constant 405 : index
    %405 = memref.load %arg1[%c405] : memref<449xf32, #tpu.memory_space<smem>>
    %c406 = arith.constant 406 : index
    %406 = memref.load %arg1[%c406] : memref<449xf32, #tpu.memory_space<smem>>
    %c407 = arith.constant 407 : index
    %407 = memref.load %arg1[%c407] : memref<449xf32, #tpu.memory_space<smem>>
    %c408 = arith.constant 408 : index
    %408 = memref.load %arg1[%c408] : memref<449xf32, #tpu.memory_space<smem>>
    %c409 = arith.constant 409 : index
    %409 = memref.load %arg1[%c409] : memref<449xf32, #tpu.memory_space<smem>>
    %c410 = arith.constant 410 : index
    %410 = memref.load %arg1[%c410] : memref<449xf32, #tpu.memory_space<smem>>
    %c411 = arith.constant 411 : index
    %411 = memref.load %arg1[%c411] : memref<449xf32, #tpu.memory_space<smem>>
    %c412 = arith.constant 412 : index
    %412 = memref.load %arg1[%c412] : memref<449xf32, #tpu.memory_space<smem>>
    %c413 = arith.constant 413 : index
    %413 = memref.load %arg1[%c413] : memref<449xf32, #tpu.memory_space<smem>>
    %c414 = arith.constant 414 : index
    %414 = memref.load %arg1[%c414] : memref<449xf32, #tpu.memory_space<smem>>
    %c415 = arith.constant 415 : index
    %415 = memref.load %arg1[%c415] : memref<449xf32, #tpu.memory_space<smem>>
    %c416 = arith.constant 416 : index
    %416 = memref.load %arg1[%c416] : memref<449xf32, #tpu.memory_space<smem>>
    %c417 = arith.constant 417 : index
    %417 = memref.load %arg1[%c417] : memref<449xf32, #tpu.memory_space<smem>>
    %c418 = arith.constant 418 : index
    %418 = memref.load %arg1[%c418] : memref<449xf32, #tpu.memory_space<smem>>
    %c419 = arith.constant 419 : index
    %419 = memref.load %arg1[%c419] : memref<449xf32, #tpu.memory_space<smem>>
    %c420 = arith.constant 420 : index
    %420 = memref.load %arg1[%c420] : memref<449xf32, #tpu.memory_space<smem>>
    %c421 = arith.constant 421 : index
    %421 = memref.load %arg1[%c421] : memref<449xf32, #tpu.memory_space<smem>>
    %c422 = arith.constant 422 : index
    %422 = memref.load %arg1[%c422] : memref<449xf32, #tpu.memory_space<smem>>
    %c423 = arith.constant 423 : index
    %423 = memref.load %arg1[%c423] : memref<449xf32, #tpu.memory_space<smem>>
    %c424 = arith.constant 424 : index
    %424 = memref.load %arg1[%c424] : memref<449xf32, #tpu.memory_space<smem>>
    %c425 = arith.constant 425 : index
    %425 = memref.load %arg1[%c425] : memref<449xf32, #tpu.memory_space<smem>>
    %c426 = arith.constant 426 : index
    %426 = memref.load %arg1[%c426] : memref<449xf32, #tpu.memory_space<smem>>
    %c427 = arith.constant 427 : index
    %427 = memref.load %arg1[%c427] : memref<449xf32, #tpu.memory_space<smem>>
    %c428 = arith.constant 428 : index
    %428 = memref.load %arg1[%c428] : memref<449xf32, #tpu.memory_space<smem>>
    %c429 = arith.constant 429 : index
    %429 = memref.load %arg1[%c429] : memref<449xf32, #tpu.memory_space<smem>>
    %c430 = arith.constant 430 : index
    %430 = memref.load %arg1[%c430] : memref<449xf32, #tpu.memory_space<smem>>
    %c431 = arith.constant 431 : index
    %431 = memref.load %arg1[%c431] : memref<449xf32, #tpu.memory_space<smem>>
    %c432 = arith.constant 432 : index
    %432 = memref.load %arg1[%c432] : memref<449xf32, #tpu.memory_space<smem>>
    %c433 = arith.constant 433 : index
    %433 = memref.load %arg1[%c433] : memref<449xf32, #tpu.memory_space<smem>>
    %c434 = arith.constant 434 : index
    %434 = memref.load %arg1[%c434] : memref<449xf32, #tpu.memory_space<smem>>
    %c435 = arith.constant 435 : index
    %435 = memref.load %arg1[%c435] : memref<449xf32, #tpu.memory_space<smem>>
    %c436 = arith.constant 436 : index
    %436 = memref.load %arg1[%c436] : memref<449xf32, #tpu.memory_space<smem>>
    %c437 = arith.constant 437 : index
    %437 = memref.load %arg1[%c437] : memref<449xf32, #tpu.memory_space<smem>>
    %c438 = arith.constant 438 : index
    %438 = memref.load %arg1[%c438] : memref<449xf32, #tpu.memory_space<smem>>
    %c439 = arith.constant 439 : index
    %439 = memref.load %arg1[%c439] : memref<449xf32, #tpu.memory_space<smem>>
    %c440 = arith.constant 440 : index
    %440 = memref.load %arg1[%c440] : memref<449xf32, #tpu.memory_space<smem>>
    %c441 = arith.constant 441 : index
    %441 = memref.load %arg1[%c441] : memref<449xf32, #tpu.memory_space<smem>>
    %c442 = arith.constant 442 : index
    %442 = memref.load %arg1[%c442] : memref<449xf32, #tpu.memory_space<smem>>
    %c443 = arith.constant 443 : index
    %443 = memref.load %arg1[%c443] : memref<449xf32, #tpu.memory_space<smem>>
    %c444 = arith.constant 444 : index
    %444 = memref.load %arg1[%c444] : memref<449xf32, #tpu.memory_space<smem>>
    %c445 = arith.constant 445 : index
    %445 = memref.load %arg1[%c445] : memref<449xf32, #tpu.memory_space<smem>>
    %c446 = arith.constant 446 : index
    %446 = memref.load %arg1[%c446] : memref<449xf32, #tpu.memory_space<smem>>
    %c447 = arith.constant 447 : index
    %447 = memref.load %arg1[%c447] : memref<449xf32, #tpu.memory_space<smem>>
    %c448 = arith.constant 448 : index
    %448 = memref.load %arg1[%c448] : memref<449xf32, #tpu.memory_space<smem>>
    %c0_0 = arith.constant 0 : index
    %c0_1 = arith.constant 0 : index
    %c0_2 = arith.constant 0 : index
    %449 = vector.load %arg2[%c0_0, %c0_1, %c0_2] : memref<3x5x128xf32, #tpu.memory_space<vmem>>, vector<1x5x128xf32>
    %450 = vector.shape_cast %449 : vector<1x5x128xf32> to vector<5x128xf32>
    %c1_3 = arith.constant 1 : index
    %c0_4 = arith.constant 0 : index
    %c0_5 = arith.constant 0 : index
    %451 = vector.load %arg2[%c1_3, %c0_4, %c0_5] : memref<3x5x128xf32, #tpu.memory_space<vmem>>, vector<1x5x128xf32>
    %452 = vector.shape_cast %451 : vector<1x5x128xf32> to vector<5x128xf32>
    %c2_6 = arith.constant 2 : index
    %c0_7 = arith.constant 0 : index
    %c0_8 = arith.constant 0 : index
    %453 = vector.load %arg2[%c2_6, %c0_7, %c0_8] : memref<3x5x128xf32, #tpu.memory_space<vmem>>, vector<1x5x128xf32>
    %454 = vector.shape_cast %453 : vector<1x5x128xf32> to vector<5x128xf32>
    %455 = vector.broadcast %0 : f32 to vector<5x128xf32>
    %456 = arith.mulf %450, %455 : vector<5x128xf32>
    %457 = vector.broadcast %5 : f32 to vector<5x128xf32>
    %458 = arith.addf %456, %457 : vector<5x128xf32>
    %cst = arith.constant 0.000000e+00 : f32
    %459 = vector.broadcast %cst : f32 to vector<5x128xf32>
    %460 = arith.maximumf %458, %459 : vector<5x128xf32>
    %461 = vector.broadcast %1 : f32 to vector<5x128xf32>
    %462 = arith.mulf %450, %461 : vector<5x128xf32>
    %463 = vector.broadcast %6 : f32 to vector<5x128xf32>
    %464 = arith.addf %462, %463 : vector<5x128xf32>
    %cst_9 = arith.constant 0.000000e+00 : f32
    %465 = vector.broadcast %cst_9 : f32 to vector<5x128xf32>
    %466 = arith.maximumf %464, %465 : vector<5x128xf32>
    %467 = vector.broadcast %2 : f32 to vector<5x128xf32>
    %468 = arith.mulf %450, %467 : vector<5x128xf32>
    %469 = vector.broadcast %7 : f32 to vector<5x128xf32>
    %470 = arith.addf %468, %469 : vector<5x128xf32>
    %cst_10 = arith.constant 0.000000e+00 : f32
    %471 = vector.broadcast %cst_10 : f32 to vector<5x128xf32>
    %472 = arith.maximumf %470, %471 : vector<5x128xf32>
    %473 = vector.broadcast %3 : f32 to vector<5x128xf32>
    %474 = arith.mulf %450, %473 : vector<5x128xf32>
    %475 = vector.broadcast %8 : f32 to vector<5x128xf32>
    %476 = arith.addf %474, %475 : vector<5x128xf32>
    %cst_11 = arith.constant 0.000000e+00 : f32
    %477 = vector.broadcast %cst_11 : f32 to vector<5x128xf32>
    %478 = arith.maximumf %476, %477 : vector<5x128xf32>
    %479 = vector.broadcast %4 : f32 to vector<5x128xf32>
    %480 = arith.mulf %450, %479 : vector<5x128xf32>
    %481 = vector.broadcast %9 : f32 to vector<5x128xf32>
    %482 = arith.addf %480, %481 : vector<5x128xf32>
    %cst_12 = arith.constant 0.000000e+00 : f32
    %483 = vector.broadcast %cst_12 : f32 to vector<5x128xf32>
    %484 = arith.maximumf %482, %483 : vector<5x128xf32>
    %485 = vector.broadcast %10 : f32 to vector<5x128xf32>
    %486 = arith.mulf %460, %485 : vector<5x128xf32>
    %487 = vector.broadcast %20 : f32 to vector<5x128xf32>
    %488 = arith.mulf %466, %487 : vector<5x128xf32>
    %489 = arith.addf %486, %488 : vector<5x128xf32>
    %490 = vector.broadcast %30 : f32 to vector<5x128xf32>
    %491 = arith.mulf %472, %490 : vector<5x128xf32>
    %492 = arith.addf %489, %491 : vector<5x128xf32>
    %493 = vector.broadcast %40 : f32 to vector<5x128xf32>
    %494 = arith.mulf %478, %493 : vector<5x128xf32>
    %495 = arith.addf %492, %494 : vector<5x128xf32>
    %496 = vector.broadcast %50 : f32 to vector<5x128xf32>
    %497 = arith.mulf %484, %496 : vector<5x128xf32>
    %498 = arith.addf %495, %497 : vector<5x128xf32>
    %499 = vector.broadcast %60 : f32 to vector<5x128xf32>
    %500 = arith.addf %498, %499 : vector<5x128xf32>
    %cst_13 = arith.constant 0.000000e+00 : f32
    %501 = vector.broadcast %cst_13 : f32 to vector<5x128xf32>
    %502 = arith.maximumf %500, %501 : vector<5x128xf32>
    %503 = vector.broadcast %11 : f32 to vector<5x128xf32>
    %504 = arith.mulf %460, %503 : vector<5x128xf32>
    %505 = vector.broadcast %21 : f32 to vector<5x128xf32>
    %506 = arith.mulf %466, %505 : vector<5x128xf32>
    %507 = arith.addf %504, %506 : vector<5x128xf32>
    %508 = vector.broadcast %31 : f32 to vector<5x128xf32>
    %509 = arith.mulf %472, %508 : vector<5x128xf32>
    %510 = arith.addf %507, %509 : vector<5x128xf32>
    %511 = vector.broadcast %41 : f32 to vector<5x128xf32>
    %512 = arith.mulf %478, %511 : vector<5x128xf32>
    %513 = arith.addf %510, %512 : vector<5x128xf32>
    %514 = vector.broadcast %51 : f32 to vector<5x128xf32>
    %515 = arith.mulf %484, %514 : vector<5x128xf32>
    %516 = arith.addf %513, %515 : vector<5x128xf32>
    %517 = vector.broadcast %61 : f32 to vector<5x128xf32>
    %518 = arith.addf %516, %517 : vector<5x128xf32>
    %cst_14 = arith.constant 0.000000e+00 : f32
    %519 = vector.broadcast %cst_14 : f32 to vector<5x128xf32>
    %520 = arith.maximumf %518, %519 : vector<5x128xf32>
    %521 = vector.broadcast %12 : f32 to vector<5x128xf32>
    %522 = arith.mulf %460, %521 : vector<5x128xf32>
    %523 = vector.broadcast %22 : f32 to vector<5x128xf32>
    %524 = arith.mulf %466, %523 : vector<5x128xf32>
    %525 = arith.addf %522, %524 : vector<5x128xf32>
    %526 = vector.broadcast %32 : f32 to vector<5x128xf32>
    %527 = arith.mulf %472, %526 : vector<5x128xf32>
    %528 = arith.addf %525, %527 : vector<5x128xf32>
    %529 = vector.broadcast %42 : f32 to vector<5x128xf32>
    %530 = arith.mulf %478, %529 : vector<5x128xf32>
    %531 = arith.addf %528, %530 : vector<5x128xf32>
    %532 = vector.broadcast %52 : f32 to vector<5x128xf32>
    %533 = arith.mulf %484, %532 : vector<5x128xf32>
    %534 = arith.addf %531, %533 : vector<5x128xf32>
    %535 = vector.broadcast %62 : f32 to vector<5x128xf32>
    %536 = arith.addf %534, %535 : vector<5x128xf32>
    %cst_15 = arith.constant 0.000000e+00 : f32
    %537 = vector.broadcast %cst_15 : f32 to vector<5x128xf32>
    %538 = arith.maximumf %536, %537 : vector<5x128xf32>
    %539 = vector.broadcast %13 : f32 to vector<5x128xf32>
    %540 = arith.mulf %460, %539 : vector<5x128xf32>
    %541 = vector.broadcast %23 : f32 to vector<5x128xf32>
    %542 = arith.mulf %466, %541 : vector<5x128xf32>
    %543 = arith.addf %540, %542 : vector<5x128xf32>
    %544 = vector.broadcast %33 : f32 to vector<5x128xf32>
    %545 = arith.mulf %472, %544 : vector<5x128xf32>
    %546 = arith.addf %543, %545 : vector<5x128xf32>
    %547 = vector.broadcast %43 : f32 to vector<5x128xf32>
    %548 = arith.mulf %478, %547 : vector<5x128xf32>
    %549 = arith.addf %546, %548 : vector<5x128xf32>
    %550 = vector.broadcast %53 : f32 to vector<5x128xf32>
    %551 = arith.mulf %484, %550 : vector<5x128xf32>
    %552 = arith.addf %549, %551 : vector<5x128xf32>
    %553 = vector.broadcast %63 : f32 to vector<5x128xf32>
    %554 = arith.addf %552, %553 : vector<5x128xf32>
    %cst_16 = arith.constant 0.000000e+00 : f32
    %555 = vector.broadcast %cst_16 : f32 to vector<5x128xf32>
    %556 = arith.maximumf %554, %555 : vector<5x128xf32>
    %557 = vector.broadcast %14 : f32 to vector<5x128xf32>
    %558 = arith.mulf %460, %557 : vector<5x128xf32>
    %559 = vector.broadcast %24 : f32 to vector<5x128xf32>
    %560 = arith.mulf %466, %559 : vector<5x128xf32>
    %561 = arith.addf %558, %560 : vector<5x128xf32>
    %562 = vector.broadcast %34 : f32 to vector<5x128xf32>
    %563 = arith.mulf %472, %562 : vector<5x128xf32>
    %564 = arith.addf %561, %563 : vector<5x128xf32>
    %565 = vector.broadcast %44 : f32 to vector<5x128xf32>
    %566 = arith.mulf %478, %565 : vector<5x128xf32>
    %567 = arith.addf %564, %566 : vector<5x128xf32>
    %568 = vector.broadcast %54 : f32 to vector<5x128xf32>
    %569 = arith.mulf %484, %568 : vector<5x128xf32>
    %570 = arith.addf %567, %569 : vector<5x128xf32>
    %571 = vector.broadcast %64 : f32 to vector<5x128xf32>
    %572 = arith.addf %570, %571 : vector<5x128xf32>
    %cst_17 = arith.constant 0.000000e+00 : f32
    %573 = vector.broadcast %cst_17 : f32 to vector<5x128xf32>
    %574 = arith.maximumf %572, %573 : vector<5x128xf32>
    %575 = vector.broadcast %15 : f32 to vector<5x128xf32>
    %576 = arith.mulf %460, %575 : vector<5x128xf32>
    %577 = vector.broadcast %25 : f32 to vector<5x128xf32>
    %578 = arith.mulf %466, %577 : vector<5x128xf32>
    %579 = arith.addf %576, %578 : vector<5x128xf32>
    %580 = vector.broadcast %35 : f32 to vector<5x128xf32>
    %581 = arith.mulf %472, %580 : vector<5x128xf32>
    %582 = arith.addf %579, %581 : vector<5x128xf32>
    %583 = vector.broadcast %45 : f32 to vector<5x128xf32>
    %584 = arith.mulf %478, %583 : vector<5x128xf32>
    %585 = arith.addf %582, %584 : vector<5x128xf32>
    %586 = vector.broadcast %55 : f32 to vector<5x128xf32>
    %587 = arith.mulf %484, %586 : vector<5x128xf32>
    %588 = arith.addf %585, %587 : vector<5x128xf32>
    %589 = vector.broadcast %65 : f32 to vector<5x128xf32>
    %590 = arith.addf %588, %589 : vector<5x128xf32>
    %cst_18 = arith.constant 0.000000e+00 : f32
    %591 = vector.broadcast %cst_18 : f32 to vector<5x128xf32>
    %592 = arith.maximumf %590, %591 : vector<5x128xf32>
    %593 = vector.broadcast %16 : f32 to vector<5x128xf32>
    %594 = arith.mulf %460, %593 : vector<5x128xf32>
    %595 = vector.broadcast %26 : f32 to vector<5x128xf32>
    %596 = arith.mulf %466, %595 : vector<5x128xf32>
    %597 = arith.addf %594, %596 : vector<5x128xf32>
    %598 = vector.broadcast %36 : f32 to vector<5x128xf32>
    %599 = arith.mulf %472, %598 : vector<5x128xf32>
    %600 = arith.addf %597, %599 : vector<5x128xf32>
    %601 = vector.broadcast %46 : f32 to vector<5x128xf32>
    %602 = arith.mulf %478, %601 : vector<5x128xf32>
    %603 = arith.addf %600, %602 : vector<5x128xf32>
    %604 = vector.broadcast %56 : f32 to vector<5x128xf32>
    %605 = arith.mulf %484, %604 : vector<5x128xf32>
    %606 = arith.addf %603, %605 : vector<5x128xf32>
    %607 = vector.broadcast %66 : f32 to vector<5x128xf32>
    %608 = arith.addf %606, %607 : vector<5x128xf32>
    %cst_19 = arith.constant 0.000000e+00 : f32
    %609 = vector.broadcast %cst_19 : f32 to vector<5x128xf32>
    %610 = arith.maximumf %608, %609 : vector<5x128xf32>
    %611 = vector.broadcast %17 : f32 to vector<5x128xf32>
    %612 = arith.mulf %460, %611 : vector<5x128xf32>
    %613 = vector.broadcast %27 : f32 to vector<5x128xf32>
    %614 = arith.mulf %466, %613 : vector<5x128xf32>
    %615 = arith.addf %612, %614 : vector<5x128xf32>
    %616 = vector.broadcast %37 : f32 to vector<5x128xf32>
    %617 = arith.mulf %472, %616 : vector<5x128xf32>
    %618 = arith.addf %615, %617 : vector<5x128xf32>
    %619 = vector.broadcast %47 : f32 to vector<5x128xf32>
    %620 = arith.mulf %478, %619 : vector<5x128xf32>
    %621 = arith.addf %618, %620 : vector<5x128xf32>
    %622 = vector.broadcast %57 : f32 to vector<5x128xf32>
    %623 = arith.mulf %484, %622 : vector<5x128xf32>
    %624 = arith.addf %621, %623 : vector<5x128xf32>
    %625 = vector.broadcast %67 : f32 to vector<5x128xf32>
    %626 = arith.addf %624, %625 : vector<5x128xf32>
    %cst_20 = arith.constant 0.000000e+00 : f32
    %627 = vector.broadcast %cst_20 : f32 to vector<5x128xf32>
    %628 = arith.maximumf %626, %627 : vector<5x128xf32>
    %629 = vector.broadcast %18 : f32 to vector<5x128xf32>
    %630 = arith.mulf %460, %629 : vector<5x128xf32>
    %631 = vector.broadcast %28 : f32 to vector<5x128xf32>
    %632 = arith.mulf %466, %631 : vector<5x128xf32>
    %633 = arith.addf %630, %632 : vector<5x128xf32>
    %634 = vector.broadcast %38 : f32 to vector<5x128xf32>
    %635 = arith.mulf %472, %634 : vector<5x128xf32>
    %636 = arith.addf %633, %635 : vector<5x128xf32>
    %637 = vector.broadcast %48 : f32 to vector<5x128xf32>
    %638 = arith.mulf %478, %637 : vector<5x128xf32>
    %639 = arith.addf %636, %638 : vector<5x128xf32>
    %640 = vector.broadcast %58 : f32 to vector<5x128xf32>
    %641 = arith.mulf %484, %640 : vector<5x128xf32>
    %642 = arith.addf %639, %641 : vector<5x128xf32>
    %643 = vector.broadcast %68 : f32 to vector<5x128xf32>
    %644 = arith.addf %642, %643 : vector<5x128xf32>
    %cst_21 = arith.constant 0.000000e+00 : f32
    %645 = vector.broadcast %cst_21 : f32 to vector<5x128xf32>
    %646 = arith.maximumf %644, %645 : vector<5x128xf32>
    %647 = vector.broadcast %19 : f32 to vector<5x128xf32>
    %648 = arith.mulf %460, %647 : vector<5x128xf32>
    %649 = vector.broadcast %29 : f32 to vector<5x128xf32>
    %650 = arith.mulf %466, %649 : vector<5x128xf32>
    %651 = arith.addf %648, %650 : vector<5x128xf32>
    %652 = vector.broadcast %39 : f32 to vector<5x128xf32>
    %653 = arith.mulf %472, %652 : vector<5x128xf32>
    %654 = arith.addf %651, %653 : vector<5x128xf32>
    %655 = vector.broadcast %49 : f32 to vector<5x128xf32>
    %656 = arith.mulf %478, %655 : vector<5x128xf32>
    %657 = arith.addf %654, %656 : vector<5x128xf32>
    %658 = vector.broadcast %59 : f32 to vector<5x128xf32>
    %659 = arith.mulf %484, %658 : vector<5x128xf32>
    %660 = arith.addf %657, %659 : vector<5x128xf32>
    %661 = vector.broadcast %69 : f32 to vector<5x128xf32>
    %662 = arith.addf %660, %661 : vector<5x128xf32>
    %cst_22 = arith.constant 0.000000e+00 : f32
    %663 = vector.broadcast %cst_22 : f32 to vector<5x128xf32>
    %664 = arith.maximumf %662, %663 : vector<5x128xf32>
    %665 = vector.broadcast %70 : f32 to vector<5x128xf32>
    %666 = arith.mulf %502, %665 : vector<5x128xf32>
    %667 = vector.broadcast %90 : f32 to vector<5x128xf32>
    %668 = arith.mulf %520, %667 : vector<5x128xf32>
    %669 = arith.addf %666, %668 : vector<5x128xf32>
    %670 = vector.broadcast %110 : f32 to vector<5x128xf32>
    %671 = arith.mulf %538, %670 : vector<5x128xf32>
    %672 = arith.addf %669, %671 : vector<5x128xf32>
    %673 = vector.broadcast %130 : f32 to vector<5x128xf32>
    %674 = arith.mulf %556, %673 : vector<5x128xf32>
    %675 = arith.addf %672, %674 : vector<5x128xf32>
    %676 = vector.broadcast %150 : f32 to vector<5x128xf32>
    %677 = arith.mulf %574, %676 : vector<5x128xf32>
    %678 = arith.addf %675, %677 : vector<5x128xf32>
    %679 = vector.broadcast %170 : f32 to vector<5x128xf32>
    %680 = arith.mulf %592, %679 : vector<5x128xf32>
    %681 = arith.addf %678, %680 : vector<5x128xf32>
    %682 = vector.broadcast %190 : f32 to vector<5x128xf32>
    %683 = arith.mulf %610, %682 : vector<5x128xf32>
    %684 = arith.addf %681, %683 : vector<5x128xf32>
    %685 = vector.broadcast %210 : f32 to vector<5x128xf32>
    %686 = arith.mulf %628, %685 : vector<5x128xf32>
    %687 = arith.addf %684, %686 : vector<5x128xf32>
    %688 = vector.broadcast %230 : f32 to vector<5x128xf32>
    %689 = arith.mulf %646, %688 : vector<5x128xf32>
    %690 = arith.addf %687, %689 : vector<5x128xf32>
    %691 = vector.broadcast %250 : f32 to vector<5x128xf32>
    %692 = arith.mulf %664, %691 : vector<5x128xf32>
    %693 = arith.addf %690, %692 : vector<5x128xf32>
    %694 = vector.broadcast %270 : f32 to vector<5x128xf32>
    %695 = arith.addf %693, %694 : vector<5x128xf32>
    %cst_23 = arith.constant 0.000000e+00 : f32
    %696 = vector.broadcast %cst_23 : f32 to vector<5x128xf32>
    %697 = arith.maximumf %695, %696 : vector<5x128xf32>
    %698 = vector.broadcast %71 : f32 to vector<5x128xf32>
    %699 = arith.mulf %502, %698 : vector<5x128xf32>
    %700 = vector.broadcast %91 : f32 to vector<5x128xf32>
    %701 = arith.mulf %520, %700 : vector<5x128xf32>
    %702 = arith.addf %699, %701 : vector<5x128xf32>
    %703 = vector.broadcast %111 : f32 to vector<5x128xf32>
    %704 = arith.mulf %538, %703 : vector<5x128xf32>
    %705 = arith.addf %702, %704 : vector<5x128xf32>
    %706 = vector.broadcast %131 : f32 to vector<5x128xf32>
    %707 = arith.mulf %556, %706 : vector<5x128xf32>
    %708 = arith.addf %705, %707 : vector<5x128xf32>
    %709 = vector.broadcast %151 : f32 to vector<5x128xf32>
    %710 = arith.mulf %574, %709 : vector<5x128xf32>
    %711 = arith.addf %708, %710 : vector<5x128xf32>
    %712 = vector.broadcast %171 : f32 to vector<5x128xf32>
    %713 = arith.mulf %592, %712 : vector<5x128xf32>
    %714 = arith.addf %711, %713 : vector<5x128xf32>
    %715 = vector.broadcast %191 : f32 to vector<5x128xf32>
    %716 = arith.mulf %610, %715 : vector<5x128xf32>
    %717 = arith.addf %714, %716 : vector<5x128xf32>
    %718 = vector.broadcast %211 : f32 to vector<5x128xf32>
    %719 = arith.mulf %628, %718 : vector<5x128xf32>
    %720 = arith.addf %717, %719 : vector<5x128xf32>
    %721 = vector.broadcast %231 : f32 to vector<5x128xf32>
    %722 = arith.mulf %646, %721 : vector<5x128xf32>
    %723 = arith.addf %720, %722 : vector<5x128xf32>
    %724 = vector.broadcast %251 : f32 to vector<5x128xf32>
    %725 = arith.mulf %664, %724 : vector<5x128xf32>
    %726 = arith.addf %723, %725 : vector<5x128xf32>
    %727 = vector.broadcast %271 : f32 to vector<5x128xf32>
    %728 = arith.addf %726, %727 : vector<5x128xf32>
    %cst_24 = arith.constant 0.000000e+00 : f32
    %729 = vector.broadcast %cst_24 : f32 to vector<5x128xf32>
    %730 = arith.maximumf %728, %729 : vector<5x128xf32>
    %731 = vector.broadcast %72 : f32 to vector<5x128xf32>
    %732 = arith.mulf %502, %731 : vector<5x128xf32>
    %733 = vector.broadcast %92 : f32 to vector<5x128xf32>
    %734 = arith.mulf %520, %733 : vector<5x128xf32>
    %735 = arith.addf %732, %734 : vector<5x128xf32>
    %736 = vector.broadcast %112 : f32 to vector<5x128xf32>
    %737 = arith.mulf %538, %736 : vector<5x128xf32>
    %738 = arith.addf %735, %737 : vector<5x128xf32>
    %739 = vector.broadcast %132 : f32 to vector<5x128xf32>
    %740 = arith.mulf %556, %739 : vector<5x128xf32>
    %741 = arith.addf %738, %740 : vector<5x128xf32>
    %742 = vector.broadcast %152 : f32 to vector<5x128xf32>
    %743 = arith.mulf %574, %742 : vector<5x128xf32>
    %744 = arith.addf %741, %743 : vector<5x128xf32>
    %745 = vector.broadcast %172 : f32 to vector<5x128xf32>
    %746 = arith.mulf %592, %745 : vector<5x128xf32>
    %747 = arith.addf %744, %746 : vector<5x128xf32>
    %748 = vector.broadcast %192 : f32 to vector<5x128xf32>
    %749 = arith.mulf %610, %748 : vector<5x128xf32>
    %750 = arith.addf %747, %749 : vector<5x128xf32>
    %751 = vector.broadcast %212 : f32 to vector<5x128xf32>
    %752 = arith.mulf %628, %751 : vector<5x128xf32>
    %753 = arith.addf %750, %752 : vector<5x128xf32>
    %754 = vector.broadcast %232 : f32 to vector<5x128xf32>
    %755 = arith.mulf %646, %754 : vector<5x128xf32>
    %756 = arith.addf %753, %755 : vector<5x128xf32>
    %757 = vector.broadcast %252 : f32 to vector<5x128xf32>
    %758 = arith.mulf %664, %757 : vector<5x128xf32>
    %759 = arith.addf %756, %758 : vector<5x128xf32>
    %760 = vector.broadcast %272 : f32 to vector<5x128xf32>
    %761 = arith.addf %759, %760 : vector<5x128xf32>
    %cst_25 = arith.constant 0.000000e+00 : f32
    %762 = vector.broadcast %cst_25 : f32 to vector<5x128xf32>
    %763 = arith.maximumf %761, %762 : vector<5x128xf32>
    %764 = vector.broadcast %73 : f32 to vector<5x128xf32>
    %765 = arith.mulf %502, %764 : vector<5x128xf32>
    %766 = vector.broadcast %93 : f32 to vector<5x128xf32>
    %767 = arith.mulf %520, %766 : vector<5x128xf32>
    %768 = arith.addf %765, %767 : vector<5x128xf32>
    %769 = vector.broadcast %113 : f32 to vector<5x128xf32>
    %770 = arith.mulf %538, %769 : vector<5x128xf32>
    %771 = arith.addf %768, %770 : vector<5x128xf32>
    %772 = vector.broadcast %133 : f32 to vector<5x128xf32>
    %773 = arith.mulf %556, %772 : vector<5x128xf32>
    %774 = arith.addf %771, %773 : vector<5x128xf32>
    %775 = vector.broadcast %153 : f32 to vector<5x128xf32>
    %776 = arith.mulf %574, %775 : vector<5x128xf32>
    %777 = arith.addf %774, %776 : vector<5x128xf32>
    %778 = vector.broadcast %173 : f32 to vector<5x128xf32>
    %779 = arith.mulf %592, %778 : vector<5x128xf32>
    %780 = arith.addf %777, %779 : vector<5x128xf32>
    %781 = vector.broadcast %193 : f32 to vector<5x128xf32>
    %782 = arith.mulf %610, %781 : vector<5x128xf32>
    %783 = arith.addf %780, %782 : vector<5x128xf32>
    %784 = vector.broadcast %213 : f32 to vector<5x128xf32>
    %785 = arith.mulf %628, %784 : vector<5x128xf32>
    %786 = arith.addf %783, %785 : vector<5x128xf32>
    %787 = vector.broadcast %233 : f32 to vector<5x128xf32>
    %788 = arith.mulf %646, %787 : vector<5x128xf32>
    %789 = arith.addf %786, %788 : vector<5x128xf32>
    %790 = vector.broadcast %253 : f32 to vector<5x128xf32>
    %791 = arith.mulf %664, %790 : vector<5x128xf32>
    %792 = arith.addf %789, %791 : vector<5x128xf32>
    %793 = vector.broadcast %273 : f32 to vector<5x128xf32>
    %794 = arith.addf %792, %793 : vector<5x128xf32>
    %cst_26 = arith.constant 0.000000e+00 : f32
    %795 = vector.broadcast %cst_26 : f32 to vector<5x128xf32>
    %796 = arith.maximumf %794, %795 : vector<5x128xf32>
    %797 = vector.broadcast %74 : f32 to vector<5x128xf32>
    %798 = arith.mulf %502, %797 : vector<5x128xf32>
    %799 = vector.broadcast %94 : f32 to vector<5x128xf32>
    %800 = arith.mulf %520, %799 : vector<5x128xf32>
    %801 = arith.addf %798, %800 : vector<5x128xf32>
    %802 = vector.broadcast %114 : f32 to vector<5x128xf32>
    %803 = arith.mulf %538, %802 : vector<5x128xf32>
    %804 = arith.addf %801, %803 : vector<5x128xf32>
    %805 = vector.broadcast %134 : f32 to vector<5x128xf32>
    %806 = arith.mulf %556, %805 : vector<5x128xf32>
    %807 = arith.addf %804, %806 : vector<5x128xf32>
    %808 = vector.broadcast %154 : f32 to vector<5x128xf32>
    %809 = arith.mulf %574, %808 : vector<5x128xf32>
    %810 = arith.addf %807, %809 : vector<5x128xf32>
    %811 = vector.broadcast %174 : f32 to vector<5x128xf32>
    %812 = arith.mulf %592, %811 : vector<5x128xf32>
    %813 = arith.addf %810, %812 : vector<5x128xf32>
    %814 = vector.broadcast %194 : f32 to vector<5x128xf32>
    %815 = arith.mulf %610, %814 : vector<5x128xf32>
    %816 = arith.addf %813, %815 : vector<5x128xf32>
    %817 = vector.broadcast %214 : f32 to vector<5x128xf32>
    %818 = arith.mulf %628, %817 : vector<5x128xf32>
    %819 = arith.addf %816, %818 : vector<5x128xf32>
    %820 = vector.broadcast %234 : f32 to vector<5x128xf32>
    %821 = arith.mulf %646, %820 : vector<5x128xf32>
    %822 = arith.addf %819, %821 : vector<5x128xf32>
    %823 = vector.broadcast %254 : f32 to vector<5x128xf32>
    %824 = arith.mulf %664, %823 : vector<5x128xf32>
    %825 = arith.addf %822, %824 : vector<5x128xf32>
    %826 = vector.broadcast %274 : f32 to vector<5x128xf32>
    %827 = arith.addf %825, %826 : vector<5x128xf32>
    %cst_27 = arith.constant 0.000000e+00 : f32
    %828 = vector.broadcast %cst_27 : f32 to vector<5x128xf32>
    %829 = arith.maximumf %827, %828 : vector<5x128xf32>
    %830 = vector.broadcast %75 : f32 to vector<5x128xf32>
    %831 = arith.mulf %502, %830 : vector<5x128xf32>
    %832 = vector.broadcast %95 : f32 to vector<5x128xf32>
    %833 = arith.mulf %520, %832 : vector<5x128xf32>
    %834 = arith.addf %831, %833 : vector<5x128xf32>
    %835 = vector.broadcast %115 : f32 to vector<5x128xf32>
    %836 = arith.mulf %538, %835 : vector<5x128xf32>
    %837 = arith.addf %834, %836 : vector<5x128xf32>
    %838 = vector.broadcast %135 : f32 to vector<5x128xf32>
    %839 = arith.mulf %556, %838 : vector<5x128xf32>
    %840 = arith.addf %837, %839 : vector<5x128xf32>
    %841 = vector.broadcast %155 : f32 to vector<5x128xf32>
    %842 = arith.mulf %574, %841 : vector<5x128xf32>
    %843 = arith.addf %840, %842 : vector<5x128xf32>
    %844 = vector.broadcast %175 : f32 to vector<5x128xf32>
    %845 = arith.mulf %592, %844 : vector<5x128xf32>
    %846 = arith.addf %843, %845 : vector<5x128xf32>
    %847 = vector.broadcast %195 : f32 to vector<5x128xf32>
    %848 = arith.mulf %610, %847 : vector<5x128xf32>
    %849 = arith.addf %846, %848 : vector<5x128xf32>
    %850 = vector.broadcast %215 : f32 to vector<5x128xf32>
    %851 = arith.mulf %628, %850 : vector<5x128xf32>
    %852 = arith.addf %849, %851 : vector<5x128xf32>
    %853 = vector.broadcast %235 : f32 to vector<5x128xf32>
    %854 = arith.mulf %646, %853 : vector<5x128xf32>
    %855 = arith.addf %852, %854 : vector<5x128xf32>
    %856 = vector.broadcast %255 : f32 to vector<5x128xf32>
    %857 = arith.mulf %664, %856 : vector<5x128xf32>
    %858 = arith.addf %855, %857 : vector<5x128xf32>
    %859 = vector.broadcast %275 : f32 to vector<5x128xf32>
    %860 = arith.addf %858, %859 : vector<5x128xf32>
    %cst_28 = arith.constant 0.000000e+00 : f32
    %861 = vector.broadcast %cst_28 : f32 to vector<5x128xf32>
    %862 = arith.maximumf %860, %861 : vector<5x128xf32>
    %863 = vector.broadcast %76 : f32 to vector<5x128xf32>
    %864 = arith.mulf %502, %863 : vector<5x128xf32>
    %865 = vector.broadcast %96 : f32 to vector<5x128xf32>
    %866 = arith.mulf %520, %865 : vector<5x128xf32>
    %867 = arith.addf %864, %866 : vector<5x128xf32>
    %868 = vector.broadcast %116 : f32 to vector<5x128xf32>
    %869 = arith.mulf %538, %868 : vector<5x128xf32>
    %870 = arith.addf %867, %869 : vector<5x128xf32>
    %871 = vector.broadcast %136 : f32 to vector<5x128xf32>
    %872 = arith.mulf %556, %871 : vector<5x128xf32>
    %873 = arith.addf %870, %872 : vector<5x128xf32>
    %874 = vector.broadcast %156 : f32 to vector<5x128xf32>
    %875 = arith.mulf %574, %874 : vector<5x128xf32>
    %876 = arith.addf %873, %875 : vector<5x128xf32>
    %877 = vector.broadcast %176 : f32 to vector<5x128xf32>
    %878 = arith.mulf %592, %877 : vector<5x128xf32>
    %879 = arith.addf %876, %878 : vector<5x128xf32>
    %880 = vector.broadcast %196 : f32 to vector<5x128xf32>
    %881 = arith.mulf %610, %880 : vector<5x128xf32>
    %882 = arith.addf %879, %881 : vector<5x128xf32>
    %883 = vector.broadcast %216 : f32 to vector<5x128xf32>
    %884 = arith.mulf %628, %883 : vector<5x128xf32>
    %885 = arith.addf %882, %884 : vector<5x128xf32>
    %886 = vector.broadcast %236 : f32 to vector<5x128xf32>
    %887 = arith.mulf %646, %886 : vector<5x128xf32>
    %888 = arith.addf %885, %887 : vector<5x128xf32>
    %889 = vector.broadcast %256 : f32 to vector<5x128xf32>
    %890 = arith.mulf %664, %889 : vector<5x128xf32>
    %891 = arith.addf %888, %890 : vector<5x128xf32>
    %892 = vector.broadcast %276 : f32 to vector<5x128xf32>
    %893 = arith.addf %891, %892 : vector<5x128xf32>
    %cst_29 = arith.constant 0.000000e+00 : f32
    %894 = vector.broadcast %cst_29 : f32 to vector<5x128xf32>
    %895 = arith.maximumf %893, %894 : vector<5x128xf32>
    %896 = vector.broadcast %77 : f32 to vector<5x128xf32>
    %897 = arith.mulf %502, %896 : vector<5x128xf32>
    %898 = vector.broadcast %97 : f32 to vector<5x128xf32>
    %899 = arith.mulf %520, %898 : vector<5x128xf32>
    %900 = arith.addf %897, %899 : vector<5x128xf32>
    %901 = vector.broadcast %117 : f32 to vector<5x128xf32>
    %902 = arith.mulf %538, %901 : vector<5x128xf32>
    %903 = arith.addf %900, %902 : vector<5x128xf32>
    %904 = vector.broadcast %137 : f32 to vector<5x128xf32>
    %905 = arith.mulf %556, %904 : vector<5x128xf32>
    %906 = arith.addf %903, %905 : vector<5x128xf32>
    %907 = vector.broadcast %157 : f32 to vector<5x128xf32>
    %908 = arith.mulf %574, %907 : vector<5x128xf32>
    %909 = arith.addf %906, %908 : vector<5x128xf32>
    %910 = vector.broadcast %177 : f32 to vector<5x128xf32>
    %911 = arith.mulf %592, %910 : vector<5x128xf32>
    %912 = arith.addf %909, %911 : vector<5x128xf32>
    %913 = vector.broadcast %197 : f32 to vector<5x128xf32>
    %914 = arith.mulf %610, %913 : vector<5x128xf32>
    %915 = arith.addf %912, %914 : vector<5x128xf32>
    %916 = vector.broadcast %217 : f32 to vector<5x128xf32>
    %917 = arith.mulf %628, %916 : vector<5x128xf32>
    %918 = arith.addf %915, %917 : vector<5x128xf32>
    %919 = vector.broadcast %237 : f32 to vector<5x128xf32>
    %920 = arith.mulf %646, %919 : vector<5x128xf32>
    %921 = arith.addf %918, %920 : vector<5x128xf32>
    %922 = vector.broadcast %257 : f32 to vector<5x128xf32>
    %923 = arith.mulf %664, %922 : vector<5x128xf32>
    %924 = arith.addf %921, %923 : vector<5x128xf32>
    %925 = vector.broadcast %277 : f32 to vector<5x128xf32>
    %926 = arith.addf %924, %925 : vector<5x128xf32>
    %cst_30 = arith.constant 0.000000e+00 : f32
    %927 = vector.broadcast %cst_30 : f32 to vector<5x128xf32>
    %928 = arith.maximumf %926, %927 : vector<5x128xf32>
    %929 = vector.broadcast %78 : f32 to vector<5x128xf32>
    %930 = arith.mulf %502, %929 : vector<5x128xf32>
    %931 = vector.broadcast %98 : f32 to vector<5x128xf32>
    %932 = arith.mulf %520, %931 : vector<5x128xf32>
    %933 = arith.addf %930, %932 : vector<5x128xf32>
    %934 = vector.broadcast %118 : f32 to vector<5x128xf32>
    %935 = arith.mulf %538, %934 : vector<5x128xf32>
    %936 = arith.addf %933, %935 : vector<5x128xf32>
    %937 = vector.broadcast %138 : f32 to vector<5x128xf32>
    %938 = arith.mulf %556, %937 : vector<5x128xf32>
    %939 = arith.addf %936, %938 : vector<5x128xf32>
    %940 = vector.broadcast %158 : f32 to vector<5x128xf32>
    %941 = arith.mulf %574, %940 : vector<5x128xf32>
    %942 = arith.addf %939, %941 : vector<5x128xf32>
    %943 = vector.broadcast %178 : f32 to vector<5x128xf32>
    %944 = arith.mulf %592, %943 : vector<5x128xf32>
    %945 = arith.addf %942, %944 : vector<5x128xf32>
    %946 = vector.broadcast %198 : f32 to vector<5x128xf32>
    %947 = arith.mulf %610, %946 : vector<5x128xf32>
    %948 = arith.addf %945, %947 : vector<5x128xf32>
    %949 = vector.broadcast %218 : f32 to vector<5x128xf32>
    %950 = arith.mulf %628, %949 : vector<5x128xf32>
    %951 = arith.addf %948, %950 : vector<5x128xf32>
    %952 = vector.broadcast %238 : f32 to vector<5x128xf32>
    %953 = arith.mulf %646, %952 : vector<5x128xf32>
    %954 = arith.addf %951, %953 : vector<5x128xf32>
    %955 = vector.broadcast %258 : f32 to vector<5x128xf32>
    %956 = arith.mulf %664, %955 : vector<5x128xf32>
    %957 = arith.addf %954, %956 : vector<5x128xf32>
    %958 = vector.broadcast %278 : f32 to vector<5x128xf32>
    %959 = arith.addf %957, %958 : vector<5x128xf32>
    %cst_31 = arith.constant 0.000000e+00 : f32
    %960 = vector.broadcast %cst_31 : f32 to vector<5x128xf32>
    %961 = arith.maximumf %959, %960 : vector<5x128xf32>
    %962 = vector.broadcast %79 : f32 to vector<5x128xf32>
    %963 = arith.mulf %502, %962 : vector<5x128xf32>
    %964 = vector.broadcast %99 : f32 to vector<5x128xf32>
    %965 = arith.mulf %520, %964 : vector<5x128xf32>
    %966 = arith.addf %963, %965 : vector<5x128xf32>
    %967 = vector.broadcast %119 : f32 to vector<5x128xf32>
    %968 = arith.mulf %538, %967 : vector<5x128xf32>
    %969 = arith.addf %966, %968 : vector<5x128xf32>
    %970 = vector.broadcast %139 : f32 to vector<5x128xf32>
    %971 = arith.mulf %556, %970 : vector<5x128xf32>
    %972 = arith.addf %969, %971 : vector<5x128xf32>
    %973 = vector.broadcast %159 : f32 to vector<5x128xf32>
    %974 = arith.mulf %574, %973 : vector<5x128xf32>
    %975 = arith.addf %972, %974 : vector<5x128xf32>
    %976 = vector.broadcast %179 : f32 to vector<5x128xf32>
    %977 = arith.mulf %592, %976 : vector<5x128xf32>
    %978 = arith.addf %975, %977 : vector<5x128xf32>
    %979 = vector.broadcast %199 : f32 to vector<5x128xf32>
    %980 = arith.mulf %610, %979 : vector<5x128xf32>
    %981 = arith.addf %978, %980 : vector<5x128xf32>
    %982 = vector.broadcast %219 : f32 to vector<5x128xf32>
    %983 = arith.mulf %628, %982 : vector<5x128xf32>
    %984 = arith.addf %981, %983 : vector<5x128xf32>
    %985 = vector.broadcast %239 : f32 to vector<5x128xf32>
    %986 = arith.mulf %646, %985 : vector<5x128xf32>
    %987 = arith.addf %984, %986 : vector<5x128xf32>
    %988 = vector.broadcast %259 : f32 to vector<5x128xf32>
    %989 = arith.mulf %664, %988 : vector<5x128xf32>
    %990 = arith.addf %987, %989 : vector<5x128xf32>
    %991 = vector.broadcast %279 : f32 to vector<5x128xf32>
    %992 = arith.addf %990, %991 : vector<5x128xf32>
    %cst_32 = arith.constant 0.000000e+00 : f32
    %993 = vector.broadcast %cst_32 : f32 to vector<5x128xf32>
    %994 = arith.maximumf %992, %993 : vector<5x128xf32>
    %995 = vector.broadcast %80 : f32 to vector<5x128xf32>
    %996 = arith.mulf %502, %995 : vector<5x128xf32>
    %997 = vector.broadcast %100 : f32 to vector<5x128xf32>
    %998 = arith.mulf %520, %997 : vector<5x128xf32>
    %999 = arith.addf %996, %998 : vector<5x128xf32>
    %1000 = vector.broadcast %120 : f32 to vector<5x128xf32>
    %1001 = arith.mulf %538, %1000 : vector<5x128xf32>
    %1002 = arith.addf %999, %1001 : vector<5x128xf32>
    %1003 = vector.broadcast %140 : f32 to vector<5x128xf32>
    %1004 = arith.mulf %556, %1003 : vector<5x128xf32>
    %1005 = arith.addf %1002, %1004 : vector<5x128xf32>
    %1006 = vector.broadcast %160 : f32 to vector<5x128xf32>
    %1007 = arith.mulf %574, %1006 : vector<5x128xf32>
    %1008 = arith.addf %1005, %1007 : vector<5x128xf32>
    %1009 = vector.broadcast %180 : f32 to vector<5x128xf32>
    %1010 = arith.mulf %592, %1009 : vector<5x128xf32>
    %1011 = arith.addf %1008, %1010 : vector<5x128xf32>
    %1012 = vector.broadcast %200 : f32 to vector<5x128xf32>
    %1013 = arith.mulf %610, %1012 : vector<5x128xf32>
    %1014 = arith.addf %1011, %1013 : vector<5x128xf32>
    %1015 = vector.broadcast %220 : f32 to vector<5x128xf32>
    %1016 = arith.mulf %628, %1015 : vector<5x128xf32>
    %1017 = arith.addf %1014, %1016 : vector<5x128xf32>
    %1018 = vector.broadcast %240 : f32 to vector<5x128xf32>
    %1019 = arith.mulf %646, %1018 : vector<5x128xf32>
    %1020 = arith.addf %1017, %1019 : vector<5x128xf32>
    %1021 = vector.broadcast %260 : f32 to vector<5x128xf32>
    %1022 = arith.mulf %664, %1021 : vector<5x128xf32>
    %1023 = arith.addf %1020, %1022 : vector<5x128xf32>
    %1024 = vector.broadcast %280 : f32 to vector<5x128xf32>
    %1025 = arith.addf %1023, %1024 : vector<5x128xf32>
    %cst_33 = arith.constant 0.000000e+00 : f32
    %1026 = vector.broadcast %cst_33 : f32 to vector<5x128xf32>
    %1027 = arith.maximumf %1025, %1026 : vector<5x128xf32>
    %1028 = vector.broadcast %81 : f32 to vector<5x128xf32>
    %1029 = arith.mulf %502, %1028 : vector<5x128xf32>
    %1030 = vector.broadcast %101 : f32 to vector<5x128xf32>
    %1031 = arith.mulf %520, %1030 : vector<5x128xf32>
    %1032 = arith.addf %1029, %1031 : vector<5x128xf32>
    %1033 = vector.broadcast %121 : f32 to vector<5x128xf32>
    %1034 = arith.mulf %538, %1033 : vector<5x128xf32>
    %1035 = arith.addf %1032, %1034 : vector<5x128xf32>
    %1036 = vector.broadcast %141 : f32 to vector<5x128xf32>
    %1037 = arith.mulf %556, %1036 : vector<5x128xf32>
    %1038 = arith.addf %1035, %1037 : vector<5x128xf32>
    %1039 = vector.broadcast %161 : f32 to vector<5x128xf32>
    %1040 = arith.mulf %574, %1039 : vector<5x128xf32>
    %1041 = arith.addf %1038, %1040 : vector<5x128xf32>
    %1042 = vector.broadcast %181 : f32 to vector<5x128xf32>
    %1043 = arith.mulf %592, %1042 : vector<5x128xf32>
    %1044 = arith.addf %1041, %1043 : vector<5x128xf32>
    %1045 = vector.broadcast %201 : f32 to vector<5x128xf32>
    %1046 = arith.mulf %610, %1045 : vector<5x128xf32>
    %1047 = arith.addf %1044, %1046 : vector<5x128xf32>
    %1048 = vector.broadcast %221 : f32 to vector<5x128xf32>
    %1049 = arith.mulf %628, %1048 : vector<5x128xf32>
    %1050 = arith.addf %1047, %1049 : vector<5x128xf32>
    %1051 = vector.broadcast %241 : f32 to vector<5x128xf32>
    %1052 = arith.mulf %646, %1051 : vector<5x128xf32>
    %1053 = arith.addf %1050, %1052 : vector<5x128xf32>
    %1054 = vector.broadcast %261 : f32 to vector<5x128xf32>
    %1055 = arith.mulf %664, %1054 : vector<5x128xf32>
    %1056 = arith.addf %1053, %1055 : vector<5x128xf32>
    %1057 = vector.broadcast %281 : f32 to vector<5x128xf32>
    %1058 = arith.addf %1056, %1057 : vector<5x128xf32>
    %cst_34 = arith.constant 0.000000e+00 : f32
    %1059 = vector.broadcast %cst_34 : f32 to vector<5x128xf32>
    %1060 = arith.maximumf %1058, %1059 : vector<5x128xf32>
    %1061 = vector.broadcast %82 : f32 to vector<5x128xf32>
    %1062 = arith.mulf %502, %1061 : vector<5x128xf32>
    %1063 = vector.broadcast %102 : f32 to vector<5x128xf32>
    %1064 = arith.mulf %520, %1063 : vector<5x128xf32>
    %1065 = arith.addf %1062, %1064 : vector<5x128xf32>
    %1066 = vector.broadcast %122 : f32 to vector<5x128xf32>
    %1067 = arith.mulf %538, %1066 : vector<5x128xf32>
    %1068 = arith.addf %1065, %1067 : vector<5x128xf32>
    %1069 = vector.broadcast %142 : f32 to vector<5x128xf32>
    %1070 = arith.mulf %556, %1069 : vector<5x128xf32>
    %1071 = arith.addf %1068, %1070 : vector<5x128xf32>
    %1072 = vector.broadcast %162 : f32 to vector<5x128xf32>
    %1073 = arith.mulf %574, %1072 : vector<5x128xf32>
    %1074 = arith.addf %1071, %1073 : vector<5x128xf32>
    %1075 = vector.broadcast %182 : f32 to vector<5x128xf32>
    %1076 = arith.mulf %592, %1075 : vector<5x128xf32>
    %1077 = arith.addf %1074, %1076 : vector<5x128xf32>
    %1078 = vector.broadcast %202 : f32 to vector<5x128xf32>
    %1079 = arith.mulf %610, %1078 : vector<5x128xf32>
    %1080 = arith.addf %1077, %1079 : vector<5x128xf32>
    %1081 = vector.broadcast %222 : f32 to vector<5x128xf32>
    %1082 = arith.mulf %628, %1081 : vector<5x128xf32>
    %1083 = arith.addf %1080, %1082 : vector<5x128xf32>
    %1084 = vector.broadcast %242 : f32 to vector<5x128xf32>
    %1085 = arith.mulf %646, %1084 : vector<5x128xf32>
    %1086 = arith.addf %1083, %1085 : vector<5x128xf32>
    %1087 = vector.broadcast %262 : f32 to vector<5x128xf32>
    %1088 = arith.mulf %664, %1087 : vector<5x128xf32>
    %1089 = arith.addf %1086, %1088 : vector<5x128xf32>
    %1090 = vector.broadcast %282 : f32 to vector<5x128xf32>
    %1091 = arith.addf %1089, %1090 : vector<5x128xf32>
    %cst_35 = arith.constant 0.000000e+00 : f32
    %1092 = vector.broadcast %cst_35 : f32 to vector<5x128xf32>
    %1093 = arith.maximumf %1091, %1092 : vector<5x128xf32>
    %1094 = vector.broadcast %83 : f32 to vector<5x128xf32>
    %1095 = arith.mulf %502, %1094 : vector<5x128xf32>
    %1096 = vector.broadcast %103 : f32 to vector<5x128xf32>
    %1097 = arith.mulf %520, %1096 : vector<5x128xf32>
    %1098 = arith.addf %1095, %1097 : vector<5x128xf32>
    %1099 = vector.broadcast %123 : f32 to vector<5x128xf32>
    %1100 = arith.mulf %538, %1099 : vector<5x128xf32>
    %1101 = arith.addf %1098, %1100 : vector<5x128xf32>
    %1102 = vector.broadcast %143 : f32 to vector<5x128xf32>
    %1103 = arith.mulf %556, %1102 : vector<5x128xf32>
    %1104 = arith.addf %1101, %1103 : vector<5x128xf32>
    %1105 = vector.broadcast %163 : f32 to vector<5x128xf32>
    %1106 = arith.mulf %574, %1105 : vector<5x128xf32>
    %1107 = arith.addf %1104, %1106 : vector<5x128xf32>
    %1108 = vector.broadcast %183 : f32 to vector<5x128xf32>
    %1109 = arith.mulf %592, %1108 : vector<5x128xf32>
    %1110 = arith.addf %1107, %1109 : vector<5x128xf32>
    %1111 = vector.broadcast %203 : f32 to vector<5x128xf32>
    %1112 = arith.mulf %610, %1111 : vector<5x128xf32>
    %1113 = arith.addf %1110, %1112 : vector<5x128xf32>
    %1114 = vector.broadcast %223 : f32 to vector<5x128xf32>
    %1115 = arith.mulf %628, %1114 : vector<5x128xf32>
    %1116 = arith.addf %1113, %1115 : vector<5x128xf32>
    %1117 = vector.broadcast %243 : f32 to vector<5x128xf32>
    %1118 = arith.mulf %646, %1117 : vector<5x128xf32>
    %1119 = arith.addf %1116, %1118 : vector<5x128xf32>
    %1120 = vector.broadcast %263 : f32 to vector<5x128xf32>
    %1121 = arith.mulf %664, %1120 : vector<5x128xf32>
    %1122 = arith.addf %1119, %1121 : vector<5x128xf32>
    %1123 = vector.broadcast %283 : f32 to vector<5x128xf32>
    %1124 = arith.addf %1122, %1123 : vector<5x128xf32>
    %cst_36 = arith.constant 0.000000e+00 : f32
    %1125 = vector.broadcast %cst_36 : f32 to vector<5x128xf32>
    %1126 = arith.maximumf %1124, %1125 : vector<5x128xf32>
    %1127 = vector.broadcast %84 : f32 to vector<5x128xf32>
    %1128 = arith.mulf %502, %1127 : vector<5x128xf32>
    %1129 = vector.broadcast %104 : f32 to vector<5x128xf32>
    %1130 = arith.mulf %520, %1129 : vector<5x128xf32>
    %1131 = arith.addf %1128, %1130 : vector<5x128xf32>
    %1132 = vector.broadcast %124 : f32 to vector<5x128xf32>
    %1133 = arith.mulf %538, %1132 : vector<5x128xf32>
    %1134 = arith.addf %1131, %1133 : vector<5x128xf32>
    %1135 = vector.broadcast %144 : f32 to vector<5x128xf32>
    %1136 = arith.mulf %556, %1135 : vector<5x128xf32>
    %1137 = arith.addf %1134, %1136 : vector<5x128xf32>
    %1138 = vector.broadcast %164 : f32 to vector<5x128xf32>
    %1139 = arith.mulf %574, %1138 : vector<5x128xf32>
    %1140 = arith.addf %1137, %1139 : vector<5x128xf32>
    %1141 = vector.broadcast %184 : f32 to vector<5x128xf32>
    %1142 = arith.mulf %592, %1141 : vector<5x128xf32>
    %1143 = arith.addf %1140, %1142 : vector<5x128xf32>
    %1144 = vector.broadcast %204 : f32 to vector<5x128xf32>
    %1145 = arith.mulf %610, %1144 : vector<5x128xf32>
    %1146 = arith.addf %1143, %1145 : vector<5x128xf32>
    %1147 = vector.broadcast %224 : f32 to vector<5x128xf32>
    %1148 = arith.mulf %628, %1147 : vector<5x128xf32>
    %1149 = arith.addf %1146, %1148 : vector<5x128xf32>
    %1150 = vector.broadcast %244 : f32 to vector<5x128xf32>
    %1151 = arith.mulf %646, %1150 : vector<5x128xf32>
    %1152 = arith.addf %1149, %1151 : vector<5x128xf32>
    %1153 = vector.broadcast %264 : f32 to vector<5x128xf32>
    %1154 = arith.mulf %664, %1153 : vector<5x128xf32>
    %1155 = arith.addf %1152, %1154 : vector<5x128xf32>
    %1156 = vector.broadcast %284 : f32 to vector<5x128xf32>
    %1157 = arith.addf %1155, %1156 : vector<5x128xf32>
    %cst_37 = arith.constant 0.000000e+00 : f32
    %1158 = vector.broadcast %cst_37 : f32 to vector<5x128xf32>
    %1159 = arith.maximumf %1157, %1158 : vector<5x128xf32>
    %1160 = vector.broadcast %85 : f32 to vector<5x128xf32>
    %1161 = arith.mulf %502, %1160 : vector<5x128xf32>
    %1162 = vector.broadcast %105 : f32 to vector<5x128xf32>
    %1163 = arith.mulf %520, %1162 : vector<5x128xf32>
    %1164 = arith.addf %1161, %1163 : vector<5x128xf32>
    %1165 = vector.broadcast %125 : f32 to vector<5x128xf32>
    %1166 = arith.mulf %538, %1165 : vector<5x128xf32>
    %1167 = arith.addf %1164, %1166 : vector<5x128xf32>
    %1168 = vector.broadcast %145 : f32 to vector<5x128xf32>
    %1169 = arith.mulf %556, %1168 : vector<5x128xf32>
    %1170 = arith.addf %1167, %1169 : vector<5x128xf32>
    %1171 = vector.broadcast %165 : f32 to vector<5x128xf32>
    %1172 = arith.mulf %574, %1171 : vector<5x128xf32>
    %1173 = arith.addf %1170, %1172 : vector<5x128xf32>
    %1174 = vector.broadcast %185 : f32 to vector<5x128xf32>
    %1175 = arith.mulf %592, %1174 : vector<5x128xf32>
    %1176 = arith.addf %1173, %1175 : vector<5x128xf32>
    %1177 = vector.broadcast %205 : f32 to vector<5x128xf32>
    %1178 = arith.mulf %610, %1177 : vector<5x128xf32>
    %1179 = arith.addf %1176, %1178 : vector<5x128xf32>
    %1180 = vector.broadcast %225 : f32 to vector<5x128xf32>
    %1181 = arith.mulf %628, %1180 : vector<5x128xf32>
    %1182 = arith.addf %1179, %1181 : vector<5x128xf32>
    %1183 = vector.broadcast %245 : f32 to vector<5x128xf32>
    %1184 = arith.mulf %646, %1183 : vector<5x128xf32>
    %1185 = arith.addf %1182, %1184 : vector<5x128xf32>
    %1186 = vector.broadcast %265 : f32 to vector<5x128xf32>
    %1187 = arith.mulf %664, %1186 : vector<5x128xf32>
    %1188 = arith.addf %1185, %1187 : vector<5x128xf32>
    %1189 = vector.broadcast %285 : f32 to vector<5x128xf32>
    %1190 = arith.addf %1188, %1189 : vector<5x128xf32>
    %cst_38 = arith.constant 0.000000e+00 : f32
    %1191 = vector.broadcast %cst_38 : f32 to vector<5x128xf32>
    %1192 = arith.maximumf %1190, %1191 : vector<5x128xf32>
    %1193 = vector.broadcast %86 : f32 to vector<5x128xf32>
    %1194 = arith.mulf %502, %1193 : vector<5x128xf32>
    %1195 = vector.broadcast %106 : f32 to vector<5x128xf32>
    %1196 = arith.mulf %520, %1195 : vector<5x128xf32>
    %1197 = arith.addf %1194, %1196 : vector<5x128xf32>
    %1198 = vector.broadcast %126 : f32 to vector<5x128xf32>
    %1199 = arith.mulf %538, %1198 : vector<5x128xf32>
    %1200 = arith.addf %1197, %1199 : vector<5x128xf32>
    %1201 = vector.broadcast %146 : f32 to vector<5x128xf32>
    %1202 = arith.mulf %556, %1201 : vector<5x128xf32>
    %1203 = arith.addf %1200, %1202 : vector<5x128xf32>
    %1204 = vector.broadcast %166 : f32 to vector<5x128xf32>
    %1205 = arith.mulf %574, %1204 : vector<5x128xf32>
    %1206 = arith.addf %1203, %1205 : vector<5x128xf32>
    %1207 = vector.broadcast %186 : f32 to vector<5x128xf32>
    %1208 = arith.mulf %592, %1207 : vector<5x128xf32>
    %1209 = arith.addf %1206, %1208 : vector<5x128xf32>
    %1210 = vector.broadcast %206 : f32 to vector<5x128xf32>
    %1211 = arith.mulf %610, %1210 : vector<5x128xf32>
    %1212 = arith.addf %1209, %1211 : vector<5x128xf32>
    %1213 = vector.broadcast %226 : f32 to vector<5x128xf32>
    %1214 = arith.mulf %628, %1213 : vector<5x128xf32>
    %1215 = arith.addf %1212, %1214 : vector<5x128xf32>
    %1216 = vector.broadcast %246 : f32 to vector<5x128xf32>
    %1217 = arith.mulf %646, %1216 : vector<5x128xf32>
    %1218 = arith.addf %1215, %1217 : vector<5x128xf32>
    %1219 = vector.broadcast %266 : f32 to vector<5x128xf32>
    %1220 = arith.mulf %664, %1219 : vector<5x128xf32>
    %1221 = arith.addf %1218, %1220 : vector<5x128xf32>
    %1222 = vector.broadcast %286 : f32 to vector<5x128xf32>
    %1223 = arith.addf %1221, %1222 : vector<5x128xf32>
    %cst_39 = arith.constant 0.000000e+00 : f32
    %1224 = vector.broadcast %cst_39 : f32 to vector<5x128xf32>
    %1225 = arith.maximumf %1223, %1224 : vector<5x128xf32>
    %1226 = vector.broadcast %87 : f32 to vector<5x128xf32>
    %1227 = arith.mulf %502, %1226 : vector<5x128xf32>
    %1228 = vector.broadcast %107 : f32 to vector<5x128xf32>
    %1229 = arith.mulf %520, %1228 : vector<5x128xf32>
    %1230 = arith.addf %1227, %1229 : vector<5x128xf32>
    %1231 = vector.broadcast %127 : f32 to vector<5x128xf32>
    %1232 = arith.mulf %538, %1231 : vector<5x128xf32>
    %1233 = arith.addf %1230, %1232 : vector<5x128xf32>
    %1234 = vector.broadcast %147 : f32 to vector<5x128xf32>
    %1235 = arith.mulf %556, %1234 : vector<5x128xf32>
    %1236 = arith.addf %1233, %1235 : vector<5x128xf32>
    %1237 = vector.broadcast %167 : f32 to vector<5x128xf32>
    %1238 = arith.mulf %574, %1237 : vector<5x128xf32>
    %1239 = arith.addf %1236, %1238 : vector<5x128xf32>
    %1240 = vector.broadcast %187 : f32 to vector<5x128xf32>
    %1241 = arith.mulf %592, %1240 : vector<5x128xf32>
    %1242 = arith.addf %1239, %1241 : vector<5x128xf32>
    %1243 = vector.broadcast %207 : f32 to vector<5x128xf32>
    %1244 = arith.mulf %610, %1243 : vector<5x128xf32>
    %1245 = arith.addf %1242, %1244 : vector<5x128xf32>
    %1246 = vector.broadcast %227 : f32 to vector<5x128xf32>
    %1247 = arith.mulf %628, %1246 : vector<5x128xf32>
    %1248 = arith.addf %1245, %1247 : vector<5x128xf32>
    %1249 = vector.broadcast %247 : f32 to vector<5x128xf32>
    %1250 = arith.mulf %646, %1249 : vector<5x128xf32>
    %1251 = arith.addf %1248, %1250 : vector<5x128xf32>
    %1252 = vector.broadcast %267 : f32 to vector<5x128xf32>
    %1253 = arith.mulf %664, %1252 : vector<5x128xf32>
    %1254 = arith.addf %1251, %1253 : vector<5x128xf32>
    %1255 = vector.broadcast %287 : f32 to vector<5x128xf32>
    %1256 = arith.addf %1254, %1255 : vector<5x128xf32>
    %cst_40 = arith.constant 0.000000e+00 : f32
    %1257 = vector.broadcast %cst_40 : f32 to vector<5x128xf32>
    %1258 = arith.maximumf %1256, %1257 : vector<5x128xf32>
    %1259 = vector.broadcast %88 : f32 to vector<5x128xf32>
    %1260 = arith.mulf %502, %1259 : vector<5x128xf32>
    %1261 = vector.broadcast %108 : f32 to vector<5x128xf32>
    %1262 = arith.mulf %520, %1261 : vector<5x128xf32>
    %1263 = arith.addf %1260, %1262 : vector<5x128xf32>
    %1264 = vector.broadcast %128 : f32 to vector<5x128xf32>
    %1265 = arith.mulf %538, %1264 : vector<5x128xf32>
    %1266 = arith.addf %1263, %1265 : vector<5x128xf32>
    %1267 = vector.broadcast %148 : f32 to vector<5x128xf32>
    %1268 = arith.mulf %556, %1267 : vector<5x128xf32>
    %1269 = arith.addf %1266, %1268 : vector<5x128xf32>
    %1270 = vector.broadcast %168 : f32 to vector<5x128xf32>
    %1271 = arith.mulf %574, %1270 : vector<5x128xf32>
    %1272 = arith.addf %1269, %1271 : vector<5x128xf32>
    %1273 = vector.broadcast %188 : f32 to vector<5x128xf32>
    %1274 = arith.mulf %592, %1273 : vector<5x128xf32>
    %1275 = arith.addf %1272, %1274 : vector<5x128xf32>
    %1276 = vector.broadcast %208 : f32 to vector<5x128xf32>
    %1277 = arith.mulf %610, %1276 : vector<5x128xf32>
    %1278 = arith.addf %1275, %1277 : vector<5x128xf32>
    %1279 = vector.broadcast %228 : f32 to vector<5x128xf32>
    %1280 = arith.mulf %628, %1279 : vector<5x128xf32>
    %1281 = arith.addf %1278, %1280 : vector<5x128xf32>
    %1282 = vector.broadcast %248 : f32 to vector<5x128xf32>
    %1283 = arith.mulf %646, %1282 : vector<5x128xf32>
    %1284 = arith.addf %1281, %1283 : vector<5x128xf32>
    %1285 = vector.broadcast %268 : f32 to vector<5x128xf32>
    %1286 = arith.mulf %664, %1285 : vector<5x128xf32>
    %1287 = arith.addf %1284, %1286 : vector<5x128xf32>
    %1288 = vector.broadcast %288 : f32 to vector<5x128xf32>
    %1289 = arith.addf %1287, %1288 : vector<5x128xf32>
    %cst_41 = arith.constant 0.000000e+00 : f32
    %1290 = vector.broadcast %cst_41 : f32 to vector<5x128xf32>
    %1291 = arith.maximumf %1289, %1290 : vector<5x128xf32>
    %1292 = vector.broadcast %89 : f32 to vector<5x128xf32>
    %1293 = arith.mulf %502, %1292 : vector<5x128xf32>
    %1294 = vector.broadcast %109 : f32 to vector<5x128xf32>
    %1295 = arith.mulf %520, %1294 : vector<5x128xf32>
    %1296 = arith.addf %1293, %1295 : vector<5x128xf32>
    %1297 = vector.broadcast %129 : f32 to vector<5x128xf32>
    %1298 = arith.mulf %538, %1297 : vector<5x128xf32>
    %1299 = arith.addf %1296, %1298 : vector<5x128xf32>
    %1300 = vector.broadcast %149 : f32 to vector<5x128xf32>
    %1301 = arith.mulf %556, %1300 : vector<5x128xf32>
    %1302 = arith.addf %1299, %1301 : vector<5x128xf32>
    %1303 = vector.broadcast %169 : f32 to vector<5x128xf32>
    %1304 = arith.mulf %574, %1303 : vector<5x128xf32>
    %1305 = arith.addf %1302, %1304 : vector<5x128xf32>
    %1306 = vector.broadcast %189 : f32 to vector<5x128xf32>
    %1307 = arith.mulf %592, %1306 : vector<5x128xf32>
    %1308 = arith.addf %1305, %1307 : vector<5x128xf32>
    %1309 = vector.broadcast %209 : f32 to vector<5x128xf32>
    %1310 = arith.mulf %610, %1309 : vector<5x128xf32>
    %1311 = arith.addf %1308, %1310 : vector<5x128xf32>
    %1312 = vector.broadcast %229 : f32 to vector<5x128xf32>
    %1313 = arith.mulf %628, %1312 : vector<5x128xf32>
    %1314 = arith.addf %1311, %1313 : vector<5x128xf32>
    %1315 = vector.broadcast %249 : f32 to vector<5x128xf32>
    %1316 = arith.mulf %646, %1315 : vector<5x128xf32>
    %1317 = arith.addf %1314, %1316 : vector<5x128xf32>
    %1318 = vector.broadcast %269 : f32 to vector<5x128xf32>
    %1319 = arith.mulf %664, %1318 : vector<5x128xf32>
    %1320 = arith.addf %1317, %1319 : vector<5x128xf32>
    %1321 = vector.broadcast %289 : f32 to vector<5x128xf32>
    %1322 = arith.addf %1320, %1321 : vector<5x128xf32>
    %cst_42 = arith.constant 0.000000e+00 : f32
    %1323 = vector.broadcast %cst_42 : f32 to vector<5x128xf32>
    %1324 = arith.maximumf %1322, %1323 : vector<5x128xf32>
    %1325 = vector.broadcast %290 : f32 to vector<5x128xf32>
    %1326 = arith.mulf %697, %1325 : vector<5x128xf32>
    %1327 = vector.broadcast %295 : f32 to vector<5x128xf32>
    %1328 = arith.mulf %730, %1327 : vector<5x128xf32>
    %1329 = arith.addf %1326, %1328 : vector<5x128xf32>
    %1330 = vector.broadcast %300 : f32 to vector<5x128xf32>
    %1331 = arith.mulf %763, %1330 : vector<5x128xf32>
    %1332 = arith.addf %1329, %1331 : vector<5x128xf32>
    %1333 = vector.broadcast %305 : f32 to vector<5x128xf32>
    %1334 = arith.mulf %796, %1333 : vector<5x128xf32>
    %1335 = arith.addf %1332, %1334 : vector<5x128xf32>
    %1336 = vector.broadcast %310 : f32 to vector<5x128xf32>
    %1337 = arith.mulf %829, %1336 : vector<5x128xf32>
    %1338 = arith.addf %1335, %1337 : vector<5x128xf32>
    %1339 = vector.broadcast %315 : f32 to vector<5x128xf32>
    %1340 = arith.mulf %862, %1339 : vector<5x128xf32>
    %1341 = arith.addf %1338, %1340 : vector<5x128xf32>
    %1342 = vector.broadcast %320 : f32 to vector<5x128xf32>
    %1343 = arith.mulf %895, %1342 : vector<5x128xf32>
    %1344 = arith.addf %1341, %1343 : vector<5x128xf32>
    %1345 = vector.broadcast %325 : f32 to vector<5x128xf32>
    %1346 = arith.mulf %928, %1345 : vector<5x128xf32>
    %1347 = arith.addf %1344, %1346 : vector<5x128xf32>
    %1348 = vector.broadcast %330 : f32 to vector<5x128xf32>
    %1349 = arith.mulf %961, %1348 : vector<5x128xf32>
    %1350 = arith.addf %1347, %1349 : vector<5x128xf32>
    %1351 = vector.broadcast %335 : f32 to vector<5x128xf32>
    %1352 = arith.mulf %994, %1351 : vector<5x128xf32>
    %1353 = arith.addf %1350, %1352 : vector<5x128xf32>
    %1354 = vector.broadcast %340 : f32 to vector<5x128xf32>
    %1355 = arith.mulf %1027, %1354 : vector<5x128xf32>
    %1356 = arith.addf %1353, %1355 : vector<5x128xf32>
    %1357 = vector.broadcast %345 : f32 to vector<5x128xf32>
    %1358 = arith.mulf %1060, %1357 : vector<5x128xf32>
    %1359 = arith.addf %1356, %1358 : vector<5x128xf32>
    %1360 = vector.broadcast %350 : f32 to vector<5x128xf32>
    %1361 = arith.mulf %1093, %1360 : vector<5x128xf32>
    %1362 = arith.addf %1359, %1361 : vector<5x128xf32>
    %1363 = vector.broadcast %355 : f32 to vector<5x128xf32>
    %1364 = arith.mulf %1126, %1363 : vector<5x128xf32>
    %1365 = arith.addf %1362, %1364 : vector<5x128xf32>
    %1366 = vector.broadcast %360 : f32 to vector<5x128xf32>
    %1367 = arith.mulf %1159, %1366 : vector<5x128xf32>
    %1368 = arith.addf %1365, %1367 : vector<5x128xf32>
    %1369 = vector.broadcast %365 : f32 to vector<5x128xf32>
    %1370 = arith.mulf %1192, %1369 : vector<5x128xf32>
    %1371 = arith.addf %1368, %1370 : vector<5x128xf32>
    %1372 = vector.broadcast %370 : f32 to vector<5x128xf32>
    %1373 = arith.mulf %1225, %1372 : vector<5x128xf32>
    %1374 = arith.addf %1371, %1373 : vector<5x128xf32>
    %1375 = vector.broadcast %375 : f32 to vector<5x128xf32>
    %1376 = arith.mulf %1258, %1375 : vector<5x128xf32>
    %1377 = arith.addf %1374, %1376 : vector<5x128xf32>
    %1378 = vector.broadcast %380 : f32 to vector<5x128xf32>
    %1379 = arith.mulf %1291, %1378 : vector<5x128xf32>
    %1380 = arith.addf %1377, %1379 : vector<5x128xf32>
    %1381 = vector.broadcast %385 : f32 to vector<5x128xf32>
    %1382 = arith.mulf %1324, %1381 : vector<5x128xf32>
    %1383 = arith.addf %1380, %1382 : vector<5x128xf32>
    %1384 = vector.broadcast %390 : f32 to vector<5x128xf32>
    %1385 = arith.addf %1383, %1384 : vector<5x128xf32>
    %cst_43 = arith.constant 0.000000e+00 : f32
    %1386 = vector.broadcast %cst_43 : f32 to vector<5x128xf32>
    %1387 = arith.maximumf %1385, %1386 : vector<5x128xf32>
    %1388 = vector.broadcast %291 : f32 to vector<5x128xf32>
    %1389 = arith.mulf %697, %1388 : vector<5x128xf32>
    %1390 = vector.broadcast %296 : f32 to vector<5x128xf32>
    %1391 = arith.mulf %730, %1390 : vector<5x128xf32>
    %1392 = arith.addf %1389, %1391 : vector<5x128xf32>
    %1393 = vector.broadcast %301 : f32 to vector<5x128xf32>
    %1394 = arith.mulf %763, %1393 : vector<5x128xf32>
    %1395 = arith.addf %1392, %1394 : vector<5x128xf32>
    %1396 = vector.broadcast %306 : f32 to vector<5x128xf32>
    %1397 = arith.mulf %796, %1396 : vector<5x128xf32>
    %1398 = arith.addf %1395, %1397 : vector<5x128xf32>
    %1399 = vector.broadcast %311 : f32 to vector<5x128xf32>
    %1400 = arith.mulf %829, %1399 : vector<5x128xf32>
    %1401 = arith.addf %1398, %1400 : vector<5x128xf32>
    %1402 = vector.broadcast %316 : f32 to vector<5x128xf32>
    %1403 = arith.mulf %862, %1402 : vector<5x128xf32>
    %1404 = arith.addf %1401, %1403 : vector<5x128xf32>
    %1405 = vector.broadcast %321 : f32 to vector<5x128xf32>
    %1406 = arith.mulf %895, %1405 : vector<5x128xf32>
    %1407 = arith.addf %1404, %1406 : vector<5x128xf32>
    %1408 = vector.broadcast %326 : f32 to vector<5x128xf32>
    %1409 = arith.mulf %928, %1408 : vector<5x128xf32>
    %1410 = arith.addf %1407, %1409 : vector<5x128xf32>
    %1411 = vector.broadcast %331 : f32 to vector<5x128xf32>
    %1412 = arith.mulf %961, %1411 : vector<5x128xf32>
    %1413 = arith.addf %1410, %1412 : vector<5x128xf32>
    %1414 = vector.broadcast %336 : f32 to vector<5x128xf32>
    %1415 = arith.mulf %994, %1414 : vector<5x128xf32>
    %1416 = arith.addf %1413, %1415 : vector<5x128xf32>
    %1417 = vector.broadcast %341 : f32 to vector<5x128xf32>
    %1418 = arith.mulf %1027, %1417 : vector<5x128xf32>
    %1419 = arith.addf %1416, %1418 : vector<5x128xf32>
    %1420 = vector.broadcast %346 : f32 to vector<5x128xf32>
    %1421 = arith.mulf %1060, %1420 : vector<5x128xf32>
    %1422 = arith.addf %1419, %1421 : vector<5x128xf32>
    %1423 = vector.broadcast %351 : f32 to vector<5x128xf32>
    %1424 = arith.mulf %1093, %1423 : vector<5x128xf32>
    %1425 = arith.addf %1422, %1424 : vector<5x128xf32>
    %1426 = vector.broadcast %356 : f32 to vector<5x128xf32>
    %1427 = arith.mulf %1126, %1426 : vector<5x128xf32>
    %1428 = arith.addf %1425, %1427 : vector<5x128xf32>
    %1429 = vector.broadcast %361 : f32 to vector<5x128xf32>
    %1430 = arith.mulf %1159, %1429 : vector<5x128xf32>
    %1431 = arith.addf %1428, %1430 : vector<5x128xf32>
    %1432 = vector.broadcast %366 : f32 to vector<5x128xf32>
    %1433 = arith.mulf %1192, %1432 : vector<5x128xf32>
    %1434 = arith.addf %1431, %1433 : vector<5x128xf32>
    %1435 = vector.broadcast %371 : f32 to vector<5x128xf32>
    %1436 = arith.mulf %1225, %1435 : vector<5x128xf32>
    %1437 = arith.addf %1434, %1436 : vector<5x128xf32>
    %1438 = vector.broadcast %376 : f32 to vector<5x128xf32>
    %1439 = arith.mulf %1258, %1438 : vector<5x128xf32>
    %1440 = arith.addf %1437, %1439 : vector<5x128xf32>
    %1441 = vector.broadcast %381 : f32 to vector<5x128xf32>
    %1442 = arith.mulf %1291, %1441 : vector<5x128xf32>
    %1443 = arith.addf %1440, %1442 : vector<5x128xf32>
    %1444 = vector.broadcast %386 : f32 to vector<5x128xf32>
    %1445 = arith.mulf %1324, %1444 : vector<5x128xf32>
    %1446 = arith.addf %1443, %1445 : vector<5x128xf32>
    %1447 = vector.broadcast %391 : f32 to vector<5x128xf32>
    %1448 = arith.addf %1446, %1447 : vector<5x128xf32>
    %cst_44 = arith.constant 0.000000e+00 : f32
    %1449 = vector.broadcast %cst_44 : f32 to vector<5x128xf32>
    %1450 = arith.maximumf %1448, %1449 : vector<5x128xf32>
    %1451 = vector.broadcast %292 : f32 to vector<5x128xf32>
    %1452 = arith.mulf %697, %1451 : vector<5x128xf32>
    %1453 = vector.broadcast %297 : f32 to vector<5x128xf32>
    %1454 = arith.mulf %730, %1453 : vector<5x128xf32>
    %1455 = arith.addf %1452, %1454 : vector<5x128xf32>
    %1456 = vector.broadcast %302 : f32 to vector<5x128xf32>
    %1457 = arith.mulf %763, %1456 : vector<5x128xf32>
    %1458 = arith.addf %1455, %1457 : vector<5x128xf32>
    %1459 = vector.broadcast %307 : f32 to vector<5x128xf32>
    %1460 = arith.mulf %796, %1459 : vector<5x128xf32>
    %1461 = arith.addf %1458, %1460 : vector<5x128xf32>
    %1462 = vector.broadcast %312 : f32 to vector<5x128xf32>
    %1463 = arith.mulf %829, %1462 : vector<5x128xf32>
    %1464 = arith.addf %1461, %1463 : vector<5x128xf32>
    %1465 = vector.broadcast %317 : f32 to vector<5x128xf32>
    %1466 = arith.mulf %862, %1465 : vector<5x128xf32>
    %1467 = arith.addf %1464, %1466 : vector<5x128xf32>
    %1468 = vector.broadcast %322 : f32 to vector<5x128xf32>
    %1469 = arith.mulf %895, %1468 : vector<5x128xf32>
    %1470 = arith.addf %1467, %1469 : vector<5x128xf32>
    %1471 = vector.broadcast %327 : f32 to vector<5x128xf32>
    %1472 = arith.mulf %928, %1471 : vector<5x128xf32>
    %1473 = arith.addf %1470, %1472 : vector<5x128xf32>
    %1474 = vector.broadcast %332 : f32 to vector<5x128xf32>
    %1475 = arith.mulf %961, %1474 : vector<5x128xf32>
    %1476 = arith.addf %1473, %1475 : vector<5x128xf32>
    %1477 = vector.broadcast %337 : f32 to vector<5x128xf32>
    %1478 = arith.mulf %994, %1477 : vector<5x128xf32>
    %1479 = arith.addf %1476, %1478 : vector<5x128xf32>
    %1480 = vector.broadcast %342 : f32 to vector<5x128xf32>
    %1481 = arith.mulf %1027, %1480 : vector<5x128xf32>
    %1482 = arith.addf %1479, %1481 : vector<5x128xf32>
    %1483 = vector.broadcast %347 : f32 to vector<5x128xf32>
    %1484 = arith.mulf %1060, %1483 : vector<5x128xf32>
    %1485 = arith.addf %1482, %1484 : vector<5x128xf32>
    %1486 = vector.broadcast %352 : f32 to vector<5x128xf32>
    %1487 = arith.mulf %1093, %1486 : vector<5x128xf32>
    %1488 = arith.addf %1485, %1487 : vector<5x128xf32>
    %1489 = vector.broadcast %357 : f32 to vector<5x128xf32>
    %1490 = arith.mulf %1126, %1489 : vector<5x128xf32>
    %1491 = arith.addf %1488, %1490 : vector<5x128xf32>
    %1492 = vector.broadcast %362 : f32 to vector<5x128xf32>
    %1493 = arith.mulf %1159, %1492 : vector<5x128xf32>
    %1494 = arith.addf %1491, %1493 : vector<5x128xf32>
    %1495 = vector.broadcast %367 : f32 to vector<5x128xf32>
    %1496 = arith.mulf %1192, %1495 : vector<5x128xf32>
    %1497 = arith.addf %1494, %1496 : vector<5x128xf32>
    %1498 = vector.broadcast %372 : f32 to vector<5x128xf32>
    %1499 = arith.mulf %1225, %1498 : vector<5x128xf32>
    %1500 = arith.addf %1497, %1499 : vector<5x128xf32>
    %1501 = vector.broadcast %377 : f32 to vector<5x128xf32>
    %1502 = arith.mulf %1258, %1501 : vector<5x128xf32>
    %1503 = arith.addf %1500, %1502 : vector<5x128xf32>
    %1504 = vector.broadcast %382 : f32 to vector<5x128xf32>
    %1505 = arith.mulf %1291, %1504 : vector<5x128xf32>
    %1506 = arith.addf %1503, %1505 : vector<5x128xf32>
    %1507 = vector.broadcast %387 : f32 to vector<5x128xf32>
    %1508 = arith.mulf %1324, %1507 : vector<5x128xf32>
    %1509 = arith.addf %1506, %1508 : vector<5x128xf32>
    %1510 = vector.broadcast %392 : f32 to vector<5x128xf32>
    %1511 = arith.addf %1509, %1510 : vector<5x128xf32>
    %cst_45 = arith.constant 0.000000e+00 : f32
    %1512 = vector.broadcast %cst_45 : f32 to vector<5x128xf32>
    %1513 = arith.maximumf %1511, %1512 : vector<5x128xf32>
    %1514 = vector.broadcast %293 : f32 to vector<5x128xf32>
    %1515 = arith.mulf %697, %1514 : vector<5x128xf32>
    %1516 = vector.broadcast %298 : f32 to vector<5x128xf32>
    %1517 = arith.mulf %730, %1516 : vector<5x128xf32>
    %1518 = arith.addf %1515, %1517 : vector<5x128xf32>
    %1519 = vector.broadcast %303 : f32 to vector<5x128xf32>
    %1520 = arith.mulf %763, %1519 : vector<5x128xf32>
    %1521 = arith.addf %1518, %1520 : vector<5x128xf32>
    %1522 = vector.broadcast %308 : f32 to vector<5x128xf32>
    %1523 = arith.mulf %796, %1522 : vector<5x128xf32>
    %1524 = arith.addf %1521, %1523 : vector<5x128xf32>
    %1525 = vector.broadcast %313 : f32 to vector<5x128xf32>
    %1526 = arith.mulf %829, %1525 : vector<5x128xf32>
    %1527 = arith.addf %1524, %1526 : vector<5x128xf32>
    %1528 = vector.broadcast %318 : f32 to vector<5x128xf32>
    %1529 = arith.mulf %862, %1528 : vector<5x128xf32>
    %1530 = arith.addf %1527, %1529 : vector<5x128xf32>
    %1531 = vector.broadcast %323 : f32 to vector<5x128xf32>
    %1532 = arith.mulf %895, %1531 : vector<5x128xf32>
    %1533 = arith.addf %1530, %1532 : vector<5x128xf32>
    %1534 = vector.broadcast %328 : f32 to vector<5x128xf32>
    %1535 = arith.mulf %928, %1534 : vector<5x128xf32>
    %1536 = arith.addf %1533, %1535 : vector<5x128xf32>
    %1537 = vector.broadcast %333 : f32 to vector<5x128xf32>
    %1538 = arith.mulf %961, %1537 : vector<5x128xf32>
    %1539 = arith.addf %1536, %1538 : vector<5x128xf32>
    %1540 = vector.broadcast %338 : f32 to vector<5x128xf32>
    %1541 = arith.mulf %994, %1540 : vector<5x128xf32>
    %1542 = arith.addf %1539, %1541 : vector<5x128xf32>
    %1543 = vector.broadcast %343 : f32 to vector<5x128xf32>
    %1544 = arith.mulf %1027, %1543 : vector<5x128xf32>
    %1545 = arith.addf %1542, %1544 : vector<5x128xf32>
    %1546 = vector.broadcast %348 : f32 to vector<5x128xf32>
    %1547 = arith.mulf %1060, %1546 : vector<5x128xf32>
    %1548 = arith.addf %1545, %1547 : vector<5x128xf32>
    %1549 = vector.broadcast %353 : f32 to vector<5x128xf32>
    %1550 = arith.mulf %1093, %1549 : vector<5x128xf32>
    %1551 = arith.addf %1548, %1550 : vector<5x128xf32>
    %1552 = vector.broadcast %358 : f32 to vector<5x128xf32>
    %1553 = arith.mulf %1126, %1552 : vector<5x128xf32>
    %1554 = arith.addf %1551, %1553 : vector<5x128xf32>
    %1555 = vector.broadcast %363 : f32 to vector<5x128xf32>
    %1556 = arith.mulf %1159, %1555 : vector<5x128xf32>
    %1557 = arith.addf %1554, %1556 : vector<5x128xf32>
    %1558 = vector.broadcast %368 : f32 to vector<5x128xf32>
    %1559 = arith.mulf %1192, %1558 : vector<5x128xf32>
    %1560 = arith.addf %1557, %1559 : vector<5x128xf32>
    %1561 = vector.broadcast %373 : f32 to vector<5x128xf32>
    %1562 = arith.mulf %1225, %1561 : vector<5x128xf32>
    %1563 = arith.addf %1560, %1562 : vector<5x128xf32>
    %1564 = vector.broadcast %378 : f32 to vector<5x128xf32>
    %1565 = arith.mulf %1258, %1564 : vector<5x128xf32>
    %1566 = arith.addf %1563, %1565 : vector<5x128xf32>
    %1567 = vector.broadcast %383 : f32 to vector<5x128xf32>
    %1568 = arith.mulf %1291, %1567 : vector<5x128xf32>
    %1569 = arith.addf %1566, %1568 : vector<5x128xf32>
    %1570 = vector.broadcast %388 : f32 to vector<5x128xf32>
    %1571 = arith.mulf %1324, %1570 : vector<5x128xf32>
    %1572 = arith.addf %1569, %1571 : vector<5x128xf32>
    %1573 = vector.broadcast %393 : f32 to vector<5x128xf32>
    %1574 = arith.addf %1572, %1573 : vector<5x128xf32>
    %cst_46 = arith.constant 0.000000e+00 : f32
    %1575 = vector.broadcast %cst_46 : f32 to vector<5x128xf32>
    %1576 = arith.maximumf %1574, %1575 : vector<5x128xf32>
    %1577 = vector.broadcast %294 : f32 to vector<5x128xf32>
    %1578 = arith.mulf %697, %1577 : vector<5x128xf32>
    %1579 = vector.broadcast %299 : f32 to vector<5x128xf32>
    %1580 = arith.mulf %730, %1579 : vector<5x128xf32>
    %1581 = arith.addf %1578, %1580 : vector<5x128xf32>
    %1582 = vector.broadcast %304 : f32 to vector<5x128xf32>
    %1583 = arith.mulf %763, %1582 : vector<5x128xf32>
    %1584 = arith.addf %1581, %1583 : vector<5x128xf32>
    %1585 = vector.broadcast %309 : f32 to vector<5x128xf32>
    %1586 = arith.mulf %796, %1585 : vector<5x128xf32>
    %1587 = arith.addf %1584, %1586 : vector<5x128xf32>
    %1588 = vector.broadcast %314 : f32 to vector<5x128xf32>
    %1589 = arith.mulf %829, %1588 : vector<5x128xf32>
    %1590 = arith.addf %1587, %1589 : vector<5x128xf32>
    %1591 = vector.broadcast %319 : f32 to vector<5x128xf32>
    %1592 = arith.mulf %862, %1591 : vector<5x128xf32>
    %1593 = arith.addf %1590, %1592 : vector<5x128xf32>
    %1594 = vector.broadcast %324 : f32 to vector<5x128xf32>
    %1595 = arith.mulf %895, %1594 : vector<5x128xf32>
    %1596 = arith.addf %1593, %1595 : vector<5x128xf32>
    %1597 = vector.broadcast %329 : f32 to vector<5x128xf32>
    %1598 = arith.mulf %928, %1597 : vector<5x128xf32>
    %1599 = arith.addf %1596, %1598 : vector<5x128xf32>
    %1600 = vector.broadcast %334 : f32 to vector<5x128xf32>
    %1601 = arith.mulf %961, %1600 : vector<5x128xf32>
    %1602 = arith.addf %1599, %1601 : vector<5x128xf32>
    %1603 = vector.broadcast %339 : f32 to vector<5x128xf32>
    %1604 = arith.mulf %994, %1603 : vector<5x128xf32>
    %1605 = arith.addf %1602, %1604 : vector<5x128xf32>
    %1606 = vector.broadcast %344 : f32 to vector<5x128xf32>
    %1607 = arith.mulf %1027, %1606 : vector<5x128xf32>
    %1608 = arith.addf %1605, %1607 : vector<5x128xf32>
    %1609 = vector.broadcast %349 : f32 to vector<5x128xf32>
    %1610 = arith.mulf %1060, %1609 : vector<5x128xf32>
    %1611 = arith.addf %1608, %1610 : vector<5x128xf32>
    %1612 = vector.broadcast %354 : f32 to vector<5x128xf32>
    %1613 = arith.mulf %1093, %1612 : vector<5x128xf32>
    %1614 = arith.addf %1611, %1613 : vector<5x128xf32>
    %1615 = vector.broadcast %359 : f32 to vector<5x128xf32>
    %1616 = arith.mulf %1126, %1615 : vector<5x128xf32>
    %1617 = arith.addf %1614, %1616 : vector<5x128xf32>
    %1618 = vector.broadcast %364 : f32 to vector<5x128xf32>
    %1619 = arith.mulf %1159, %1618 : vector<5x128xf32>
    %1620 = arith.addf %1617, %1619 : vector<5x128xf32>
    %1621 = vector.broadcast %369 : f32 to vector<5x128xf32>
    %1622 = arith.mulf %1192, %1621 : vector<5x128xf32>
    %1623 = arith.addf %1620, %1622 : vector<5x128xf32>
    %1624 = vector.broadcast %374 : f32 to vector<5x128xf32>
    %1625 = arith.mulf %1225, %1624 : vector<5x128xf32>
    %1626 = arith.addf %1623, %1625 : vector<5x128xf32>
    %1627 = vector.broadcast %379 : f32 to vector<5x128xf32>
    %1628 = arith.mulf %1258, %1627 : vector<5x128xf32>
    %1629 = arith.addf %1626, %1628 : vector<5x128xf32>
    %1630 = vector.broadcast %384 : f32 to vector<5x128xf32>
    %1631 = arith.mulf %1291, %1630 : vector<5x128xf32>
    %1632 = arith.addf %1629, %1631 : vector<5x128xf32>
    %1633 = vector.broadcast %389 : f32 to vector<5x128xf32>
    %1634 = arith.mulf %1324, %1633 : vector<5x128xf32>
    %1635 = arith.addf %1632, %1634 : vector<5x128xf32>
    %1636 = vector.broadcast %394 : f32 to vector<5x128xf32>
    %1637 = arith.addf %1635, %1636 : vector<5x128xf32>
    %cst_47 = arith.constant 0.000000e+00 : f32
    %1638 = vector.broadcast %cst_47 : f32 to vector<5x128xf32>
    %1639 = arith.maximumf %1637, %1638 : vector<5x128xf32>
    %1640 = vector.broadcast %395 : f32 to vector<5x128xf32>
    %1641 = arith.mulf %1387, %1640 : vector<5x128xf32>
    %1642 = vector.broadcast %404 : f32 to vector<5x128xf32>
    %1643 = arith.mulf %1450, %1642 : vector<5x128xf32>
    %1644 = arith.addf %1641, %1643 : vector<5x128xf32>
    %1645 = vector.broadcast %413 : f32 to vector<5x128xf32>
    %1646 = arith.mulf %1513, %1645 : vector<5x128xf32>
    %1647 = arith.addf %1644, %1646 : vector<5x128xf32>
    %1648 = vector.broadcast %422 : f32 to vector<5x128xf32>
    %1649 = arith.mulf %1576, %1648 : vector<5x128xf32>
    %1650 = arith.addf %1647, %1649 : vector<5x128xf32>
    %1651 = vector.broadcast %431 : f32 to vector<5x128xf32>
    %1652 = arith.mulf %1639, %1651 : vector<5x128xf32>
    %1653 = arith.addf %1650, %1652 : vector<5x128xf32>
    %1654 = vector.broadcast %440 : f32 to vector<5x128xf32>
    %1655 = arith.addf %1653, %1654 : vector<5x128xf32>
    %1656 = vector.broadcast %396 : f32 to vector<5x128xf32>
    %1657 = arith.mulf %1387, %1656 : vector<5x128xf32>
    %1658 = vector.broadcast %405 : f32 to vector<5x128xf32>
    %1659 = arith.mulf %1450, %1658 : vector<5x128xf32>
    %1660 = arith.addf %1657, %1659 : vector<5x128xf32>
    %1661 = vector.broadcast %414 : f32 to vector<5x128xf32>
    %1662 = arith.mulf %1513, %1661 : vector<5x128xf32>
    %1663 = arith.addf %1660, %1662 : vector<5x128xf32>
    %1664 = vector.broadcast %423 : f32 to vector<5x128xf32>
    %1665 = arith.mulf %1576, %1664 : vector<5x128xf32>
    %1666 = arith.addf %1663, %1665 : vector<5x128xf32>
    %1667 = vector.broadcast %432 : f32 to vector<5x128xf32>
    %1668 = arith.mulf %1639, %1667 : vector<5x128xf32>
    %1669 = arith.addf %1666, %1668 : vector<5x128xf32>
    %1670 = vector.broadcast %441 : f32 to vector<5x128xf32>
    %1671 = arith.addf %1669, %1670 : vector<5x128xf32>
    %1672 = vector.broadcast %397 : f32 to vector<5x128xf32>
    %1673 = arith.mulf %1387, %1672 : vector<5x128xf32>
    %1674 = vector.broadcast %406 : f32 to vector<5x128xf32>
    %1675 = arith.mulf %1450, %1674 : vector<5x128xf32>
    %1676 = arith.addf %1673, %1675 : vector<5x128xf32>
    %1677 = vector.broadcast %415 : f32 to vector<5x128xf32>
    %1678 = arith.mulf %1513, %1677 : vector<5x128xf32>
    %1679 = arith.addf %1676, %1678 : vector<5x128xf32>
    %1680 = vector.broadcast %424 : f32 to vector<5x128xf32>
    %1681 = arith.mulf %1576, %1680 : vector<5x128xf32>
    %1682 = arith.addf %1679, %1681 : vector<5x128xf32>
    %1683 = vector.broadcast %433 : f32 to vector<5x128xf32>
    %1684 = arith.mulf %1639, %1683 : vector<5x128xf32>
    %1685 = arith.addf %1682, %1684 : vector<5x128xf32>
    %1686 = vector.broadcast %442 : f32 to vector<5x128xf32>
    %1687 = arith.addf %1685, %1686 : vector<5x128xf32>
    %1688 = vector.broadcast %398 : f32 to vector<5x128xf32>
    %1689 = arith.mulf %1387, %1688 : vector<5x128xf32>
    %1690 = vector.broadcast %407 : f32 to vector<5x128xf32>
    %1691 = arith.mulf %1450, %1690 : vector<5x128xf32>
    %1692 = arith.addf %1689, %1691 : vector<5x128xf32>
    %1693 = vector.broadcast %416 : f32 to vector<5x128xf32>
    %1694 = arith.mulf %1513, %1693 : vector<5x128xf32>
    %1695 = arith.addf %1692, %1694 : vector<5x128xf32>
    %1696 = vector.broadcast %425 : f32 to vector<5x128xf32>
    %1697 = arith.mulf %1576, %1696 : vector<5x128xf32>
    %1698 = arith.addf %1695, %1697 : vector<5x128xf32>
    %1699 = vector.broadcast %434 : f32 to vector<5x128xf32>
    %1700 = arith.mulf %1639, %1699 : vector<5x128xf32>
    %1701 = arith.addf %1698, %1700 : vector<5x128xf32>
    %1702 = vector.broadcast %443 : f32 to vector<5x128xf32>
    %1703 = arith.addf %1701, %1702 : vector<5x128xf32>
    %1704 = vector.broadcast %399 : f32 to vector<5x128xf32>
    %1705 = arith.mulf %1387, %1704 : vector<5x128xf32>
    %1706 = vector.broadcast %408 : f32 to vector<5x128xf32>
    %1707 = arith.mulf %1450, %1706 : vector<5x128xf32>
    %1708 = arith.addf %1705, %1707 : vector<5x128xf32>
    %1709 = vector.broadcast %417 : f32 to vector<5x128xf32>
    %1710 = arith.mulf %1513, %1709 : vector<5x128xf32>
    %1711 = arith.addf %1708, %1710 : vector<5x128xf32>
    %1712 = vector.broadcast %426 : f32 to vector<5x128xf32>
    %1713 = arith.mulf %1576, %1712 : vector<5x128xf32>
    %1714 = arith.addf %1711, %1713 : vector<5x128xf32>
    %1715 = vector.broadcast %435 : f32 to vector<5x128xf32>
    %1716 = arith.mulf %1639, %1715 : vector<5x128xf32>
    %1717 = arith.addf %1714, %1716 : vector<5x128xf32>
    %1718 = vector.broadcast %444 : f32 to vector<5x128xf32>
    %1719 = arith.addf %1717, %1718 : vector<5x128xf32>
    %1720 = vector.broadcast %400 : f32 to vector<5x128xf32>
    %1721 = arith.mulf %1387, %1720 : vector<5x128xf32>
    %1722 = vector.broadcast %409 : f32 to vector<5x128xf32>
    %1723 = arith.mulf %1450, %1722 : vector<5x128xf32>
    %1724 = arith.addf %1721, %1723 : vector<5x128xf32>
    %1725 = vector.broadcast %418 : f32 to vector<5x128xf32>
    %1726 = arith.mulf %1513, %1725 : vector<5x128xf32>
    %1727 = arith.addf %1724, %1726 : vector<5x128xf32>
    %1728 = vector.broadcast %427 : f32 to vector<5x128xf32>
    %1729 = arith.mulf %1576, %1728 : vector<5x128xf32>
    %1730 = arith.addf %1727, %1729 : vector<5x128xf32>
    %1731 = vector.broadcast %436 : f32 to vector<5x128xf32>
    %1732 = arith.mulf %1639, %1731 : vector<5x128xf32>
    %1733 = arith.addf %1730, %1732 : vector<5x128xf32>
    %1734 = vector.broadcast %445 : f32 to vector<5x128xf32>
    %1735 = arith.addf %1733, %1734 : vector<5x128xf32>
    %1736 = vector.broadcast %401 : f32 to vector<5x128xf32>
    %1737 = arith.mulf %1387, %1736 : vector<5x128xf32>
    %1738 = vector.broadcast %410 : f32 to vector<5x128xf32>
    %1739 = arith.mulf %1450, %1738 : vector<5x128xf32>
    %1740 = arith.addf %1737, %1739 : vector<5x128xf32>
    %1741 = vector.broadcast %419 : f32 to vector<5x128xf32>
    %1742 = arith.mulf %1513, %1741 : vector<5x128xf32>
    %1743 = arith.addf %1740, %1742 : vector<5x128xf32>
    %1744 = vector.broadcast %428 : f32 to vector<5x128xf32>
    %1745 = arith.mulf %1576, %1744 : vector<5x128xf32>
    %1746 = arith.addf %1743, %1745 : vector<5x128xf32>
    %1747 = vector.broadcast %437 : f32 to vector<5x128xf32>
    %1748 = arith.mulf %1639, %1747 : vector<5x128xf32>
    %1749 = arith.addf %1746, %1748 : vector<5x128xf32>
    %1750 = vector.broadcast %446 : f32 to vector<5x128xf32>
    %1751 = arith.addf %1749, %1750 : vector<5x128xf32>
    %1752 = vector.broadcast %402 : f32 to vector<5x128xf32>
    %1753 = arith.mulf %1387, %1752 : vector<5x128xf32>
    %1754 = vector.broadcast %411 : f32 to vector<5x128xf32>
    %1755 = arith.mulf %1450, %1754 : vector<5x128xf32>
    %1756 = arith.addf %1753, %1755 : vector<5x128xf32>
    %1757 = vector.broadcast %420 : f32 to vector<5x128xf32>
    %1758 = arith.mulf %1513, %1757 : vector<5x128xf32>
    %1759 = arith.addf %1756, %1758 : vector<5x128xf32>
    %1760 = vector.broadcast %429 : f32 to vector<5x128xf32>
    %1761 = arith.mulf %1576, %1760 : vector<5x128xf32>
    %1762 = arith.addf %1759, %1761 : vector<5x128xf32>
    %1763 = vector.broadcast %438 : f32 to vector<5x128xf32>
    %1764 = arith.mulf %1639, %1763 : vector<5x128xf32>
    %1765 = arith.addf %1762, %1764 : vector<5x128xf32>
    %1766 = vector.broadcast %447 : f32 to vector<5x128xf32>
    %1767 = arith.addf %1765, %1766 : vector<5x128xf32>
    %1768 = vector.broadcast %403 : f32 to vector<5x128xf32>
    %1769 = arith.mulf %1387, %1768 : vector<5x128xf32>
    %1770 = vector.broadcast %412 : f32 to vector<5x128xf32>
    %1771 = arith.mulf %1450, %1770 : vector<5x128xf32>
    %1772 = arith.addf %1769, %1771 : vector<5x128xf32>
    %1773 = vector.broadcast %421 : f32 to vector<5x128xf32>
    %1774 = arith.mulf %1513, %1773 : vector<5x128xf32>
    %1775 = arith.addf %1772, %1774 : vector<5x128xf32>
    %1776 = vector.broadcast %430 : f32 to vector<5x128xf32>
    %1777 = arith.mulf %1576, %1776 : vector<5x128xf32>
    %1778 = arith.addf %1775, %1777 : vector<5x128xf32>
    %1779 = vector.broadcast %439 : f32 to vector<5x128xf32>
    %1780 = arith.mulf %1639, %1779 : vector<5x128xf32>
    %1781 = arith.addf %1778, %1780 : vector<5x128xf32>
    %1782 = vector.broadcast %448 : f32 to vector<5x128xf32>
    %1783 = arith.addf %1781, %1782 : vector<5x128xf32>
    %1784 = arith.mulf %1703, %452 : vector<5x128xf32>
    %1785 = arith.addf %1655, %1784 : vector<5x128xf32>
    %1786 = arith.mulf %1719, %454 : vector<5x128xf32>
    %1787 = arith.addf %1785, %1786 : vector<5x128xf32>
    %1788 = arith.mulf %1735, %452 : vector<5x128xf32>
    %1789 = arith.addf %1671, %1788 : vector<5x128xf32>
    %1790 = arith.mulf %1751, %454 : vector<5x128xf32>
    %1791 = arith.addf %1789, %1790 : vector<5x128xf32>
    %1792 = arith.addf %1767, %1783 : vector<5x128xf32>
    %1793 = arith.mulf %1792, %452 : vector<5x128xf32>
    %1794 = arith.addf %1687, %1793 : vector<5x128xf32>
    %c0_48 = arith.constant 0 : index
    %c0_49 = arith.constant 0 : index
    %c0_50 = arith.constant 0 : index
    %1795 = vector.load %arg3[%c0_48, %c0_49, %c0_50] : memref<3x5x128xf32, #tpu.memory_space<vmem>>, vector<1x5x128xf32>
    %1796 = vector.shape_cast %1795 : vector<1x5x128xf32> to vector<5x128xf32>
    %1797 = vector.shape_cast %1787 : vector<5x128xf32> to vector<1x5x128xf32>
    tpu.vector_store %arg3[%c0_48, %c0_49, %c0_50], %1797 {strides = array<i32>} : memref<3x5x128xf32, #tpu.memory_space<vmem>>, vector<1x5x128xf32>,
    %c1_51 = arith.constant 1 : index
    %c0_52 = arith.constant 0 : index
    %c0_53 = arith.constant 0 : index
    %1798 = vector.load %arg3[%c1_51, %c0_52, %c0_53] : memref<3x5x128xf32, #tpu.memory_space<vmem>>, vector<1x5x128xf32>
    %1799 = vector.shape_cast %1798 : vector<1x5x128xf32> to vector<5x128xf32>
    %1800 = vector.shape_cast %1791 : vector<5x128xf32> to vector<1x5x128xf32>
    tpu.vector_store %arg3[%c1_51, %c0_52, %c0_53], %1800 {strides = array<i32>} : memref<3x5x128xf32, #tpu.memory_space<vmem>>, vector<1x5x128xf32>,
    %c2_54 = arith.constant 2 : index
    %c0_55 = arith.constant 0 : index
    %c0_56 = arith.constant 0 : index
    %1801 = vector.load %arg3[%c2_54, %c0_55, %c0_56] : memref<3x5x128xf32, #tpu.memory_space<vmem>>, vector<1x5x128xf32>
    %1802 = vector.shape_cast %1801 : vector<1x5x128xf32> to vector<5x128xf32>
    %1803 = vector.shape_cast %1794 : vector<5x128xf32> to vector<1x5x128xf32>
    tpu.vector_store %arg3[%c2_54, %c0_55, %c0_56], %1803 {strides = array<i32>} : memref<3x5x128xf32, #tpu.memory_space<vmem>>, vector<1x5x128xf32>,
    return
  }
  func.func @transform_0(%arg0: i32) -> i32 {
    %c0_i32 = arith.constant 0 : i32
    %c0_i32_0 = arith.constant 0 : i32
    return %c0_i32 : i32
  }
  func.func @transform_1(%arg0: i32) -> (i32, i32, i32) {
    %c0_i32 = arith.constant 0 : i32
    %c0_i32_0 = arith.constant 0 : i32
    %c0_i32_1 = arith.constant 0 : i32
    return %c0_i32, %arg0, %c0_i32_0 : i32, i32, i32
  }
  func.func @transform_2(%arg0: i32) -> (i32, i32, i32) {
    %c0_i32 = arith.constant 0 : i32
    %c0_i32_0 = arith.constant 0 : i32
    %c0_i32_1 = arith.constant 0 : i32
    return %c0_i32, %arg0, %c0_i32_0 : i32, i32, i32
  }
}

</mosaic_0001>

<bundles_post_ra>
// kernel: tpu_custom_call.1
= control target key start
LH: loop header
LB: loop body
LE: loop exit
PB: predicated region body
PF: predicated region fallthrough
CT: control target
= control target key end

     0   :  { %7 = vsyncpa [#allocation3], 0  ;;  %s4255_s0 = inlined_call_operand.vmem [shape: f32[449], index: 0, kind: input, shape index: {}]   ;;  %s4256_s1 = inlined_call_operand.vmem [shape: f32[3,5,128], index: 1, kind: input, shape index: {}]   ;;  %s4257_s2 = inlined_call_operand.vmem [shape: f32[3,5,128], index: 2, kind: output, shape index: {}]  }
   0x1   :  { %s14_s11 = sshll.u32 %s4255_s0, 4  ;;  %s15_s11 = int_to_ptr.vmem [resolvable:$true] %s14_s11 }
   0x2   :  { %s2241_s12 = scalar_lea.vmem %s15_s11, 64  ;;  %p2246_p1 = scmp.lt.s32.totalorder %s15_s11, %s15_s11 }
   0x3   :  { %p2242_p0 = scmp.ne.s32.totalorder %s15_s11, %s2241_s12  ;;  %p2247_p2 = scmp.lt.s32.totalorder %s2241_s12, %s2241_s12 }
   0x5   :  { %p2248_p3 = por %p2247_p2, %p2246_p1 }
   0x7   :  { %p2249_p4 = pnand %p2248_p3, %p2242_p0 }
   0x9   :  { %2252 = shalt.err (!%p2249_p4)
}
   0xa   :  { %s2255_s13 = smov [#allocation2]  }
   0xb   :  { %17 = dma.vmem_to_smem %s15_s11, 64, %s2255_s13, [#allocation3]  }
   0xc   :  { %2253 = dma.done.wait [#allocation3], 64  }
   0xd   :  { %2254 = vsyncadd [#allocation3], 4294967232 }
   0xe   :  { %23 = sfence }
   0xf   :  { %s24_s14 = sld [smem:[#allocation2]]  ;;  %s1788_s15 = sld [smem:[#allocation2 + $0x1]]  ;;  %v473_v0 = vld [vmem:[%s4256_s1] sm:$0x1f] }
  0x10   :  { %s1789_s16 = sld [smem:[#allocation2 + $0x2]]  ;;  %s1790_s17 = sld [smem:[#allocation2 + $0x3]] }
  0x11   :  { %s2274_s18 = sld [smem:[#allocation2 + $0x4]]  ;;  %s1792_s0 = sld [smem:[#allocation2 + $0x5]] }
  0x12   :  { %s1793_s19 = sld [smem:[#allocation2 + $0x6]]  ;;  %s1794_s20 = sld [smem:[#allocation2 + $0x7]] }
  0x13   :  { %s1795_s21 = sld [smem:[#allocation2 + $0x8]]  ;;  %s2276_s22 = sld [smem:[#allocation2 + $0x9]] }
  0x14   :  { %s2281_s25 = sld [smem:[#allocation2 + $0xa]]  ;;  %s2283_s26 = sld [smem:[#allocation2 + $0xb]] }
  0x15   :  { %s2285_s27 = sld [smem:[#allocation2 + $0xc]]  ;;  %s2287_s28 = sld [smem:[#allocation2 + $0xd]]  ;;  %v478_v1 = vstv %s24_s14  ;;  %v483_v2 = vstv %s1788_s15 }
  0x16   :  { %v479_v3 = vmul.f32 %v478_v1, %v473_v0  ;;  %v484_v4 = vmul.f32 %v483_v2, %v473_v0  ;;  %v488_v5 = vstv %s1789_s16  ;;  %s2289_s29 = sld [smem:[#allocation2 + $0xe]]  ;;  %v493_v8 = vstv %s1790_s17  ;;  %s2291_s30 = sld [smem:[#allocation2 + $0xf]] }
  0x17   :  { %v480_v6 = vstv %s1792_s0  ;;  %v489_v7 = vmul.f32 %v488_v5, %v473_v0  ;;  %v494_v12 = vmul.f32 %v493_v8, %v473_v0  ;;  %s2293_s3 = sld [smem:[#allocation2 + $0x14]]  ;;  %s2295_s4 = sld [smem:[#allocation2 + $0x15]]  ;;  %v498_v16 = vstv %s2274_s18 }
  0x18   :  { %v481_v9 = vadd.f32 %v480_v6, %v479_v3  ;;  %v485_v10 = vstv %s1793_s19  ;;  %v490_v11 = vstv %s1794_s20  ;;  %s2298_s5 = sld [smem:[#allocation2 + $0x16]]  ;;  %s2300_s6 = sld [smem:[#allocation2 + $0x17]]  ;;  %v499_v19 = vmul.f32 %v498_v16, %v473_v0 }
  0x19   :  { %v486_v13 = vadd.f32 %v485_v10, %v484_v4  ;;  %v491_v14 = vadd.f32 %v490_v11, %v489_v7  ;;  %v495_v15 = vstv %s1795_s21  ;;  %s2304_s7 = sld [smem:[#allocation2 + $0x18]]  ;;  %s2306_s8 = sld [smem:[#allocation2 + $0x19]]  ;;  %v500_v20 = vstv %s2276_s22 }
  0x1a   :  { %v2302_v17 = vmax.f32 %v481_v9, 0.0  ;;  %v496_v18 = vadd.f32 %v495_v15, %v494_v12  ;;  %v503_v21 = vstv %s2281_s25  ;;  %v520_v22 = vstv %s2283_s26  ;;  %s2313_s9 = sld [smem:[#allocation2 + $0x10]]  ;;  %s2321_s10 = sld [smem:[#allocation2 + $0x1e]] }
  0x1b   :  { %v2311_v23 = vmax.f32 %v486_v13, 0.0  ;;  %v2315_v24 = vmax.f32 %v491_v14, 0.0  ;;  %v537_v26 = vstv %s2285_s27  ;;  %v554_v27 = vstv %s2287_s28  ;;  %s2323_s11 = sld [smem:[#allocation2 + $0x1f]]  ;;  %s2328_s12 = sld [smem:[#allocation2 + $0x20]] }
  0x1c   :  { %v2317_v25 = vmax.f32 %v496_v18, 0.0  ;;  %v501_v28 = vadd.f32 %v500_v20, %v499_v19  ;;  %v504_v29 = vmul.f32 %v503_v21, %v2302_v17  ;;  %v521_v30 = vmul.f32 %v520_v22, %v2302_v17  ;;  %s2330_s13 = sld [smem:[#allocation2 + $0x21]]  ;;  %s2336_s14 = sld [smem:[#allocation2 + $0x22]] }
  0x1d   :  { %v538_v31 = vmul.f32 %v537_v26, %v2302_v17  ;;  %v505_v32 = vstv %s2293_s3  ;;  %v522_v33 = vstv %s2295_s4  ;;  %v555_v34 = vmul.f32 %v554_v27, %v2302_v17  ;;  %s2338_s15 = sld [smem:[#allocation2 + $0x23]]  ;;  %s2348_s16 = sld [smem:[#allocation2 + $0x1a]] }
  0x1e   :  { %v571_v35 = vstv %s2289_s29  ;;  %v506_v36 = vmul.f32 %v505_v32, %v2311_v23  ;;  %v523_v37 = vmul.f32 %v522_v33, %v2311_v23  ;;  %v539_v38 = vstv %s2298_s5  ;;  %s2352_s17 = sld [smem:[#allocation2 + $0x28]]  ;;  %s2354_s18 = sld [smem:[#allocation2 + $0x29]] }
  0x1f   :  { %v556_v39 = vstv %s2300_s6  ;;  %v540_v40 = vmul.f32 %v539_v38, %v2311_v23  ;;  %v572_v42 = vmul.f32 %v571_v35, %v2302_v17  ;;  %v573_v43 = vstv %s2304_s7  ;;  %s2358_s0 = sld [smem:[#allocation2 + $0x2a]]  ;;  %s2360_s19 = sld [smem:[#allocation2 + $0x2b]] }
  0x20   :  { %v557_v41 = vmul.f32 %v556_v39, %v2311_v23  ;;  %v507_v44 = vadd.f32 %v506_v36, %v504_v29  ;;  %v524_v45 = vadd.f32 %v523_v37, %v521_v30  ;;  %v574_v46 = vmul.f32 %v573_v43, %v2311_v23  ;;  %s2365_s20 = sld [smem:[#allocation2 + $0x2c]]  ;;  %s2367_s21 = sld [smem:[#allocation2 + $0x2d]] }
  0x21   :  { %v588_v47 = vstv %s2291_s30  ;;  %v541_v48 = vadd.f32 %v540_v40, %v538_v31  ;;  %v590_v51 = vstv %s2306_s8  ;;  %v508_v52 = vstv %s2321_s10  ;;  %s2380_s22 = sld [smem:[#allocation2 + $0x32]]  ;;  %s2382_s23 = sld [smem:[#allocation2 + $0x33]] }
  0x22   :  { %v558_v49 = vadd.f32 %v557_v41, %v555_v34  ;;  %v589_v50 = vmul.f32 %v588_v47, %v2302_v17  ;;  %v525_v53 = vstv %s2323_s11  ;;  %v575_v54 = vadd.f32 %v574_v46, %v572_v42  ;;  %s2386_s24 = sld [smem:[#allocation2 + $0x34]]  ;;  %s2388_s25 = sld [smem:[#allocation2 + $0x35]] }
  0x23   :  { %v591_v55 = vmul.f32 %v590_v51, %v2311_v23  ;;  %v509_v56 = vmul.f32 %v508_v52, %v2315_v24  ;;  %v526_v57 = vmul.f32 %v525_v53, %v2315_v24  ;;  %v542_v58 = vstv %s2328_s12  ;;  %s2392_s26 = sld [smem:[#allocation2 + $0x36]]  ;;  %s2394_s27 = sld [smem:[#allocation2 + $0x37]] }
  0x24   :  { %v559_v59 = vstv %s2330_s13  ;;  %v2373_v60 = vmax.f32 %v501_v28, 0.0  ;;  %v543_v61 = vmul.f32 %v542_v58, %v2315_v24  ;;  %v576_v63 = vstv %s2336_s14  ;;  %s2400_s28 = sld [smem:[#allocation2 + $0x24]]  ;;  %s2410_s30 = sld [smem:[#allocation2 + $0x3d]] }
  0x25   :  { %v560_v62 = vmul.f32 %v559_v59, %v2315_v24  ;;  %v510_v0 = vadd.f32 %v509_v56, %v507_v44  ;;  %v577_v1 = vmul.f32 %v576_v63, %v2315_v24  ;;  %v592_v2 = vadd.f32 %v591_v55, %v589_v50  ;;  %s2408_s29 = sld [smem:[#allocation2 + $0x3c]]  ;;  %s2413_s3 = sld [smem:[#allocation2 + $0x3e]] }
  0x26   :  { %v593_v3 = vstv %s2338_s15  ;;  %v527_v4 = vadd.f32 %v526_v57, %v524_v45  ;;  %v544_v5 = vadd.f32 %v543_v61, %v541_v48  ;;  %v605_v7 = vstv %s2313_s9  ;;  %s2415_s4 = sld [smem:[#allocation2 + $0x3f]]  ;;  %s2420_s5 = sld [smem:[#allocation2 + $0x11]] }
  0x27   :  { %v594_v6 = vmul.f32 %v593_v3, %v2315_v24  ;;  %v511_v8 = vstv %s2352_s17  ;;  %v528_v9 = vstv %s2354_s18  ;;  %v561_v10 = vadd.f32 %v560_v62, %v558_v49  ;;  %s2422_s6 = sld [smem:[#allocation2 + $0x40]]  ;;  %s2428_s7 = sld [smem:[#allocation2 + $0x1b]] }
  0x28   :  { %v578_v11 = vadd.f32 %v577_v1, %v575_v54  ;;  %v512_v12 = vmul.f32 %v511_v8, %v2317_v25  ;;  %v529_v13 = vmul.f32 %v528_v9, %v2317_v25  ;;  %v545_v14 = vstv %s2358_s0  ;;  %s2430_s8 = sld [smem:[#allocation2 + $0x2e]]  ;;  %s2436_s9 = sld [smem:[#allocation2 + $0x38]] }
  0x29   :  { %v562_v15 = vstv %s2360_s19  ;;  %v546_v16 = vmul.f32 %v545_v14, %v2317_v25  ;;  %v579_v19 = vstv %s2365_s20  ;;  %v606_v20 = vmul.f32 %v605_v7, %v2302_v17  ;;  %s2438_s10 = sld [smem:[#allocation2 + $0x41]]  ;;  %s2442_s11 = sld [smem:[#allocation2 + $0x25]] }
  0x2a   :  { %v563_v18 = vmul.f32 %v562_v15, %v2317_v25  ;;  %v513_v21 = vadd.f32 %v512_v12, %v510_v0  ;;  %v580_v22 = vmul.f32 %v579_v19, %v2317_v25  ;;  %v595_v26 = vadd.f32 %v594_v6, %v592_v2  ;;  %s2444_s12 = sld [smem:[#allocation2 + $0x2f]]  ;;  %s2450_s13 = sld [smem:[#allocation2 + $0x12]] }
  0x2b   :  { %v596_v27 = vstv %s2367_s21  ;;  %v530_v28 = vadd.f32 %v529_v13, %v527_v4  ;;  %v547_v29 = vadd.f32 %v546_v16, %v544_v5  ;;  %v607_v31 = vstv %s2348_s16  ;;  %s2454_s14 = sld [smem:[#allocation2 + $0x1c]]  ;;  %s2456_s15 = sld [smem:[#allocation2 + $0x39]] }
  0x2c   :  { %v564_v30 = vadd.f32 %v563_v18, %v561_v10  ;;  %v514_v32 = vstv %s2380_s22  ;;  %v531_v33 = vstv %s2382_s23  ;;  %v581_v34 = vadd.f32 %v580_v22, %v578_v11  ;;  %s2459_s16 = sld [smem:[#allocation2 + $0x26]]  ;;  %s2461_s17 = sld [smem:[#allocation2 + $0x30]] }
  0x2d   :  { %v597_v35 = vmul.f32 %v596_v27, %v2317_v25  ;;  %v515_v36 = vmul.f32 %v514_v32, %v2373_v60  ;;  %v532_v37 = vmul.f32 %v531_v33, %v2373_v60  ;;  %v548_v38 = vstv %s2386_s24  ;;  %s2463_s18 = sld [smem:[#allocation2 + $0x42]]  ;;  %s2466_s0 = sld [smem:[#allocation2 + $0x13]] }
  0x2e   :  { %v565_v39 = vstv %s2388_s25  ;;  %v549_v40 = vmul.f32 %v548_v38, %v2373_v60  ;;  %v582_v42 = vstv %s2392_s26  ;;  %v608_v43 = vmul.f32 %v607_v31, %v2311_v23  ;;  %s2468_s19 = sld [smem:[#allocation2 + $0x3a]]  ;;  %s2475_s20 = sld [smem:[#allocation2 + $0x1d]] }
  0x2f   :  { %v566_v41 = vmul.f32 %v565_v39, %v2373_v60  ;;  %v516_v44 = vadd.f32 %v515_v36, %v513_v21  ;;  %v533_v45 = vadd.f32 %v532_v37, %v530_v28  ;;  %v583_v46 = vmul.f32 %v582_v42, %v2373_v60  ;;  %s2480_s21 = sld [smem:[#allocation2 + $0x27]]  ;;  %s2482_s22 = sld [smem:[#allocation2 + $0x31]] }
  0x30   :  { %v599_v47 = vstv %s2394_s27  ;;  %v550_v48 = vadd.f32 %v549_v40, %v547_v29  ;;  %v598_v50 = vadd.f32 %v597_v35, %v595_v26  ;;  %v517_v52 = vstv %s2408_s29  ;;  %s2493_s23 = sld [smem:[#allocation2 + $0x3b]]  ;;  %s2501_s25 = sld [smem:[#allocation2 + $0x44]] }
  0x31   :  { %v567_v49 = vadd.f32 %v566_v41, %v564_v30  ;;  %v600_v51 = vmul.f32 %v599_v47, %v2373_v60  ;;  %v534_v53 = vstv %s2410_s30  ;;  %v584_v54 = vadd.f32 %v583_v46, %v581_v34  ;;  %s2495_s24 = sld [smem:[#allocation2 + $0x43]]  ;;  %s2503_s26 = sld [smem:[#allocation2 + $0x46]] }
  0x32   :  { %v610_v55 = vstv %s2400_s28  ;;  %v518_v56 = vadd.f32 %v517_v52, %v516_v44  ;;  %v535_v57 = vadd.f32 %v534_v53, %v533_v45  ;;  %v551_v58 = vstv %s2413_s3  ;;  %s2508_s27 = sld [smem:[#allocation2 + $0x47]]  ;;  %s2510_s28 = sld [smem:[#allocation2 + $0x5a]] }
  0x33   :  { %v568_v59 = vstv %s2415_s4  ;;  %v585_v61 = vstv %s2422_s6  ;;  %v609_v62 = vadd.f32 %v608_v43, %v606_v20  ;;  %v552_v63 = vadd.f32 %v551_v58, %v550_v48  ;;  %s2515_s29 = sld [smem:[#allocation2 + $0x5b]]  ;;  %s2520_s30 = sld [smem:[#allocation2 + $0x48]] }
  0x34   :  { %v569_v0 = vadd.f32 %v568_v59, %v567_v49  ;;  %v601_v1 = vadd.f32 %v600_v51, %v598_v50  ;;  %v611_v2 = vmul.f32 %v610_v55, %v2315_v24  ;;  %v2470_v3 = vmax.f32 %v518_v56, 0.0  ;;  %s2522_s3 = sld [smem:[#allocation2 + $0x5c]]  ;;  %s2529_s4 = sld [smem:[#allocation2 + $0x49]] }
  0x35   :  { %v2472_v4 = vmax.f32 %v535_v57, 0.0  ;;  %v586_v5 = vadd.f32 %v585_v61, %v584_v54  ;;  %v613_v6 = vstv %s2430_s8  ;;  %v602_v7 = vstv %s2438_s10  ;;  %s2538_s6 = sld [smem:[#allocation2 + $0x45]]  ;;  %s2548_s8 = sld [smem:[#allocation2 + $0x5e]] }
  0x36   :  { %v612_v8 = vadd.f32 %v611_v2, %v609_v62  ;;  %v614_v9 = vmul.f32 %v613_v6, %v2317_v25  ;;  %v616_v10 = vstv %s2436_s9  ;;  %v622_v11 = vstv %s2420_s5  ;;  %s2531_s5 = sld [smem:[#allocation2 + $0x5d]]  ;;  %s2552_s9 = sld [smem:[#allocation2 + $0x6e]] }
  0x37   :  { %v624_v12 = vstv %s2428_s7  ;;  %v627_v13 = vstv %s2442_s11  ;;  %v630_v14 = vstv %s2444_s12  ;;  %v2488_v15 = vmax.f32 %v552_v63, 0.0  ;;  %s2543_s7 = sld [smem:[#allocation2 + $0x4a]]  ;;  %s2554_s10 = sld [smem:[#allocation2 + $0x6f]] }
  0x38   :  { %v623_v16 = vmul.f32 %v622_v11, %v2302_v17  ;;  %v625_v18 = vmul.f32 %v624_v12, %v2311_v23  ;;  %v628_v19 = vmul.f32 %v627_v13, %v2315_v24  ;;  %v2497_v20 = vmax.f32 %v569_v0, 0.0  ;;  %s2560_s11 = sld [smem:[#allocation2 + $0x70]]  ;;  %s2562_s12 = sld [smem:[#allocation2 + $0x71]] }
  0x39   :  { %v615_v21 = vadd.f32 %v614_v9, %v612_v8  ;;  %v617_v22 = vmul.f32 %v616_v10, %v2373_v60  ;;  %v639_v26 = vstv %s2450_s13  ;;  %v631_v28 = vmul.f32 %v630_v14, %v2317_v25  ;;  %s2566_s13 = sld [smem:[#allocation2 + $0x4b]] }
  0x3a   :  { %v626_v27 = vadd.f32 %v625_v18, %v623_v16  ;;  %v633_v29 = vstv %s2456_s15  ;;  %v640_v30 = vmul.f32 %v639_v26, %v2302_v17  ;;  %v603_v31 = vadd.f32 %v602_v7, %v601_v1  ;;  %s2574_s15 = sld [smem:[#allocation2 + $0x72]] }
  0x3b   :  { %v641_v32 = vstv %s2454_s14  ;;  %v644_v33 = vstv %s2459_s16  ;;  %v647_v34 = vstv %s2461_s17  ;;  %v619_v35 = vstv %s2463_s18  ;;  %s2572_s14 = sld [smem:[#allocation2 + $0x5f]]  ;;  %s2579_s16 = sld [smem:[#allocation2 + $0x4c]] }
  0x3c   :  { %v629_v36 = vadd.f32 %v628_v19, %v626_v27  ;;  %v642_v37 = vmul.f32 %v641_v32, %v2311_v23  ;;  %v645_v38 = vmul.f32 %v644_v33, %v2315_v24  ;;  %v618_v39 = vadd.f32 %v617_v22, %v615_v21  ;;  %s2581_s17 = sld [smem:[#allocation2 + $0x73]]  ;;  %s2586_s18 = sld [smem:[#allocation2 + $0x60]] }
  0x3d   :  { %v634_v40 = vmul.f32 %v633_v29, %v2373_v60  ;;  %v650_v41 = vstv %s2468_s19  ;;  %v656_v42 = vstv %s2466_s0  ;;  %v648_v45 = vmul.f32 %v647_v34, %v2317_v25  ;;  %s2588_s0 = sld [smem:[#allocation2 + $0x74]]  ;;  %s2601_s19 = sld [smem:[#allocation2 + $0x4d]] }
  0x3e   :  { %v632_v43 = vadd.f32 %v631_v28, %v629_v36  ;;  %v643_v44 = vadd.f32 %v642_v37, %v640_v30  ;;  %v657_v46 = vmul.f32 %v656_v42, %v2302_v17  ;;  %v2533_v47 = vmax.f32 %v586_v5, 0.0 }
  0x3f   :  { %v658_v48 = vstv %s2475_s20  ;;  %v661_v49 = vstv %s2480_s21  ;;  %v664_v50 = vstv %s2482_s22  ;;  %v651_v52 = vmul.f32 %v650_v41, %v2373_v60  ;;  %s2607_s20 = sld [smem:[#allocation2 + $0x61]]  ;;  %s2609_s21 = sld [smem:[#allocation2 + $0x75]] }
  0x40   :  { %v646_v51 = vadd.f32 %v645_v38, %v643_v44  ;;  %v659_v17 = vmul.f32 %v658_v48, %v2311_v23  ;;  %v662_v53 = vmul.f32 %v661_v49, %v2315_v24  ;;  %v2545_v54 = vmax.f32 %v603_v31, 0.0  ;;  %s2613_s22 = sld [smem:[#allocation2 + $0x82]] }
  0x41   :  { %v620_v55 = vadd.f32 %v619_v35, %v618_v39  ;;  %v635_v56 = vadd.f32 %v634_v40, %v632_v43  ;;  %v667_v57 = vstv %s2493_s23  ;;  %v636_v58 = vstv %s2495_s24  ;;  %s2615_s23 = sld [smem:[#allocation2 + $0x83]]  ;;  %s2620_s24 = sld [smem:[#allocation2 + $0x84]] }
  0x42   :  { %v649_v59 = vadd.f32 %v648_v45, %v646_v51  ;;  %v660_v61 = vadd.f32 %v659_v17, %v657_v46  ;;  %v665_v62 = vmul.f32 %v664_v50, %v2317_v25  ;;  %v653_v23 = vstv %s2501_s25  ;;  %s2622_s25 = sld [smem:[#allocation2 + $0x85]] }
  0x43   :  { %v673_v24 = vstv %s2503_s26  ;;  %v675_v63 = vstv %s2510_s28  ;;  %v705_v0 = vstv %s2508_s27  ;;  %v668_v5 = vmul.f32 %v667_v57, %v2373_v60  ;;  %s2628_s26 = sld [smem:[#allocation2 + $0x86]]  ;;  %s2630_s27 = sld [smem:[#allocation2 + $0x87]] }
  0x44   :  { %v652_v1 = vadd.f32 %v651_v52, %v649_v59  ;;  %v663_v2 = vadd.f32 %v662_v53, %v660_v61  ;;  %v707_v6 = vstv %s2515_s29  ;;  %v2568_v25 = vmax.f32 %v620_v55, 0.0  ;;  %s2636_s28 = sld [smem:[#allocation2 + $0x88]]  ;;  %s2643_s29 = sld [smem:[#allocation2 + $0x4e]] }
  0x45   :  { %v637_v7 = vadd.f32 %v636_v58, %v635_v56  ;;  %v737_v8 = vstv %s2520_s30  ;;  %v739_v9 = vstv %s2522_s3  ;;  %v674_v11 = vmul.f32 %v673_v24, %v2470_v3  ;;  %s2645_s30 = sld [smem:[#allocation2 + $0x62]]  ;;  %s2648_s3 = sld [smem:[#allocation2 + $0x76]] }
  0x46   :  { %v666_v10 = vadd.f32 %v665_v62, %v663_v2  ;;  %v676_v60 = vmul.f32 %v675_v63, %v2472_v4  ;;  %v706_v12 = vmul.f32 %v705_v0, %v2470_v3  ;;  %v654_v13 = vadd.f32 %v653_v23, %v652_v1 }
  0x47   :  { %v708_v14 = vmul.f32 %v707_v6, %v2472_v4  ;;  %v769_v16 = vstv %s2529_s4  ;;  %v771_v18 = vstv %s2531_s5  ;;  %v670_v21 = vstv %s2538_s6  ;;  %s2650_s4 = sld [smem:[#allocation2 + $0x89]]  ;;  %s2660_s5 = sld [smem:[#allocation2 + $0x4f]] }
  0x48   :  { %v669_v19 = vadd.f32 %v668_v5, %v666_v10  ;;  %v738_v22 = vmul.f32 %v737_v8, %v2470_v3  ;;  %v740_v26 = vmul.f32 %v739_v9, %v2472_v4  ;;  %v678_v27 = vstv %s2552_s9  ;;  %s2662_s6 = sld [smem:[#allocation2 + $0x63]]  ;;  %s2675_s9 = sld [smem:[#allocation2 + $0x96]] }
  0x49   :  { %v770_v28 = vmul.f32 %v769_v16, %v2470_v3  ;;  %v772_v29 = vmul.f32 %v771_v18, %v2472_v4  ;;  %v801_v30 = vstv %s2543_s7  ;;  %v2597_v31 = vmax.f32 %v637_v7, 0.0  ;;  %s2668_s7 = sld [smem:[#allocation2 + $0x77]] }
  0x4a   :  { %v677_v32 = vadd.f32 %v676_v60, %v674_v11  ;;  %v710_v33 = vstv %s2554_s10  ;;  %v742_v34 = vstv %s2560_s11  ;;  %v2603_v35 = vmax.f32 %v654_v13, 0.0  ;;  %s2677_s10 = sld [smem:[#allocation2 + $0x97]]  ;;  %s2682_s11 = sld [smem:[#allocation2 + $0x98]] }
  0x4b   :  { %v709_v36 = vadd.f32 %v708_v14, %v706_v12  ;;  %v774_v37 = vstv %s2562_s12  ;;  %v803_v38 = vstv %s2548_s8  ;;  %v671_v39 = vadd.f32 %v670_v21, %v669_v19  ;;  %s2670_s8 = sld [smem:[#allocation2 + $0x8a]]  ;;  %s2684_s12 = sld [smem:[#allocation2 + $0x99]] }
  0x4c   :  { %v679_v40 = vmul.f32 %v678_v27, %v2488_v15  ;;  %v741_v41 = vadd.f32 %v740_v26, %v738_v22  ;;  %v802_v42 = vmul.f32 %v801_v30, %v2470_v3  ;;  %v711_v43 = vmul.f32 %v710_v33, %v2488_v15 }
  0x4d   :  { %v743_v44 = vmul.f32 %v742_v34, %v2488_v15  ;;  %v773_v45 = vadd.f32 %v772_v29, %v770_v28  ;;  %v833_v46 = vstv %s2566_s13  ;;  %v775_v48 = vmul.f32 %v774_v37, %v2488_v15  ;;  %s2689_s13 = sld [smem:[#allocation2 + $0x9a]] }
  0x4e   :  { %v804_v49 = vmul.f32 %v803_v38, %v2472_v4  ;;  %v806_v50 = vstv %s2574_s15  ;;  %v835_v51 = vstv %s2572_s14  ;;  %v834_v52 = vmul.f32 %v833_v46, %v2470_v3  ;;  %s2691_s14 = sld [smem:[#allocation2 + $0x9b]]  ;;  %s2695_s15 = sld [smem:[#allocation2 + $0x9c]] }
  0x4f   :  { %v836_v17 = vmul.f32 %v835_v51, %v2472_v4  ;;  %v838_v53 = vstv %s2581_s17  ;;  %v865_v55 = vstv %s2579_s16  ;;  %v2638_v56 = vmax.f32 %v671_v39, 0.0  ;;  %s2697_s16 = sld [smem:[#allocation2 + $0x9d]]  ;;  %s2702_s17 = sld [smem:[#allocation2 + $0x9e]] }
  0x50   :  { %v866_v57 = vmul.f32 %v865_v55, %v2470_v3  ;;  %v867_v58 = vstv %s2586_s18  ;;  %v870_v59 = vstv %s2588_s0  ;;  %v680_v61 = vadd.f32 %v679_v40, %v677_v32  ;;  %s2711_s18 = sld [smem:[#allocation2 + $0x8b]]  ;;  %s2717_s0 = sld [smem:[#allocation2 + $0x9f]] }
  0x51   :  { %v712_v62 = vadd.f32 %v711_v43, %v709_v36  ;;  %v744_v23 = vadd.f32 %v743_v44, %v741_v41  ;;  %v868_v24 = vmul.f32 %v867_v58, %v2472_v4  ;;  %v776_v63 = vadd.f32 %v775_v48, %v773_v45 }
  0x52   :  { %v805_v0 = vadd.f32 %v804_v49, %v802_v42  ;;  %v807_v1 = vmul.f32 %v806_v50, %v2488_v15  ;;  %v839_v2 = vmul.f32 %v838_v53, %v2488_v15  ;;  %v681_v5 = vstv %s2613_s22  ;;  %s2735_s22 = sld [smem:[#allocation2 + $0xac]] }
  0x53   :  { %v713_v6 = vstv %s2615_s23  ;;  %v837_v7 = vadd.f32 %v836_v17, %v834_v52  ;;  %v871_v8 = vmul.f32 %v870_v59, %v2488_v15  ;;  %v745_v9 = vstv %s2620_s24  ;;  %s2737_s23 = sld [smem:[#allocation2 + $0xad]]  ;;  %s2743_s24 = sld [smem:[#allocation2 + $0xae]] }
  0x54   :  { %v777_v10 = vstv %s2622_s25  ;;  %v869_v11 = vadd.f32 %v868_v24, %v866_v57  ;;  %v897_v60 = vstv %s2601_s19  ;;  %v682_v12 = vmul.f32 %v681_v5, %v2497_v20  ;;  %s2722_s19 = sld [smem:[#allocation2 + $0x50]]  ;;  %s2745_s25 = sld [smem:[#allocation2 + $0xaf]] }
  0x55   :  { %v714_v13 = vmul.f32 %v713_v6, %v2497_v20  ;;  %v809_v14 = vstv %s2628_s26  ;;  %v841_v16 = vstv %s2630_s27  ;;  %v746_v18 = vmul.f32 %v745_v9, %v2497_v20  ;;  %s2749_s26 = sld [smem:[#allocation2 + $0xb0]]  ;;  %s2751_s27 = sld [smem:[#allocation2 + $0xb1]] }
  0x56   :  { %v808_v19 = vadd.f32 %v807_v1, %v805_v0  ;;  %v899_v21 = vstv %s2607_s20  ;;  %v902_v22 = vstv %s2609_s21  ;;  %v778_v26 = vmul.f32 %v777_v10, %v2497_v20  ;;  %s2727_s20 = sld [smem:[#allocation2 + $0xaa]]  ;;  %s2729_s21 = sld [smem:[#allocation2 + $0xab]] }
  0x57   :  { %v810_v27 = vmul.f32 %v809_v14, %v2497_v20  ;;  %v840_v28 = vadd.f32 %v839_v2, %v837_v7  ;;  %v873_v29 = vstv %s2636_s28  ;;  %v842_v30 = vmul.f32 %v841_v16, %v2497_v20  ;;  %s2755_s28 = sld [smem:[#allocation2 + $0x64]] }
  0x58   :  { %v872_v32 = vadd.f32 %v871_v8, %v869_v11  ;;  %v874_v33 = vmul.f32 %v873_v29, %v2497_v20  ;;  %v898_v34 = vmul.f32 %v897_v60, %v2470_v3  ;;  %v683_v36 = vadd.f32 %v682_v12, %v680_v61 }
  0x59   :  { %v715_v37 = vadd.f32 %v714_v13, %v712_v62  ;;  %v900_v38 = vmul.f32 %v899_v21, %v2472_v4  ;;  %v929_v39 = vstv %s2643_s29  ;;  %v747_v40 = vadd.f32 %v746_v18, %v744_v23  ;;  %s2757_s29 = sld [smem:[#allocation2 + $0xb2]] }
  0x5a   :  { %v905_v41 = vstv %s2650_s4  ;;  %v931_v42 = vstv %s2645_s30  ;;  %v934_v43 = vstv %s2648_s3  ;;  %v779_v44 = vadd.f32 %v778_v26, %v776_v63  ;;  %s2759_s30 = sld [smem:[#allocation2 + $0xb3]]  ;;  %s2764_s3 = sld [smem:[#allocation2 + $0x78]] }
  0x5b   :  { %v811_v45 = vadd.f32 %v810_v27, %v808_v19  ;;  %v901_v46 = vadd.f32 %v900_v38, %v898_v34  ;;  %v903_v48 = vmul.f32 %v902_v22, %v2488_v15  ;;  %v843_v49 = vadd.f32 %v842_v30, %v840_v28  ;;  %s2771_s4 = sld [smem:[#allocation2 + $0x8c]] }
  0x5c   :  { %v875_v50 = vadd.f32 %v874_v33, %v872_v32  ;;  %v930_v51 = vmul.f32 %v929_v39, %v2470_v3  ;;  %v932_v52 = vmul.f32 %v931_v42, %v2472_v4  ;;  %v684_v17 = vstv %s2675_s9  ;;  %s2795_s9 = sld [smem:[#allocation2 + $0xc1]] }
  0x5d   :  { %v716_v53 = vstv %s2677_s10  ;;  %v906_v55 = vmul.f32 %v905_v41, %v2497_v20  ;;  %v935_v57 = vmul.f32 %v934_v43, %v2488_v15  ;;  %v748_v58 = vstv %s2682_s11  ;;  %s2800_s10 = sld [smem:[#allocation2 + $0xc2]]  ;;  %s2802_s11 = sld [smem:[#allocation2 + $0xc3]] }
  0x5e   :  { %v780_v59 = vstv %s2684_s12  ;;  %v937_v61 = vstv %s2670_s8  ;;  %v961_v62 = vstv %s2660_s5  ;;  %v685_v23 = vmul.f32 %v684_v17, %v2533_v47  ;;  %s2777_s5 = sld [smem:[#allocation2 + $0xa0]]  ;;  %s2807_s12 = sld [smem:[#allocation2 + $0xc4]] }
  0x5f   :  { %v812_v24 = vstv %s2689_s13  ;;  %v844_v63 = vstv %s2691_s14  ;;  %v904_v0 = vadd.f32 %v903_v48, %v901_v46  ;;  %v717_v1 = vmul.f32 %v716_v53, %v2533_v47  ;;  %s2793_s8 = sld [smem:[#allocation2 + $0xc0]]  ;;  %s2809_s13 = sld [smem:[#allocation2 + $0xc5]] }
  0x60   :  { %v749_v2 = vmul.f32 %v748_v58, %v2533_v47  ;;  %v933_v5 = vadd.f32 %v932_v52, %v930_v51  ;;  %v963_v6 = vstv %s2662_s6  ;;  %v781_v7 = vmul.f32 %v780_v59, %v2533_v47  ;;  %s2785_s6 = sld [smem:[#allocation2 + $0xbe]] }
  0x61   :  { %v813_v8 = vmul.f32 %v812_v24, %v2533_v47  ;;  %v845_v9 = vmul.f32 %v844_v63, %v2533_v47  ;;  %v876_v10 = vstv %s2695_s15  ;;  %v908_v60 = vstv %s2697_s16  ;;  %s2812_s14 = sld [smem:[#allocation2 + $0xc6]]  ;;  %s2816_s15 = sld [smem:[#allocation2 + $0xc7]] }
  0x62   :  { %v877_v11 = vmul.f32 %v876_v10, %v2533_v47  ;;  %v938_v12 = vmul.f32 %v937_v61, %v2497_v20  ;;  %v966_v13 = vstv %s2668_s7  ;;  %v686_v14 = vadd.f32 %v685_v23, %v683_v36  ;;  %s2787_s7 = sld [smem:[#allocation2 + $0xbf]]  ;;  %s2823_s16 = sld [smem:[#allocation2 + $0xb4]] }
  0x63   :  { %v907_v16 = vadd.f32 %v906_v55, %v904_v0  ;;  %v909_v18 = vmul.f32 %v908_v60, %v2533_v47  ;;  %v940_v19 = vstv %s2702_s17  ;;  %v718_v21 = vadd.f32 %v717_v1, %v715_v37  ;;  %s2831_s17 = sld [smem:[#allocation2 + $0x51]] }
  0x64   :  { %v936_v22 = vadd.f32 %v935_v57, %v933_v5  ;;  %v962_v26 = vmul.f32 %v961_v62, %v2470_v3  ;;  %v964_v27 = vmul.f32 %v963_v6, %v2472_v4  ;;  %v750_v28 = vadd.f32 %v749_v2, %v747_v40 }
  0x65   :  { %v782_v29 = vadd.f32 %v781_v7, %v779_v44  ;;  %v814_v30 = vadd.f32 %v813_v8, %v811_v45  ;;  %v846_v32 = vadd.f32 %v845_v9, %v843_v49  ;;  %v878_v33 = vadd.f32 %v877_v11, %v875_v50 }
  0x66   :  { %v941_v34 = vmul.f32 %v940_v19, %v2533_v47  ;;  %v967_v36 = vmul.f32 %v966_v13, %v2488_v15  ;;  %v969_v37 = vstv %s2711_s18  ;;  %v687_v38 = vstv %s2727_s20  ;;  %s2833_s18 = sld [smem:[#allocation2 + $0xc8]]  ;;  %s2846_s20 = sld [smem:[#allocation2 + $0xd4]] }
  0x67   :  { %v719_v39 = vstv %s2729_s21  ;;  %v910_v41 = vadd.f32 %v909_v18, %v907_v16  ;;  %v972_v40 = vstv %s2717_s0  ;;  %v751_v42 = vstv %s2735_s22  ;;  %s2838_s0 = sld [smem:[#allocation2 + $0xd2]]  ;;  %s2848_s21 = sld [smem:[#allocation2 + $0xd5]] }
  0x68   :  { %v783_v43 = vstv %s2737_s23  ;;  %v939_v44 = vadd.f32 %v938_v12, %v936_v22  ;;  %v965_v45 = vadd.f32 %v964_v27, %v962_v26  ;;  %v688_v46 = vmul.f32 %v687_v38, %v2545_v54  ;;  %s2854_s22 = sld [smem:[#allocation2 + $0xd6]]  ;;  %s2856_s23 = sld [smem:[#allocation2 + $0xd7]] }
  0x69   :  { %v815_v48 = vstv %s2743_s24  ;;  %v847_v49 = vstv %s2745_s25  ;;  %v970_v50 = vmul.f32 %v969_v37, %v2497_v20  ;;  %v720_v51 = vmul.f32 %v719_v39, %v2545_v54  ;;  %s2860_s24 = sld [smem:[#allocation2 + $0xd8]]  ;;  %s2862_s25 = sld [smem:[#allocation2 + $0xd9]] }
  0x6a   :  { %v752_v52 = vmul.f32 %v751_v42, %v2545_v54  ;;  %v2782_v17 = vmul.f32 %v972_v40, %v2533_v47  ;;  %v993_v53 = vstv %s2722_s19  ;;  %v784_v55 = vmul.f32 %v783_v43, %v2545_v54  ;;  %s2840_s19 = sld [smem:[#allocation2 + $0xd3]] }
  0x6b   :  { %v816_v57 = vmul.f32 %v815_v48, %v2545_v54  ;;  %v879_v58 = vstv %s2749_s26  ;;  %v911_v59 = vstv %s2751_s27  ;;  %v848_v61 = vmul.f32 %v847_v49, %v2545_v54  ;;  %s2866_s26 = sld [smem:[#allocation2 + $0xda]]  ;;  %s2868_s27 = sld [smem:[#allocation2 + $0xdb]] }
  0x6c   :  { %v880_v62 = vmul.f32 %v879_v58, %v2545_v54  ;;  %v912_v23 = vmul.f32 %v911_v59, %v2545_v54  ;;  %v942_v24 = vadd.f32 %v941_v34, %v939_v44  ;;  %v689_v63 = vadd.f32 %v688_v46, %v686_v14 }
  0x6d   :  { %v943_v0 = vstv %s2757_s29  ;;  %v994_v1 = vmul.f32 %v993_v53, %v2470_v3  ;;  %v995_v2 = vstv %s2755_s28  ;;  %v721_v5 = vadd.f32 %v720_v51, %v718_v21  ;;  %s2871_s28 = sld [smem:[#allocation2 + $0xdc]]  ;;  %s2877_s29 = sld [smem:[#allocation2 + $0x65]] }
  0x6e   :  { %v753_v6 = vadd.f32 %v752_v52, %v750_v28  ;;  %v968_v7 = vadd.f32 %v967_v36, %v965_v45  ;;  %v975_v8 = vstv %s2759_s30  ;;  %v785_v9 = vadd.f32 %v784_v55, %v782_v29  ;;  %s2885_s30 = sld [smem:[#allocation2 + $0x79]] }
  0x6f   :  { %v817_v10 = vadd.f32 %v816_v57, %v814_v30  ;;  %v996_v11 = vmul.f32 %v995_v2, %v2472_v4  ;;  %v998_v60 = vstv %s2764_s3  ;;  %v849_v12 = vadd.f32 %v848_v61, %v846_v32  ;;  %s2891_s3 = sld [smem:[#allocation2 + $0xe6]] }
  0x70   :  { %v881_v13 = vadd.f32 %v880_v62, %v878_v33  ;;  %v913_v14 = vadd.f32 %v912_v23, %v910_v41  ;;  %v944_v16 = vmul.f32 %v943_v0, %v2545_v54  ;;  %v690_v18 = vstv %s2785_s6  ;;  %s2901_s6 = sld [smem:[#allocation2 + $0xe9]] }
  0x71   :  { %v722_v19 = vstv %s2787_s7  ;;  %v976_v21 = vmul.f32 %v975_v8, %v2545_v54  ;;  %v1001_v22 = vstv %s2771_s4  ;;  %v754_v26 = vstv %s2793_s8  ;;  %s2893_s4 = sld [smem:[#allocation2 + $0xe7]]  ;;  %s2906_s7 = sld [smem:[#allocation2 + $0xea]] }
  0x72   :  { %v786_v27 = vstv %s2795_s9  ;;  %v971_v28 = vadd.f32 %v970_v50, %v968_v7  ;;  %v999_v29 = vmul.f32 %v998_v60, %v2488_v15  ;;  %v691_v30 = vmul.f32 %v690_v18, %v2568_v25  ;;  %s2908_s8 = sld [smem:[#allocation2 + $0xeb]]  ;;  %s2913_s9 = sld [smem:[#allocation2 + $0xec]] }
  0x73   :  { %v818_v32 = vstv %s2800_s10  ;;  %v850_v33 = vstv %s2802_s11  ;;  %v997_v34 = vadd.f32 %v996_v11, %v994_v1  ;;  %v723_v36 = vmul.f32 %v722_v19, %v2568_v25  ;;  %s2915_s10 = sld [smem:[#allocation2 + $0xed]]  ;;  %s2919_s11 = sld [smem:[#allocation2 + $0xee]] }
  0x74   :  { %v755_v37 = vmul.f32 %v754_v26, %v2568_v25  ;;  %v945_v38 = vadd.f32 %v944_v16, %v942_v24  ;;  %v1002_v39 = vmul.f32 %v1001_v22, %v2497_v20  ;;  %v787_v41 = vmul.f32 %v786_v27, %v2568_v25 }
  0x75   :  { %v819_v40 = vmul.f32 %v818_v32, %v2568_v25  ;;  %v882_v42 = vstv %s2807_s12  ;;  %v914_v43 = vstv %s2809_s13  ;;  %v851_v44 = vmul.f32 %v850_v33, %v2568_v25  ;;  %s2921_s12 = sld [smem:[#allocation2 + $0xef]]  ;;  %s2923_s13 = sld [smem:[#allocation2 + $0xf0]] }
  0x76   :  { %v883_v45 = vmul.f32 %v882_v42, %v2568_v25  ;;  %v974_v46 = vadd.f32 %v2782_v17, %v971_v28  ;;  %v1004_v48 = vstv %s2777_s5  ;;  %v692_v49 = vadd.f32 %v691_v30, %v689_v63  ;;  %s2899_s5 = sld [smem:[#allocation2 + $0xe8]] }
  0x77   :  { %v915_v50 = vmul.f32 %v914_v43, %v2568_v25  ;;  %v946_v51 = vstv %s2812_s14  ;;  %v1000_v52 = vadd.f32 %v999_v29, %v997_v34  ;;  %v724_v53 = vadd.f32 %v723_v36, %v721_v5  ;;  %s2930_s14 = sld [smem:[#allocation2 + $0x8d]] }
  0x78   :  { %v756_v55 = vadd.f32 %v755_v37, %v753_v6  ;;  %v947_v17 = vmul.f32 %v946_v51, %v2568_v25  ;;  %v978_v57 = vstv %s2816_s15  ;;  %v788_v58 = vadd.f32 %v787_v41, %v785_v9  ;;  %s2937_s15 = sld [smem:[#allocation2 + $0xa1]] }
  0x79   :  { %v820_v59 = vadd.f32 %v819_v40, %v817_v10  ;;  %v1003_v61 = vadd.f32 %v1002_v39, %v1000_v52  ;;  %v1005_v62 = vmul.f32 %v1004_v48, %v2533_v47  ;;  %v852_v23 = vadd.f32 %v851_v44, %v849_v12 }
  0x7a   :  { %v884_v24 = vadd.f32 %v883_v45, %v881_v13  ;;  %v977_v63 = vadd.f32 %v976_v21, %v974_v46  ;;  %v1007_v0 = vstv %s2823_s16  ;;  %v693_v1 = vstv %s2838_s0  ;;  %s2943_s16 = sld [smem:[#allocation2 + $0xb5]]  ;;  %s2957_s0 = sld [smem:[#allocation2 + $0xfc]] }
  0x7b   :  { %v725_v2 = vstv %s2840_s19  ;;  %v916_v5 = vadd.f32 %v915_v50, %v913_v14  ;;  %v979_v6 = vmul.f32 %v978_v57, %v2568_v25  ;;  %v757_v7 = vstv %s2846_s20  ;;  %s2959_s19 = sld [smem:[#allocation2 + $0xfd]]  ;;  %s2963_s20 = sld [smem:[#allocation2 + $0xfe]] }
  0x7c   :  { %v789_v8 = vstv %s2848_s21  ;;  %v948_v9 = vadd.f32 %v947_v17, %v945_v38  ;;  %v1010_v10 = vstv %s2833_s18  ;;  %v821_v11 = vstv %s2854_s22  ;;  %s2951_s18 = sld [smem:[#allocation2 + $0xfb]]  ;;  %s2965_s21 = sld [smem:[#allocation2 + $0xff]] }
  0x7d   :  { %v853_v60 = vstv %s2856_s23  ;;  %v1006_v16 = vadd.f32 %v1005_v62, %v1003_v61  ;;  %v1008_v12 = vmul.f32 %v1007_v0, %v2545_v54  ;;  %v694_v13 = vmul.f32 %v693_v1, %v2597_v31  ;;  %s2970_s22 = sld [smem:[#allocation2 + $0x100]]  ;;  %s2972_s23 = sld [smem:[#allocation2 + $0x101]] }
  0x7e   :  { %v726_v14 = vmul.f32 %v725_v2, %v2597_v31  ;;  %v758_v18 = vmul.f32 %v757_v7, %v2597_v31  ;;  %v790_v19 = vmul.f32 %v789_v8, %v2597_v31  ;;  %v822_v21 = vmul.f32 %v821_v11, %v2597_v31 }
  0x7f   :  { %v854_v22 = vmul.f32 %v853_v60, %v2597_v31  ;;  %v885_v26 = vstv %s2860_s24  ;;  %v917_v27 = vstv %s2862_s25  ;;  %v980_v30 = vadd.f32 %v979_v6, %v977_v63  ;;  %s2975_s24 = sld [smem:[#allocation2 + $0x102]]  ;;  %s2977_s25 = sld [smem:[#allocation2 + $0x103]] }
  0x80   :  { %v886_v28 = vmul.f32 %v885_v26, %v2597_v31  ;;  %v918_v29 = vmul.f32 %v917_v27, %v2597_v31  ;;  %v1011_v32 = vmul.f32 %v1010_v10, %v2568_v25  ;;  %v949_v33 = vstv %s2866_s26  ;;  %s2981_s26 = sld [smem:[#allocation2 + $0x104]] }
  0x81   :  { %v981_v34 = vstv %s2868_s27  ;;  %v1009_v36 = vadd.f32 %v1008_v12, %v1006_v16  ;;  %v1025_v37 = vstv %s2831_s17  ;;  %v695_v38 = vadd.f32 %v694_v13, %v692_v49  ;;  %s2949_s17 = sld [smem:[#allocation2 + $0xfa]]  ;;  %s2988_s27 = sld [smem:[#allocation2 + $0xc9]] }
  0x82   :  { %v727_v39 = vadd.f32 %v726_v14, %v724_v53  ;;  %v950_v41 = vmul.f32 %v949_v33, %v2597_v31  ;;  %v1013_v40 = vstv %s2871_s28  ;;  %v759_v42 = vadd.f32 %v758_v18, %v756_v55  ;;  %s3001_s28 = sld [smem:[#allocation2 + $0xdd]] }
  0x83   :  { %v791_v43 = vadd.f32 %v790_v19, %v788_v58  ;;  %v823_v44 = vadd.f32 %v822_v21, %v820_v59  ;;  %v855_v45 = vadd.f32 %v854_v22, %v852_v23  ;;  %v887_v46 = vadd.f32 %v886_v28, %v884_v24 }
  0x84   :  { %v919_v48 = vadd.f32 %v918_v29, %v916_v5  ;;  %v982_v49 = vmul.f32 %v981_v34, %v2597_v31  ;;  %v1027_v50 = vstv %s2877_s29  ;;  %v696_v51 = vstv %s2891_s3  ;;  %s3007_s29 = sld [smem:[#allocation2 + $0x10e]]  ;;  %s3013_s3 = sld [smem:[#allocation2 + $0x110]] }
  0x85   :  { %v728_v52 = vstv %s2893_s4  ;;  %v1012_v53 = vadd.f32 %v1011_v32, %v1009_v36  ;;  %v1014_v17 = vmul.f32 %v1013_v40, %v2597_v31  ;;  %v760_v55 = vstv %s2899_s5  ;;  %s3015_s4 = sld [smem:[#allocation2 + $0x111]]  ;;  %s3019_s5 = sld [smem:[#allocation2 + $0x112]] }
  0x86   :  { %v792_v57 = vstv %s2901_s6  ;;  %v2934_v58 = vadd.f32 %v950_v41, %v948_v9  ;;  %v1026_v59 = vmul.f32 %v1025_v37, %v2470_v3  ;;  %v697_v61 = vmul.f32 %v696_v51, %v2603_v35  ;;  %s3021_s6 = sld [smem:[#allocation2 + $0x113]] }
  0x87   :  { %v824_v62 = vstv %s2906_s7  ;;  %v856_v23 = vstv %s2908_s8  ;;  %v1028_v24 = vmul.f32 %v1027_v50, %v2472_v4  ;;  %v729_v63 = vmul.f32 %v728_v52, %v2603_v35  ;;  %s3026_s7 = sld [smem:[#allocation2 + $0x114]]  ;;  %s3029_s8 = sld [smem:[#allocation2 + $0x115]] }
  0x88   :  { %v761_v0 = vmul.f32 %v760_v55, %v2603_v35  ;;  %v793_v1 = vmul.f32 %v792_v57, %v2603_v35  ;;  %v1030_v2 = vstv %s2885_s30  ;;  %v825_v5 = vmul.f32 %v824_v62, %v2603_v35  ;;  %s3009_s30 = sld [smem:[#allocation2 + $0x10f]] }
  0x89   :  { %v857_v6 = vmul.f32 %v856_v23, %v2603_v35  ;;  %v888_v7 = vstv %s2913_s9  ;;  %v920_v8 = vstv %s2915_s10  ;;  %v983_v11 = vadd.f32 %v982_v49, %v980_v30  ;;  %s3031_s9 = sld [smem:[#allocation2 + $0x116]]  ;;  %s3035_s10 = sld [smem:[#allocation2 + $0x117]] }
  0x8a   :  { %v889_v9 = vmul.f32 %v888_v7, %v2603_v35  ;;  %v921_v10 = vmul.f32 %v920_v8, %v2603_v35  ;;  %v1015_v60 = vadd.f32 %v1014_v17, %v1012_v53  ;;  %v698_v16 = vadd.f32 %v697_v61, %v695_v38 }
  0x8b   :  { %v952_v12 = vstv %s2919_s11  ;;  %v984_v13 = vstv %s2921_s12  ;;  %v1031_v14 = vmul.f32 %v1030_v2, %v2488_v15  ;;  %v730_v18 = vadd.f32 %v729_v63, %v727_v39  ;;  %s3037_s11 = sld [smem:[#allocation2 + $0x118]]  ;;  %s3043_s12 = sld [smem:[#allocation2 + $0xf1]] }
  0x8c   :  { %v762_v19 = vadd.f32 %v761_v0, %v759_v42  ;;  %v794_v21 = vadd.f32 %v793_v1, %v791_v43  ;;  %v1016_v22 = vstv %s2923_s13  ;;  %v826_v26 = vadd.f32 %v825_v5, %v823_v44  ;;  %s3049_s13 = sld [smem:[#allocation2 + $0x105]] }
  0x8d   :  { %v858_v27 = vadd.f32 %v857_v6, %v855_v45  ;;  %v2979_v28 = vadd.f32 %v889_v9, %v887_v46  ;;  %v1029_v29 = vadd.f32 %v1028_v24, %v1026_v59  ;;  %v2983_v30 = vadd.f32 %v921_v10, %v919_v48 }
  0x8e   :  { %v953_v32 = vmul.f32 %v952_v12, %v2603_v35  ;;  %v985_v33 = vmul.f32 %v984_v13, %v2603_v35  ;;  %v1033_v34 = vstv %s2930_s14  ;;  %v699_v36 = vstv %s2949_s17  ;;  %s3053_s14 = sld [smem:[#allocation2 + $0x52]]  ;;  %s3061_s17 = sld [smem:[#allocation2 + $0x8e]] }
  0x8f   :  { %v731_v37 = vstv %s2951_s18  ;;  %v1017_v38 = vmul.f32 %v1016_v22, %v2603_v35  ;;  %v1036_v39 = vstv %s2937_s15  ;;  %v700_v41 = vmul.f32 %v699_v36, %v2638_v56  ;;  %s3055_s15 = sld [smem:[#allocation2 + $0x66]]  ;;  %s3066_s18 = sld [smem:[#allocation2 + $0xa2]] }
  0x90   :  { %v732_v40 = vmul.f32 %v731_v37, %v2638_v56  ;;  %v763_v42 = vstv %s2957_s0  ;;  %v795_v43 = vstv %s2959_s19  ;;  %v827_v44 = vstv %s2963_s20  ;;  %s3068_s0 = sld [smem:[#allocation2 + $0xb6]]  ;;  %s3075_s19 = sld [smem:[#allocation2 + $0xca]] }
  0x91   :  { %v859_v45 = vstv %s2965_s21  ;;  %v1032_v46 = vadd.f32 %v1031_v14, %v1029_v29  ;;  %v1034_v48 = vmul.f32 %v1033_v34, %v2497_v20  ;;  %v764_v49 = vmul.f32 %v763_v42, %v2638_v56  ;;  %s3081_s20 = sld [smem:[#allocation2 + $0xde]]  ;;  %s3083_s21 = sld [smem:[#allocation2 + $0x119]] }
  0x92   :  { %v796_v50 = vmul.f32 %v795_v43, %v2638_v56  ;;  %v828_v51 = vmul.f32 %v827_v44, %v2638_v56  ;;  %v954_v52 = vadd.f32 %v953_v32, %v2934_v58  ;;  %v860_v53 = vmul.f32 %v859_v45, %v2638_v56 }
  0x93   :  { %v986_v17 = vadd.f32 %v985_v33, %v983_v11  ;;  %v1018_v55 = vadd.f32 %v1017_v38, %v1015_v60  ;;  %v1037_v57 = vmul.f32 %v1036_v39, %v2533_v47  ;;  %v701_v59 = vadd.f32 %v700_v41, %v698_v16 }
  0x94   :  { %v733_v61 = vadd.f32 %v732_v40, %v730_v18  ;;  %v891_v58 = vstv %s2970_s22  ;;  %v1039_v62 = vstv %s2943_s16  ;;  %v923_v23 = vstv %s2972_s23  ;;  %s3059_s16 = sld [smem:[#allocation2 + $0x7a]]  ;;  %s3091_s22 = sld [smem:[#allocation2 + $0x53]] }
  0x95   :  { %v955_v24 = vstv %s2975_s24  ;;  %v987_v63 = vstv %s2977_s25  ;;  %v1035_v0 = vadd.f32 %v1034_v48, %v1032_v46  ;;  %v765_v1 = vadd.f32 %v764_v49, %v762_v19  ;;  %s3093_s23 = sld [smem:[#allocation2 + $0x67]]  ;;  %s3099_s24 = sld [smem:[#allocation2 + $0x7b]] }
  0x96   :  { %v797_v2 = vadd.f32 %v796_v50, %v794_v21  ;;  %v829_v5 = vadd.f32 %v828_v51, %v826_v26  ;;  %v1019_v6 = vstv %s2981_s26  ;;  %v861_v7 = vadd.f32 %v860_v53, %v858_v27  ;;  %s3101_s25 = sld [smem:[#allocation2 + $0xf2]]  ;;  %s3105_s26 = sld [smem:[#allocation2 + $0x106]] }
  0x97   :  { %v1038_v8 = vadd.f32 %v1037_v57, %v1035_v0  ;;  %v1040_v9 = vmul.f32 %v1039_v62, %v2545_v54  ;;  %v1042_v10 = vstv %s2988_s27  ;;  %v892_v11 = vmul.f32 %v891_v58, %v2638_v56  ;;  %s3108_s27 = sld [smem:[#allocation2 + $0x8f]] }
  0x98   :  { %v924_v60 = vmul.f32 %v923_v23, %v2638_v56  ;;  %v956_v16 = vmul.f32 %v955_v24, %v2638_v56  ;;  %v988_v12 = vmul.f32 %v987_v63, %v2638_v56  ;;  %v702_v13 = vstv %s3007_s29  ;;  %s3116_s29 = sld [smem:[#allocation2 + $0xb7]] }
  0x99   :  { %v734_v14 = vstv %s3009_s30  ;;  %v1020_v18 = vmul.f32 %v1019_v6, %v2638_v56  ;;  %v1043_v19 = vmul.f32 %v1042_v10, %v2568_v25  ;;  %v703_v21 = vadd.f32 %v702_v13, %v701_v59  ;;  %s3127_s30 = sld [smem:[#allocation2 + $0x54]] }
  0x9a   :  { %v735_v22 = vadd.f32 %v734_v14, %v733_v61  ;;  %v766_v26 = vstv %s3013_s3  ;;  %v798_v27 = vstv %s3015_s4  ;;  %v830_v32 = vstv %s3019_s5  ;;  %s3129_s3 = sld [smem:[#allocation2 + $0xcb]]  ;;  %s3136_s4 = sld [smem:[#allocation2 + $0xdf]] }
  0x9b   :  { %v767_v29 = vadd.f32 %v766_v26, %v765_v1  ;;  %v862_v33 = vstv %s3021_s6  ;;  %v1041_v34 = vadd.f32 %v1040_v9, %v1038_v8  ;;  %v799_v36 = vadd.f32 %v798_v27, %v797_v2  ;;  %s3138_s5 = sld [smem:[#allocation2 + $0x11a]]  ;;  %s3145_s6 = sld [smem:[#allocation2 + $0x68]] }
  0x9c   :  { %v831_v37 = vadd.f32 %v830_v32, %v829_v5  ;;  %v893_v38 = vadd.f32 %v892_v11, %v2979_v28  ;;  %v925_v39 = vadd.f32 %v924_v60, %v2983_v30  ;;  %v863_v41 = vadd.f32 %v862_v33, %v861_v7 }
  0x9d   :  { %v957_v40 = vadd.f32 %v956_v16, %v954_v52  ;;  %v989_v42 = vadd.f32 %v988_v12, %v986_v17  ;;  %v1045_v43 = vstv %s3001_s28  ;;  %v3070_v44 = vmax.f32 %v703_v21, 0.0  ;;  %s3110_s28 = sld [smem:[#allocation2 + $0xa3]] }
  0x9e   :  { %v3072_v45 = vmax.f32 %v735_v22, 0.0  ;;  %v894_v46 = vstv %s3026_s7  ;;  %v1021_v48 = vadd.f32 %v1020_v18, %v1018_v55  ;;  %v3077_v28 = vmax.f32 %v767_v29, 0.0  ;;  %s3147_s7 = sld [smem:[#allocation2 + $0xf3]] }
  0x9f   :  { %v926_v30 = vstv %s3029_s8  ;;  %v958_v49 = vstv %s3031_s9  ;;  %v1044_v50 = vadd.f32 %v1043_v19, %v1041_v34  ;;  %v3085_v51 = vmax.f32 %v799_v36, 0.0  ;;  %s3151_s8 = sld [smem:[#allocation2 + $0x7c]]  ;;  %s3153_s9 = sld [smem:[#allocation2 + $0x90]] }
  0xa0   :  { %v3087_v52 = vmax.f32 %v831_v37, 0.0  ;;  %v990_v53 = vstv %s3035_s10  ;;  %v1022_v17 = vstv %s3037_s11  ;;  %v3095_v55 = vmax.f32 %v863_v41, 0.0  ;;  %s3162_s10 = sld [smem:[#allocation2 + $0xa4]]  ;;  %s3164_s11 = sld [smem:[#allocation2 + $0x107]] }
  0xa1   :  { %v895_v57 = vadd.f32 %v894_v46, %v893_v38  ;;  %v1046_v59 = vmul.f32 %v1045_v43, %v2597_v31  ;;  %v1048_v61 = vstv %s3043_s12  ;;  %v927_v58 = vadd.f32 %v926_v30, %v925_v39  ;;  %s3170_s12 = sld [smem:[#allocation2 + $0xb8]] }
  0xa2   :  { %v959_v62 = vadd.f32 %v958_v49, %v957_v40  ;;  %v1049_v23 = vmul.f32 %v1048_v61, %v2603_v35  ;;  %v1051_v24 = vstv %s3049_s13  ;;  %v991_v63 = vadd.f32 %v990_v53, %v989_v42  ;;  %s3172_s13 = sld [smem:[#allocation2 + $0xcc]] }
  0xa3   :  { %v1023_v0 = vadd.f32 %v1022_v17, %v1021_v48  ;;  %v1047_v1 = vadd.f32 %v1046_v59, %v1044_v50  ;;  %v1057_v2 = vstv %s3053_s14  ;;  %v1059_v6 = vstv %s3055_s15  ;;  %s3176_s14 = sld [smem:[#allocation2 + $0x11b]]  ;;  %s3183_s15 = sld [smem:[#allocation2 + $0x55]] }
  0xa4   :  { %v1058_v5 = vmul.f32 %v1057_v2, %v2470_v3  ;;  %v1062_v7 = vstv %s3059_s16  ;;  %v1065_v8 = vstv %s3061_s17  ;;  %v1052_v10 = vmul.f32 %v1051_v24, %v2638_v56  ;;  %s3185_s16 = sld [smem:[#allocation2 + $0xe0]]  ;;  %s3191_s17 = sld [smem:[#allocation2 + $0x69]] }
  0xa5   :  { %v1050_v9 = vadd.f32 %v1049_v23, %v1047_v1  ;;  %v1060_v11 = vmul.f32 %v1059_v6, %v2472_v4  ;;  %v1063_v60 = vmul.f32 %v1062_v7, %v2488_v15  ;;  %v3121_v16 = vmax.f32 %v895_v57, 0.0 }
  0xa6   :  { %v3123_v12 = vmax.f32 %v927_v58, 0.0  ;;  %v1068_v13 = vstv %s3066_s18  ;;  %v1071_v14 = vstv %s3068_s0  ;;  %v3131_v18 = vmax.f32 %v959_v62, 0.0  ;;  %s3193_s18 = sld [smem:[#allocation2 + $0xf4]]  ;;  %s3197_s0 = sld [smem:[#allocation2 + $0x7d]] }
  0xa7   :  { %v3133_v19 = vmax.f32 %v991_v63, 0.0  ;;  %v1061_v21 = vadd.f32 %v1060_v11, %v1058_v5  ;;  %v1066_v22 = vmul.f32 %v1065_v8, %v2497_v20  ;;  %v3140_v26 = vmax.f32 %v1023_v0, 0.0 }
  0xa8   :  { %v1054_v27 = vstv %s3083_s21  ;;  %v1074_v29 = vstv %s3075_s19  ;;  %v1077_v32 = vstv %s3081_s20  ;;  %v1053_v33 = vadd.f32 %v1052_v10, %v1050_v9  ;;  %s3199_s19 = sld [smem:[#allocation2 + $0x91]]  ;;  %s3205_s20 = sld [smem:[#allocation2 + $0x108]] }
  0xa9   :  { %v1064_v34 = vadd.f32 %v1063_v60, %v1061_v21  ;;  %v1069_v36 = vmul.f32 %v1068_v13, %v2533_v47  ;;  %v1072_v37 = vmul.f32 %v1071_v14, %v2545_v54  ;;  %v1080_v38 = vstv %s3101_s25  ;;  %s3209_s21 = sld [smem:[#allocation2 + $0xa5]] }
  0xaa   :  { %v1089_v39 = vstv %s3091_s22  ;;  %v1091_v41 = vstv %s3093_s23  ;;  %v1094_v40 = vstv %s3099_s24  ;;  %v1083_v43 = vstv %s3105_s26  ;;  %s3211_s22 = sld [smem:[#allocation2 + $0xb9]]  ;;  %s3219_s23 = sld [smem:[#allocation2 + $0xcd]] }
  0xab   :  { %v1067_v42 = vadd.f32 %v1066_v22, %v1064_v34  ;;  %v1090_v46 = vmul.f32 %v1089_v39, %v2470_v3  ;;  %v1092_v48 = vmul.f32 %v1091_v41, %v2472_v4  ;;  %v1075_v30 = vmul.f32 %v1074_v29, %v2568_v25  ;;  %s3225_s24 = sld [smem:[#allocation2 + $0xe1]]  ;;  %s3229_s25 = sld [smem:[#allocation2 + $0xf5]] }
  0xac   :  { %v1095_v49 = vmul.f32 %v1094_v40, %v2488_v15  ;;  %v1097_v50 = vstv %s3108_s27  ;;  %v1100_v53 = vstv %s3110_s28  ;;  %v1103_v61 = vstv %s3116_s29  ;;  %s3231_s26 = sld [smem:[#allocation2 + $0x109]]  ;;  %s3237_s27 = sld [smem:[#allocation2 + $0x56]] }
  0xad   :  { %v1070_v17 = vadd.f32 %v1069_v36, %v1067_v42  ;;  %v1093_v57 = vadd.f32 %v1092_v48, %v1090_v46  ;;  %v1098_v59 = vmul.f32 %v1097_v50, %v2497_v20  ;;  %v1055_v58 = vadd.f32 %v1054_v27, %v1053_v33  ;;  %s3239_s28 = sld [smem:[#allocation2 + $0x6a]]  ;;  %s3243_s29 = sld [smem:[#allocation2 + $0x7e]] }
  0xae   :  { %v1078_v62 = vmul.f32 %v1077_v32, %v2597_v31  ;;  %v1081_v23 = vmul.f32 %v1080_v38, %v2603_v35  ;;  %v1084_v24 = vmul.f32 %v1083_v43, %v2638_v56  ;;  %v1101_v1 = vmul.f32 %v1100_v53, %v2533_v47 }
  0xaf   :  { %v1073_v63 = vadd.f32 %v1072_v37, %v1070_v17  ;;  %v1096_v0 = vadd.f32 %v1095_v49, %v1093_v57  ;;  %v1106_v2 = vstv %s3129_s3  ;;  %v1086_v5 = vstv %s3138_s5  ;;  %s3252_s3 = sld [smem:[#allocation2 + $0xa6]]  ;;  %s3279_s5 = sld [smem:[#allocation2 + $0x6b]] }
  0xb0   :  { %v1104_v6 = vmul.f32 %v1103_v61, %v2545_v54  ;;  %v1109_v7 = vstv %s3136_s4  ;;  %v1121_v8 = vstv %s3127_s30  ;;  %v1112_v11 = vstv %s3147_s7  ;;  %s3245_s30 = sld [smem:[#allocation2 + $0x92]]  ;;  %s3263_s7 = sld [smem:[#allocation2 + $0x11c]] }
  0xb1   :  { %v1076_v9 = vadd.f32 %v1075_v30, %v1073_v63  ;;  %v1099_v10 = vadd.f32 %v1098_v59, %v1096_v0  ;;  %v1122_v60 = vmul.f32 %v1121_v8, %v2470_v3  ;;  %v1107_v13 = vmul.f32 %v1106_v2, %v2568_v25  ;;  %s3254_s4 = sld [smem:[#allocation2 + $0xba]] }
  0xb2   :  { %v1123_v14 = vstv %s3145_s6  ;;  %v1126_v21 = vstv %s3151_s8  ;;  %v1129_v22 = vstv %s3153_s9  ;;  %v1110_v34 = vmul.f32 %v1109_v7, %v2597_v31  ;;  %s3260_s6 = sld [smem:[#allocation2 + $0xce]]  ;;  %s3270_s8 = sld [smem:[#allocation2 + $0x11d]] }
  0xb3   :  { %v1079_v27 = vadd.f32 %v1078_v62, %v1076_v9  ;;  %v1102_v29 = vadd.f32 %v1101_v1, %v1099_v10  ;;  %v1124_v32 = vmul.f32 %v1123_v14, %v2472_v4  ;;  %v1127_v33 = vmul.f32 %v1126_v21, %v2488_v15  ;;  %s3274_s9 = sld [smem:[#allocation2 + $0x57]] }
  0xb4   :  { %v1115_v36 = vstv %s3164_s11  ;;  %v1130_v37 = vmul.f32 %v1129_v22, %v2497_v20  ;;  %v1132_v38 = vstv %s3162_s10  ;;  %v1135_v40 = vstv %s3170_s12  ;;  %s3281_s10 = sld [smem:[#allocation2 + $0xe2]]  ;;  %s3285_s11 = sld [smem:[#allocation2 + $0x7f]] }
  0xb5   :  { %v1105_v39 = vadd.f32 %v1104_v6, %v1102_v29  ;;  %v1125_v41 = vadd.f32 %v1124_v32, %v1122_v60  ;;  %v1138_v42 = vstv %s3172_s13  ;;  %v3221_v43 = vmax.f32 %v1055_v58, 0.0  ;;  %s3287_s12 = sld [smem:[#allocation2 + $0x93]]  ;;  %s3293_s13 = sld [smem:[#allocation2 + $0xf6]] }
  0xb6   :  { %v1082_v46 = vadd.f32 %v1081_v23, %v1079_v27  ;;  %v1113_v48 = vmul.f32 %v1112_v11, %v2603_v35  ;;  %v1118_v30 = vstv %s3176_s14  ;;  %v1116_v50 = vmul.f32 %v1115_v36, %v2638_v56  ;;  %s3297_s14 = sld [smem:[#allocation2 + $0xa7]] }
  0xb7   :  { %v1108_v49 = vadd.f32 %v1107_v13, %v1105_v39  ;;  %v1128_v53 = vadd.f32 %v1127_v33, %v1125_v41  ;;  %v1133_v17 = vmul.f32 %v1132_v38, %v2533_v47  ;;  %v1136_v57 = vmul.f32 %v1135_v40, %v2545_v54 }
  0xb8   :  { %v1139_v59 = vmul.f32 %v1138_v42, %v2568_v25  ;;  %v1141_v61 = vstv %s3185_s16  ;;  %v1153_v58 = vstv %s3183_s15  ;;  %v1144_v63 = vstv %s3193_s18  ;;  %s3299_s15 = sld [smem:[#allocation2 + $0x10a]]  ;;  %s3305_s16 = sld [smem:[#allocation2 + $0xbb]] }
  0xb9   :  { %v1111_v62 = vadd.f32 %v1110_v34, %v1108_v49  ;;  %v1131_v23 = vadd.f32 %v1130_v37, %v1128_v53  ;;  %v1154_v0 = vmul.f32 %v1153_v58, %v2470_v3  ;;  %v1085_v1 = vadd.f32 %v1084_v24, %v1082_v46  ;;  %s3310_s18 = sld [smem:[#allocation2 + $0x11e]] }
  0xba   :  { %v1155_v2 = vstv %s3191_s17  ;;  %v1158_v6 = vstv %s3197_s0  ;;  %v1161_v7 = vstv %s3199_s19  ;;  %v1147_v10 = vstv %s3205_s20  ;;  %s3308_s17 = sld [smem:[#allocation2 + $0xcf]]  ;;  %s3319_s0 = sld [smem:[#allocation2 + $0x58]] }
  0xbb   :  { %v1114_v8 = vadd.f32 %v1113_v48, %v1111_v62  ;;  %v1134_v9 = vadd.f32 %v1133_v17, %v1131_v23  ;;  %v1156_v11 = vmul.f32 %v1155_v2, %v2472_v4  ;;  %v1142_v60 = vmul.f32 %v1141_v61, %v2597_v31  ;;  %s3321_s19 = sld [smem:[#allocation2 + $0xe3]]  ;;  %s3328_s20 = sld [smem:[#allocation2 + $0x6c]] }
  0xbc   :  { %v1159_v13 = vmul.f32 %v1158_v6, %v2488_v15  ;;  %v1164_v14 = vstv %s3209_s21  ;;  %v1167_v24 = vstv %s3211_s22  ;;  %v1162_v29 = vmul.f32 %v1161_v7, %v2497_v20  ;;  %s3330_s21 = sld [smem:[#allocation2 + $0xf7]]  ;;  %s3333_s22 = sld [smem:[#allocation2 + $0x80]] }
  0xbd   :  { %v1117_v21 = vadd.f32 %v1116_v50, %v1114_v8  ;;  %v1137_v22 = vadd.f32 %v1136_v57, %v1134_v9  ;;  %v1157_v27 = vadd.f32 %v1156_v11, %v1154_v0  ;;  %v1087_v32 = vadd.f32 %v1086_v5, %v1085_v1 }
  0xbe   :  { %v1145_v33 = vmul.f32 %v1144_v63, %v2603_v35  ;;  %v1148_v34 = vmul.f32 %v1147_v10, %v2638_v56  ;;  %v1170_v36 = vstv %s3219_s23  ;;  %v1165_v39 = vmul.f32 %v1164_v14, %v2533_v47  ;;  %s3335_s23 = sld [smem:[#allocation2 + $0x94]] }
  0xbf   :  { %v1140_v37 = vadd.f32 %v1139_v59, %v1137_v22  ;;  %v1160_v38 = vadd.f32 %v1159_v13, %v1157_v27  ;;  %v1168_v41 = vmul.f32 %v1167_v24, %v2545_v54  ;;  %v1119_v5 = vadd.f32 %v1118_v30, %v1117_v21 }
  0xc0   :  { %v1173_v40 = vstv %s3225_s24  ;;  %v1176_v42 = vstv %s3229_s25  ;;  %v1179_v46 = vstv %s3231_s26  ;;  %v1171_v50 = vmul.f32 %v1170_v36, %v2568_v25  ;;  %s3344_s24 = sld [smem:[#allocation2 + $0xa8]]  ;;  %s3346_s25 = sld [smem:[#allocation2 + $0x10b]] }
  0xc1   :  { %v1143_v48 = vadd.f32 %v1142_v60, %v1140_v37  ;;  %v1163_v49 = vadd.f32 %v1162_v29, %v1160_v38  ;;  %v1185_v53 = vstv %s3237_s27  ;;  %v1187_v17 = vstv %s3239_s28  ;;  %s3351_s26 = sld [smem:[#allocation2 + $0xbc]]  ;;  %s3353_s27 = sld [smem:[#allocation2 + $0xd0]] }
  0xc2   :  { %v1186_v30 = vmul.f32 %v1185_v53, %v2470_v3  ;;  %v1190_v57 = vstv %s3243_s29  ;;  %v1193_v59 = vstv %s3245_s30  ;;  %v1188_v62 = vmul.f32 %v1187_v17, %v2472_v4  ;;  %s3357_s28 = sld [smem:[#allocation2 + $0xe4]]  ;;  %s3359_s29 = sld [smem:[#allocation2 + $0x11f]] }
  0xc3   :  { %v1146_v61 = vadd.f32 %v1145_v33, %v1143_v48  ;;  %v1166_v58 = vadd.f32 %v1165_v39, %v1163_v49  ;;  %v1191_v23 = vmul.f32 %v1190_v57, %v2488_v15  ;;  %v1174_v63 = vmul.f32 %v1173_v40, %v2597_v31  ;;  %s3368_s30 = sld [smem:[#allocation2 + $0x59]] }
  0xc4   :  { %v1194_v0 = vmul.f32 %v1193_v59, %v2497_v20  ;;  %v1196_v1 = vstv %s3252_s3  ;;  %v1199_v2 = vstv %s3254_s4  ;;  %v1189_v8 = vadd.f32 %v1188_v62, %v1186_v30  ;;  %s3373_s3 = sld [smem:[#allocation2 + $0x6d]]  ;;  %s3375_s4 = sld [smem:[#allocation2 + $0xf8]] }
  0xc5   :  { %v1149_v6 = vadd.f32 %v1148_v34, %v1146_v61  ;;  %v1169_v7 = vadd.f32 %v1168_v41, %v1166_v58  ;;  %v1202_v9 = vstv %s3260_s6  ;;  %v3312_v10 = vmax.f32 %v1087_v32, 0.0  ;;  %s3379_s6 = sld [smem:[#allocation2 + $0x81]] }
  0xc6   :  { %v1150_v11 = vstv %s3263_s7  ;;  %v1177_v60 = vmul.f32 %v1176_v42, %v2603_v35  ;;  %v1180_v13 = vmul.f32 %v1179_v46, %v2638_v56  ;;  %v1182_v24 = vstv %s3270_s8  ;;  %s3381_s7 = sld [smem:[#allocation2 + $0x95]]  ;;  %s3419_s8 = sld [smem:[#allocation2 + $0xf9]] }
  0xc7   :  { %v1172_v14 = vadd.f32 %v1171_v50, %v1169_v7  ;;  %v1192_v21 = vadd.f32 %v1191_v23, %v1189_v8  ;;  %v1197_v22 = vmul.f32 %v1196_v1, %v2533_v47  ;;  %v3323_v27 = vmax.f32 %v1119_v5, 0.0 }
  0xc8   :  { %v1200_v29 = vmul.f32 %v1199_v2, %v2545_v54  ;;  %v1203_v32 = vmul.f32 %v1202_v9, %v2568_v25  ;;  %v1217_v33 = vstv %s3274_s9  ;;  %v1151_v34 = vadd.f32 %v1150_v11, %v1149_v6  ;;  %s3387_s9 = sld [smem:[#allocation2 + $0xa9]] }
  0xc9   :  { %v1175_v36 = vadd.f32 %v1174_v63, %v1172_v14  ;;  %v1195_v37 = vadd.f32 %v1194_v0, %v1192_v21  ;;  %v1205_v38 = vstv %s3281_s10  ;;  %v1218_v39 = vmul.f32 %v1217_v33, %v2470_v3  ;;  %s3394_s10 = sld [smem:[#allocation2 + $0x10c]] }
  0xca   :  { %v1219_v41 = vstv %s3279_s5  ;;  %v1222_v5 = vstv %s3285_s11  ;;  %v1225_v40 = vstv %s3287_s12  ;;  %v1208_v46 = vstv %s3293_s13  ;;  %s3392_s5 = sld [smem:[#allocation2 + $0xbd]]  ;;  %s3399_s11 = sld [smem:[#allocation2 + $0xd1]] }
  0xcb   :  { %v1198_v42 = vadd.f32 %v1197_v22, %v1195_v37  ;;  %v1220_v48 = vmul.f32 %v1219_v41, %v2472_v4  ;;  %v1223_v49 = vmul.f32 %v1222_v5, %v2488_v15  ;;  %v1178_v50 = vadd.f32 %v1177_v60, %v1175_v36  ;;  %s3403_s12 = sld [smem:[#allocation2 + $0x120]]  ;;  %s3412_s13 = sld [smem:[#allocation2 + $0xe5]] }
  0xcc   :  { %v1206_v53 = vmul.f32 %v1205_v38, %v2597_v31  ;;  %v1211_v30 = vstv %s3299_s15  ;;  %v1228_v17 = vstv %s3297_s14  ;;  %v1226_v61 = vmul.f32 %v1225_v40, %v2497_v20  ;;  %s3414_s14 = sld [smem:[#allocation2 + $0x122]]  ;;  %s3421_s15 = sld [smem:[#allocation2 + $0x127]] }
  0xcd   :  { %v1201_v57 = vadd.f32 %v1200_v29, %v1198_v42  ;;  %v1221_v59 = vadd.f32 %v1220_v48, %v1218_v39  ;;  %v1231_v58 = vstv %s3305_s16  ;;  %v3361_v62 = vmax.f32 %v1151_v34, 0.0  ;;  %s3425_s16 = sld [smem:[#allocation2 + $0x12c]] }
  0xce   :  { %v1209_v23 = vmul.f32 %v1208_v46, %v2603_v35  ;;  %v1214_v63 = vstv %s3310_s18  ;;  %v1234_v0 = vstv %s3308_s17  ;;  %v1212_v2 = vmul.f32 %v1211_v30, %v2638_v56  ;;  %s3427_s17 = sld [smem:[#allocation2 + $0x131]]  ;;  %s3464_s18 = sld [smem:[#allocation2 + $0x14a]] }
  0xcf   :  { %v1204_v1 = vadd.f32 %v1203_v32, %v1201_v57  ;;  %v1224_v6 = vadd.f32 %v1223_v49, %v1221_v59  ;;  %v1229_v7 = vmul.f32 %v1228_v17, %v2533_v47  ;;  %v1181_v8 = vadd.f32 %v1180_v13, %v1178_v50 }
  0xd0   :  { %v1232_v9 = vmul.f32 %v1231_v58, %v2545_v54  ;;  %v1237_v11 = vstv %s3321_s19  ;;  %v1249_v60 = vstv %s3319_s0  ;;  %v1235_v22 = vmul.f32 %v1234_v0, %v2568_v25  ;;  %s3435_s0 = sld [smem:[#allocation2 + $0x10d]]  ;;  %s3437_s19 = sld [smem:[#allocation2 + $0x136]] }
  0xd1   :  { %v1207_v14 = vadd.f32 %v1206_v53, %v1204_v1  ;;  %v1227_v21 = vadd.f32 %v1226_v61, %v1224_v6  ;;  %v1240_v29 = vstv %s3330_s21  ;;  %v1250_v13 = vmul.f32 %v1249_v60, %v2470_v3  ;;  %s3446_s21 = sld [smem:[#allocation2 + $0x121]] }
  0xd2   :  { %v1251_v32 = vstv %s3328_s20  ;;  %v1254_v33 = vstv %s3333_s22  ;;  %v1257_v34 = vstv %s3335_s23  ;;  %v1238_v37 = vmul.f32 %v1237_v11, %v2597_v31  ;;  %s3443_s20 = sld [smem:[#allocation2 + $0x13b]]  ;;  %s3448_s22 = sld [smem:[#allocation2 + $0x140]] }
  0xd3   :  { %v1230_v36 = vadd.f32 %v1229_v7, %v1227_v21  ;;  %v1252_v38 = vmul.f32 %v1251_v32, %v2472_v4  ;;  %v1255_v39 = vmul.f32 %v1254_v33, %v2488_v15  ;;  %v1210_v41 = vadd.f32 %v1209_v23, %v1207_v14  ;;  %s3456_s23 = sld [smem:[#allocation2 + $0x145]] }
  0xd4   :  { %v1243_v5 = vstv %s3346_s25  ;;  %v1258_v40 = vmul.f32 %v1257_v34, %v2497_v20  ;;  %v1260_v42 = vstv %s3344_s24  ;;  %v1263_v49 = vstv %s3351_s26  ;;  %s3466_s24 = sld [smem:[#allocation2 + $0x14f]]  ;;  %s3469_s25 = sld [smem:[#allocation2 + $0x154]] }
  0xd5   :  { %v1233_v46 = vadd.f32 %v1232_v9, %v1230_v36  ;;  %v1253_v48 = vadd.f32 %v1252_v38, %v1250_v13  ;;  %v1266_v50 = vstv %s3353_s27  ;;  %v1183_v53 = vadd.f32 %v1182_v24, %v1181_v8  ;;  %s3471_s26 = sld [smem:[#allocation2 + $0x159]]  ;;  %s3477_s27 = sld [smem:[#allocation2 + $0x15e]] }
  0xd6   :  { %v1241_v30 = vmul.f32 %v1240_v29, %v2603_v35  ;;  %v1246_v17 = vstv %s3359_s29  ;;  %v1269_v57 = vstv %s3357_s28  ;;  %v1244_v61 = vmul.f32 %v1243_v5, %v2638_v56  ;;  %s3479_s28 = sld [smem:[#allocation2 + $0x163]]  ;;  %s3483_s29 = sld [smem:[#allocation2 + $0x168]] }
  0xd7   :  { %v1236_v59 = vadd.f32 %v1235_v22, %v1233_v46  ;;  %v1256_v58 = vadd.f32 %v1255_v39, %v1253_v48  ;;  %v1261_v23 = vmul.f32 %v1260_v42, %v2533_v47  ;;  %v1213_v0 = vadd.f32 %v1212_v2, %v1210_v41 }
  0xd8   :  { %v1264_v24 = vmul.f32 %v1263_v49, %v2545_v54  ;;  %v1267_v1 = vmul.f32 %v1266_v50, %v2568_v25  ;;  %v1281_v6 = vstv %s3368_s30  ;;  %v1270_v9 = vmul.f32 %v1269_v57, %v2597_v31  ;;  %s3489_s30 = sld [smem:[#allocation2 + $0x123]] }
  0xd9   :  { %v1239_v7 = vadd.f32 %v1238_v37, %v1236_v59  ;;  %v1259_v8 = vadd.f32 %v1258_v40, %v1256_v58  ;;  %v1272_v11 = vstv %s3375_s4  ;;  %v1282_v2 = vmul.f32 %v1281_v6, %v2470_v3  ;;  %s3494_s4 = sld [smem:[#allocation2 + $0x172]] }
  0xda   :  { %v1283_v60 = vstv %s3373_s3  ;;  %v1286_v14 = vstv %s3379_s6  ;;  %v1289_v21 = vstv %s3381_s7  ;;  %v1275_v33 = vstv %s3394_s10  ;;  %s3492_s3 = sld [smem:[#allocation2 + $0x16d]]  ;;  %s3501_s6 = sld [smem:[#allocation2 + $0x128]] }
  0xdb   :  { %v1242_v22 = vadd.f32 %v1241_v30, %v1239_v7  ;;  %v1262_v29 = vadd.f32 %v1261_v23, %v1259_v8  ;;  %v1284_v13 = vmul.f32 %v1283_v60, %v2472_v4  ;;  %v1287_v32 = vmul.f32 %v1286_v14, %v2488_v15  ;;  %s3503_s7 = sld [smem:[#allocation2 + $0x177]]  ;;  %s3515_s10 = sld [smem:[#allocation2 + $0x17c]] }
  0xdc   :  { %v1290_v34 = vmul.f32 %v1289_v21, %v2497_v20  ;;  %v1292_v3 = vstv %s3387_s9  ;;  %v1295_v36 = vstv %s3392_s5  ;;  %v1298_v4 = vstv %s3399_s11  ;;  %s3507_s9 = sld [smem:[#allocation2 + $0x12d]]  ;;  %s3509_s5 = sld [smem:[#allocation2 + $0x132]] }
  0xdd   :  { %v1245_v37 = vadd.f32 %v1244_v61, %v1242_v22  ;;  %v1265_v38 = vadd.f32 %v1264_v24, %v1262_v29  ;;  %v1285_v39 = vadd.f32 %v1284_v13, %v1282_v2  ;;  %v3450_v15 = vmax.f32 %v1183_v53, 0.0  ;;  %s3519_s11 = sld [smem:[#allocation2 + $0x137]] }
  0xde   :  { %v1215_v41 = vadd.f32 %v1214_v63, %v1213_v0  ;;  %v1273_v20 = vmul.f32 %v1272_v11, %v2603_v35  ;;  %v1278_v5 = vstv %s3403_s12  ;;  %v1276_v42 = vmul.f32 %v1275_v33, %v2638_v56  ;;  %s3525_s12 = sld [smem:[#allocation2 + $0x13c]] }
  0xdf   :  { %v1268_v40 = vadd.f32 %v1267_v1, %v1265_v38  ;;  %v1288_v46 = vadd.f32 %v1287_v32, %v1285_v39  ;;  %v1293_v48 = vmul.f32 %v1292_v3, %v2533_v47  ;;  %v1296_v49 = vmul.f32 %v1295_v36, %v2545_v54 }
  0xe0   :  { %v1299_v50 = vmul.f32 %v1298_v4, %v2568_v25  ;;  %v1301_v63 = vstv %s3412_s13  ;;  %v1313_v53 = vstv %s3414_s14  ;;  %v1247_v30 = vadd.f32 %v1246_v17, %v1245_v37  ;;  %s3529_s13 = sld [smem:[#allocation2 + $0x181]] }
  0xe1   :  { %v1271_v57 = vadd.f32 %v1270_v9, %v1268_v40  ;;  %v1291_v59 = vadd.f32 %v1290_v34, %v1288_v46  ;;  %v1304_v61 = vstv %s3419_s8  ;;  %v1314_v47 = vmul.f32 %v1313_v53, %v3070_v44  ;;  %s3536_s14 = sld [smem:[#allocation2 + $0x141]]  ;;  %s3538_s8 = sld [smem:[#allocation2 + $0x146]] }
  0xe2   :  { %v1315_v54 = vstv %s3421_s15  ;;  %v1318_v25 = vstv %s3425_s16  ;;  %v1321_v58 = vstv %s3427_s17  ;;  %v1302_v1 = vmul.f32 %v1301_v63, %v2597_v31  ;;  %s3544_s15 = sld [smem:[#allocation2 + $0x14b]]  ;;  %s3546_s16 = sld [smem:[#allocation2 + $0x186]] }
  0xe3   :  { %v1274_v17 = vadd.f32 %v1273_v20, %v1271_v57  ;;  %v1294_v23 = vadd.f32 %v1293_v48, %v1291_v59  ;;  %v1316_v0 = vmul.f32 %v1315_v54, %v3072_v45  ;;  %v1319_v24 = vmul.f32 %v1318_v25, %v3077_v28  ;;  %s3556_s17 = sld [smem:[#allocation2 + $0x150]] }
  0xe4   :  { %v1307_v6 = vstv %s3435_s0  ;;  %v1322_v7 = vmul.f32 %v1321_v58, %v3085_v51  ;;  %v1324_v8 = vstv %s3437_s19  ;;  %v1327_v60 = vstv %s3443_s20  ;;  %s3558_s0 = sld [smem:[#allocation2 + $0x155]]  ;;  %s3564_s19 = sld [smem:[#allocation2 + $0x15a]] }
  0xe5   :  { %v1277_v9 = vadd.f32 %v1276_v42, %v1274_v17  ;;  %v1297_v11 = vadd.f32 %v1296_v49, %v1294_v23  ;;  %v1317_v2 = vadd.f32 %v1316_v0, %v1314_v47  ;;  %v3496_v14 = vmax.f32 %v1215_v41, 0.0  ;;  %s3566_s20 = sld [smem:[#allocation2 + $0x15f]] }
  0xe6   :  { %v1305_v21 = vmul.f32 %v1304_v61, %v2603_v35  ;;  %v1310_v31 = vstv %s3446_s21  ;;  %v1330_v22 = vstv %s3448_s22  ;;  %v1325_v32 = vmul.f32 %v1324_v8, %v3087_v52  ;;  %s3572_s21 = sld [smem:[#allocation2 + $0x164]]  ;;  %s3574_s22 = sld [smem:[#allocation2 + $0x169]] }
  0xe7   :  { %v1300_v29 = vadd.f32 %v1299_v50, %v1297_v11  ;;  %v1320_v13 = vadd.f32 %v1319_v24, %v1317_v2  ;;  %v1333_v33 = vstv %s3456_s23  ;;  %v3511_v35 = vmax.f32 %v1247_v30, 0.0  ;;  %s3587_s23 = sld [smem:[#allocation2 + $0x124]] }
  0xe8   :  { %v1279_v34 = vadd.f32 %v1278_v5, %v1277_v9  ;;  %v1308_v3 = vmul.f32 %v1307_v6, %v2638_v56  ;;  %v1328_v36 = vmul.f32 %v1327_v60, %v3095_v55  ;;  %v1336_v39 = vstv %s3464_s18  ;;  %s3589_s18 = sld [smem:[#allocation2 + $0x129]] }
  0xe9   :  { %v1303_v37 = vadd.f32 %v1302_v1, %v1300_v29  ;;  %v1323_v38 = vadd.f32 %v1322_v7, %v1320_v13  ;;  %v1339_v4 = vstv %s3466_s24  ;;  %v1331_v41 = vmul.f32 %v1330_v22, %v3121_v16  ;;  %s3593_s24 = sld [smem:[#allocation2 + $0x16e]] }
  0xea   :  { %v1334_v20 = vmul.f32 %v1333_v33, %v3123_v12  ;;  %v1342_v5 = vstv %s3469_s25  ;;  %v1345_v40 = vstv %s3471_s26  ;;  %v1348_v46 = vstv %s3477_s27  ;;  %s3595_s25 = sld [smem:[#allocation2 + $0x173]]  ;;  %s3606_s26 = sld [smem:[#allocation2 + $0x178]] }
  0xeb   :  { %v1306_v56 = vadd.f32 %v1305_v21, %v1303_v37  ;;  %v1326_v42 = vadd.f32 %v1325_v32, %v1323_v38  ;;  %v1351_v48 = vstv %s3479_s28  ;;  %v3531_v49 = vmax.f32 %v1279_v34, 0.0  ;;  %s3608_s27 = sld [smem:[#allocation2 + $0x17d]]  ;;  %s3612_s28 = sld [smem:[#allocation2 + $0x12e]] }
  0xec   :  { %v1337_v50 = vmul.f32 %v1336_v39, %v3131_v18  ;;  %v1340_v63 = vmul.f32 %v1339_v4, %v3133_v19  ;;  %v1354_v53 = vstv %s3483_s29  ;;  %v1343_v59 = vmul.f32 %v1342_v5, %v3140_v26  ;;  %s3614_s29 = sld [smem:[#allocation2 + $0x133]] }
  0xed   :  { %v1309_v30 = vadd.f32 %v1308_v3, %v1306_v56  ;;  %v1329_v57 = vadd.f32 %v1328_v36, %v1326_v42  ;;  %v3542_v61 = vmul.f32 %v1345_v40, %v3221_v43  ;;  %v3549_v47 = vmul.f32 %v1348_v46, %v3312_v10 }
  0xee   :  { %v3552_v54 = vmul.f32 %v1351_v48, %v3323_v27  ;;  %v1357_v25 = vstv %s3492_s3  ;;  %v1360_v58 = vstv %s3494_s4  ;;  %v3561_v0 = vmul.f32 %v1354_v53, %v3361_v62  ;;  %s3624_s3 = sld [smem:[#allocation2 + $0x182]]  ;;  %s3632_s4 = sld [smem:[#allocation2 + $0x13d]] }
  0xef   :  { %v1311_v17 = vadd.f32 %v1310_v31, %v1309_v30  ;;  %v1332_v23 = vadd.f32 %v1331_v41, %v1329_v57  ;;  %v1363_v24 = vstv %s3503_s7  ;;  %v1375_v1 = vstv %s3489_s30  ;;  %s3622_s30 = sld [smem:[#allocation2 + $0x138]]  ;;  %s3650_s7 = sld [smem:[#allocation2 + $0x187]] }
  0xf0   :  { %v1377_v6 = vstv %s3501_s6  ;;  %v1380_v7 = vstv %s3507_s9  ;;  %v1383_v8 = vstv %s3509_s5  ;;  %v1366_v11 = vstv %s3515_s10  ;;  %s3641_s6 = sld [smem:[#allocation2 + $0x142]]  ;;  %s3660_s9 = sld [smem:[#allocation2 + $0x147]] }
  0xf1   :  { %v1335_v9 = vadd.f32 %v1334_v20, %v1332_v23  ;;  %v1376_v2 = vmul.f32 %v1375_v1, %v3070_v44  ;;  %v1378_v60 = vmul.f32 %v1377_v6, %v3072_v45  ;;  %v3580_v21 = vmul.f32 %v1357_v25, %v3450_v15  ;;  %s3662_s5 = sld [smem:[#allocation2 + $0x14c]]  ;;  %s3667_s10 = sld [smem:[#allocation2 + $0x151]] }
  0xf2   :  { %v3583_v31 = vmul.f32 %v1360_v58, %v3496_v14  ;;  %v1381_v22 = vmul.f32 %v1380_v7, %v3077_v28  ;;  %v1386_v29 = vstv %s3519_s11  ;;  %v1384_v33 = vmul.f32 %v1383_v8, %v3085_v51  ;;  %s3669_s11 = sld [smem:[#allocation2 + $0x156]] }
  0xf3   :  { %v1338_v13 = vadd.f32 %v1337_v50, %v1335_v9  ;;  %v1379_v32 = vadd.f32 %v1378_v60, %v1376_v2  ;;  %v1389_v34 = vstv %s3525_s12  ;;  %v3597_v3 = vmax.f32 %v1311_v17, 0.0  ;;  %s3675_s12 = sld [smem:[#allocation2 + $0x15b]] }
  0xf4   :  { %v3600_v36 = vmul.f32 %v1363_v24, %v3511_v35  ;;  %v3603_v37 = vmul.f32 %v1366_v11, %v3531_v49  ;;  %v1369_v38 = vstv %s3529_s13  ;;  %v1387_v41 = vmul.f32 %v1386_v29, %v3087_v52  ;;  %s3677_s13 = sld [smem:[#allocation2 + $0x160]] }
  0xf5   :  { %v1341_v39 = vadd.f32 %v1340_v63, %v1338_v13  ;;  %v1382_v4 = vadd.f32 %v1381_v22, %v1379_v32  ;;  %v1392_v20 = vstv %s3536_s14  ;;  %v1372_v5 = vstv %s3546_s16  ;;  %s3682_s14 = sld [smem:[#allocation2 + $0x165]]  ;;  %s3796_s16 = sld [smem:[#allocation2 + $0x166]] }
  0xf6   :  { %v1390_v40 = vmul.f32 %v1389_v34, %v3095_v55  ;;  %v1395_v56 = vstv %s3538_s8  ;;  %v1398_v42 = vstv %s3544_s15  ;;  %v1401_v50 = vstv %s3556_s17  ;;  %s3684_s8 = sld [smem:[#allocation2 + $0x16a]]  ;;  %s3690_s15 = sld [smem:[#allocation2 + $0x16f]] }
  0xf7   :  { %v1344_v46 = vadd.f32 %v1343_v59, %v1341_v39  ;;  %v1385_v48 = vadd.f32 %v1384_v33, %v1382_v4  ;;  %v1404_v63 = vstv %s3558_s0  ;;  %v3627_v53 = vmul.f32 %v1369_v38, %v3597_v3  ;;  %s3704_s17 = sld [smem:[#allocation2 + $0x125]]  ;;  %s3708_s0 = sld [smem:[#allocation2 + $0x174]] }
  0xf8   :  { %v1393_v30 = vmul.f32 %v1392_v20, %v3121_v16  ;;  %v1407_v57 = vstv %s3564_s19  ;;  %v1410_v25 = vstv %s3566_s20  ;;  %v1413_v17 = vstv %s3572_s21  ;;  %s3710_s19 = sld [smem:[#allocation2 + $0x179]]  ;;  %s3720_s20 = sld [smem:[#allocation2 + $0x12a]] }
  0xf9   :  { %v1347_v58 = vadd.f32 %v3542_v61, %v1344_v46  ;;  %v1388_v59 = vadd.f32 %v1387_v41, %v1385_v48  ;;  %v1416_v23 = vstv %s3574_s22  ;;  %v1396_v24 = vmul.f32 %v1395_v56, %v3123_v12  ;;  %s3722_s21 = sld [smem:[#allocation2 + $0x17e]]  ;;  %s3726_s22 = sld [smem:[#allocation2 + $0x12f]] }
  0xfa   :  { %v1399_v1 = vmul.f32 %v1398_v42, %v3131_v18  ;;  %v1402_v6 = vmul.f32 %v1401_v50, %v3133_v19  ;;  %v1405_v7 = vmul.f32 %v1404_v63, %v3140_v26  ;;  %v3645_v9 = vmul.f32 %v1407_v57, %v3221_v43 }
  0xfb   :  { %v1350_v8 = vadd.f32 %v3549_v47, %v1347_v58  ;;  %v1391_v61 = vadd.f32 %v1390_v40, %v1388_v59  ;;  %v3648_v11 = vmul.f32 %v1410_v25, %v3312_v10  ;;  %v3653_v2 = vmul.f32 %v1413_v17, %v3323_v27 }
  0xfc   :  { %v3656_v60 = vmul.f32 %v1416_v23, %v3361_v62  ;;  %v1419_v47 = vstv %s3593_s24  ;;  %v1422_v22 = vstv %s3595_s25  ;;  %v1425_v32 = vstv %s3606_s26  ;;  %s3743_s24 = sld [smem:[#allocation2 + $0x13e]]  ;;  %s3748_s25 = sld [smem:[#allocation2 + $0x183]] }
  0xfd   :  { %v1353_v29 = vadd.f32 %v3552_v54, %v1350_v8  ;;  %v1394_v13 = vadd.f32 %v1393_v30, %v1391_v61  ;;  %v1428_v33 = vstv %s3608_s27  ;;  %v1437_v34 = vstv %s3587_s23  ;;  %s3728_s23 = sld [smem:[#allocation2 + $0x134]]  ;;  %s3754_s26 = sld [smem:[#allocation2 + $0x143]] }
  0xfe   :  { %v1439_v38 = vstv %s3589_s18  ;;  %v1442_v39 = vstv %s3612_s28  ;;  %v1445_v4 = vstv %s3614_s29  ;;  %v1438_v20 = vmul.f32 %v1437_v34, %v3070_v44  ;;  %s3737_s18 = sld [smem:[#allocation2 + $0x139]]  ;;  %s3763_s27 = sld [smem:[#allocation2 + $0x148]] }
  0xff   :  { %v1356_v54 = vadd.f32 %v3561_v0, %v1353_v29  ;;  %v1397_v41 = vadd.f32 %v1396_v24, %v1394_v13  ;;  %v1440_v40 = vmul.f32 %v1439_v38, %v3072_v45  ;;  %v1431_v56 = vstv %s3624_s3  ;;  %s3765_s28 = sld [smem:[#allocation2 + $0x188]]  ;;  %s3775_s29 = sld [smem:[#allocation2 + $0x14d]] }
 0x100   :  { %v1443_v42 = vmul.f32 %v1442_v39, %v3077_v28  ;;  %v1446_v46 = vmul.f32 %v1445_v4, %v3085_v51  ;;  %v1448_v48 = vstv %s3622_s30  ;;  %v1451_v30 = vstv %s3632_s4  ;;  %s3777_s30 = sld [smem:[#allocation2 + $0x152]]  ;;  %s3783_s3 = sld [smem:[#allocation2 + $0x157]] }
 0x101   :  { %v1359_v0 = vadd.f32 %v3580_v21, %v1356_v54  ;;  %v1400_v50 = vadd.f32 %v1399_v1, %v1397_v41  ;;  %v1441_v63 = vadd.f32 %v1440_v40, %v1438_v20  ;;  %v3695_v57 = vmul.f32 %v1419_v47, %v3450_v15  ;;  %s3785_s4 = sld [smem:[#allocation2 + $0x15c]] }
 0x102   :  { %v3698_v25 = vmul.f32 %v1422_v22, %v3496_v14  ;;  %v3701_v58 = vmul.f32 %v1425_v32, %v3511_v35  ;;  %v1449_v59 = vmul.f32 %v1448_v48, %v3087_v52  ;;  %v1454_v24 = vstv %s3641_s6  ;;  %s3791_s6 = sld [smem:[#allocation2 + $0x161]] }
 0x103   :  { %v1362_v21 = vadd.f32 %v3583_v31, %v1359_v0  ;;  %v1403_v17 = vadd.f32 %v1402_v6, %v1400_v50  ;;  %v1444_v23 = vadd.f32 %v1443_v42, %v1441_v63  ;;  %v3713_v1 = vmul.f32 %v1428_v33, %v3531_v49 }
 0x104   :  { %v3716_v8 = vmul.f32 %v1431_v56, %v3597_v3  ;;  %v1434_v61 = vstv %s3650_s7  ;;  %v1452_v47 = vmul.f32 %v1451_v30, %v3095_v55  ;;  %v1457_v29 = vstv %s3660_s9  ;;  %s3804_s9 = sld [smem:[#allocation2 + $0x16b]] }
 0x105   :  { %v1365_v31 = vadd.f32 %v3600_v36, %v1362_v21  ;;  %v1406_v6 = vadd.f32 %v1405_v7, %v1403_v17  ;;  %v1447_v22 = vadd.f32 %v1446_v46, %v1444_v23  ;;  %v1455_v13 = vmul.f32 %v1454_v24, %v3121_v16  ;;  %s3891_s7 = sld [smem:[#allocation2 + $0x153]] }
 0x106   :  { %v1460_v32 = vstv %s3662_s5  ;;  %v1463_v33 = vstv %s3667_s10  ;;  %v1466_v34 = vstv %s3669_s11  ;;  %v1469_v7 = vstv %s3675_s12  ;;  %s3806_s5 = sld [smem:[#allocation2 + $0x170]]  ;;  %s3818_s10 = sld [smem:[#allocation2 + $0x126]] }
 0x107   :  { %v1368_v38 = vadd.f32 %v3603_v37, %v1365_v31  ;;  %v1409_v36 = vadd.f32 %v3645_v9, %v1406_v6  ;;  %v1450_v39 = vadd.f32 %v1449_v59, %v1447_v22  ;;  %v1458_v4 = vmul.f32 %v1457_v29, %v3123_v12  ;;  %s3822_s11 = sld [smem:[#allocation2 + $0x175]]  ;;  %s3824_s12 = sld [smem:[#allocation2 + $0x17a]] }
 0x108   :  { %v1472_v54 = vstv %s3677_s13  ;;  %v1475_v41 = vstv %s3682_s14  ;;  %v1478_v20 = vstv %s3684_s8  ;;  %v1481_v37 = vstv %s3690_s15  ;;  %s3831_s13 = sld [smem:[#allocation2 + $0x12b]]  ;;  %s3833_s14 = sld [smem:[#allocation2 + $0x17f]] }
 0x109   :  { %v1371_v40 = vadd.f32 %v3627_v53, %v1368_v38  ;;  %v1412_v56 = vadd.f32 %v3648_v11, %v1409_v36  ;;  %v1453_v42 = vadd.f32 %v1452_v47, %v1450_v39  ;;  %v1461_v9 = vmul.f32 %v1460_v32, %v3131_v18  ;;  %s3837_s8 = sld [smem:[#allocation2 + $0x130]]  ;;  %s3839_s15 = sld [smem:[#allocation2 + $0x135]] }
 0x10a   :  { %v1464_v46 = vmul.f32 %v1463_v33, %v3133_v19  ;;  %v1467_v48 = vmul.f32 %v1466_v34, %v3140_v26  ;;  %v1470_v0 = vmul.f32 %v1469_v7, %v3221_v43  ;;  %v3758_v50 = vmul.f32 %v1472_v54, %v3312_v10 }
 0x10b   :  { %v1415_v53 = vadd.f32 %v3653_v2, %v1412_v56  ;;  %v1456_v11 = vadd.f32 %v1455_v13, %v1453_v42  ;;  %v3761_v63 = vmul.f32 %v1475_v41, %v3323_v27  ;;  %v3768_v30 = vmul.f32 %v1478_v20, %v3361_v62 }
 0x10c   :  { %v3771_v2 = vmul.f32 %v1481_v37, %v3450_v15  ;;  %v1484_v59 = vstv %s3708_s0  ;;  %v1487_v21 = vstv %s3710_s19  ;;  %v1373_v17 = vadd.f32 %v1372_v5, %v1371_v40  ;;  %s3856_s0 = sld [smem:[#allocation2 + $0x13f]]  ;;  %s3861_s19 = sld [smem:[#allocation2 + $0x144]] }
 0x10d   :  { %v1418_v23 = vadd.f32 %v3656_v60, %v1415_v53  ;;  %v1459_v24 = vadd.f32 %v1458_v4, %v1456_v11  ;;  %v1490_v47 = vstv %s3722_s21  ;;  %v1499_v31 = vstv %s3704_s17  ;;  %s3848_s17 = sld [smem:[#allocation2 + $0x13a]]  ;;  %s3871_s21 = sld [smem:[#allocation2 + $0x149]] }
 0x10e   :  { %v1501_v6 = vstv %s3720_s20  ;;  %v1504_v22 = vstv %s3726_s22  ;;  %v1507_v29 = vstv %s3728_s23  ;;  %v1500_v5 = vmul.f32 %v1499_v31, %v3070_v44  ;;  %s3863_s20 = sld [smem:[#allocation2 + $0x184]]  ;;  %s3879_s22 = sld [smem:[#allocation2 + $0x14e]] }
 0x10f   :  { %v1421_v13 = vadd.f32 %v3695_v57, %v1418_v23  ;;  %v1462_v32 = vadd.f32 %v1461_v9, %v1459_v24  ;;  %v1502_v60 = vmul.f32 %v1501_v6, %v3072_v45  ;;  %v3799_v33 = vmul.f32 %v1484_v59, %v3496_v14  ;;  %s3881_s23 = sld [smem:[#allocation2 + $0x189]] }
 0x110   :  { %v1505_v34 = vmul.f32 %v1504_v22, %v3077_v28  ;;  %v1508_v38 = vmul.f32 %v1507_v29, %v3085_v51  ;;  %v1510_v36 = vstv %s3737_s18  ;;  %v1513_v4 = vstv %s3743_s24  ;;  %s3893_s18 = sld [smem:[#allocation2 + $0x158]]  ;;  %s3898_s24 = sld [smem:[#allocation2 + $0x15d]] }
 0x111   :  { %v1424_v57 = vadd.f32 %v3698_v25, %v1421_v13  ;;  %v1465_v39 = vadd.f32 %v1464_v46, %v1462_v32  ;;  %v1503_v7 = vadd.f32 %v1502_v60, %v1500_v5  ;;  %v3811_v54 = vmul.f32 %v1487_v21, %v3511_v35 }
 0x112   :  { %v3814_v41 = vmul.f32 %v1490_v47, %v3531_v49  ;;  %v1493_v20 = vstv %s3748_s25  ;;  %v1511_v40 = vmul.f32 %v1510_v36, %v3087_v52  ;;  %v1516_v37 = vstv %s3754_s26  ;;  %s3900_s25 = sld [smem:[#allocation2 + $0x162]]  ;;  %s3906_s26 = sld [smem:[#allocation2 + $0x167]] }
 0x113   :  { %v1427_v56 = vadd.f32 %v3701_v58, %v1424_v57  ;;  %v1468_v25 = vadd.f32 %v1467_v48, %v1465_v39  ;;  %v1506_v42 = vadd.f32 %v1505_v34, %v1503_v7  ;;  %v3826_v9 = vmax.f32 %v1373_v17, 0.0 }
 0x114   :  { %v1496_v46 = vstv %s3765_s28  ;;  %v1514_v53 = vmul.f32 %v1513_v4, %v3095_v55  ;;  %v1519_v11 = vstv %s3763_s27  ;;  %v1522_v21 = vstv %s3775_s29  ;;  %s3918_s27 = sld [smem:[#allocation2 + $0x16c]]  ;;  %s3922_s29 = sld [smem:[#allocation2 + $0x171]] }
 0x115   :  { %v1430_v58 = vadd.f32 %v3713_v1, %v1427_v56  ;;  %v1471_v48 = vadd.f32 %v1470_v0, %v1468_v25  ;;  %v1509_v59 = vadd.f32 %v1508_v38, %v1506_v42  ;;  %v1517_v17 = vmul.f32 %v1516_v37, %v3121_v16  ;;  %s3972_s28 = sld [smem:[#allocation2 + $0x18a]] }
 0x116   :  { %v1525_v23 = vstv %s3777_s30  ;;  %v1528_v24 = vstv %s3783_s3  ;;  %v1531_v47 = vstv %s3785_s4  ;;  %v1534_v0 = vstv %s3791_s6  ;;  %s3932_s30 = sld [smem:[#allocation2 + $0x176]]  ;;  %s3934_s3 = sld [smem:[#allocation2 + $0x17b]] }
 0x117   :  { %v1433_v31 = vadd.f32 %v3716_v8, %v1430_v58  ;;  %v1474_v6 = vadd.f32 %v3758_v50, %v1471_v48  ;;  %v1512_v1 = vadd.f32 %v1511_v40, %v1509_v59  ;;  %v3851_v22 = vmul.f32 %v1493_v20, %v3597_v3  ;;  %s3938_s4 = sld [smem:[#allocation2 + $0x18b]]  ;;  %s3940_s6 = sld [smem:[#allocation2 + $0x194]] }
 0x118   :  { %v1520_v29 = vmul.f32 %v1519_v11, %v3123_v12  ;;  %v1523_v13 = vmul.f32 %v1522_v21, %v3131_v18  ;;  %v1537_v32 = vstv %s3796_s16  ;;  %v1540_v60 = vstv %s3804_s9  ;;  %s3948_s16 = sld [smem:[#allocation2 + $0x180]]  ;;  %s3950_s9 = sld [smem:[#allocation2 + $0x19d]] }
 0x119   :  { %v1477_v5 = vadd.f32 %v3761_v63, %v1474_v6  ;;  %v1515_v8 = vadd.f32 %v1514_v53, %v1512_v1  ;;  %v1543_v50 = vstv %s3806_s5  ;;  %v1526_v34 = vmul.f32 %v1525_v23, %v3133_v19  ;;  %s3956_s5 = sld [smem:[#allocation2 + $0x185]] }
 0x11a   :  { %v1529_v38 = vmul.f32 %v1528_v24, %v3140_v26  ;;  %v1532_v36 = vmul.f32 %v1531_v47, %v3221_v43  ;;  %v3869_v57 = vmul.f32 %v1534_v0, %v3312_v10  ;;  %v1435_v63 = vadd.f32 %v1434_v61, %v1433_v31 }
 0x11b   :  { %v1480_v39 = vadd.f32 %v3768_v30, %v1477_v5  ;;  %v1518_v7 = vadd.f32 %v1517_v17, %v1515_v8  ;;  %v3877_v4 = vmul.f32 %v1537_v32, %v3323_v27  ;;  %v3884_v20 = vmul.f32 %v1540_v60, %v3361_v62 }
 0x11c   :  { %v3887_v40 = vmul.f32 %v1543_v50, %v3450_v15  ;;  %v1546_v61 = vstv %s3822_s11  ;;  %v1549_v56 = vstv %s3824_s12  ;;  %v1552_v42 = vstv %s3833_s14  ;;  %s3964_s11 = sld [smem:[#allocation2 + $0x195]]  ;;  %s3989_s14 = sld [smem:[#allocation2 + $0x19e]] }
 0x11d   :  { %v1483_v30 = vadd.f32 %v3771_v2, %v1480_v39  ;;  %v1521_v25 = vadd.f32 %v1520_v29, %v1518_v7  ;;  %v1561_v37 = vstv %s3818_s10  ;;  %v1563_v11 = vstv %s3831_s13  ;;  %s3962_s10 = sld [smem:[#allocation2 + $0x18c]]  ;;  %s3977_s12 = sld [smem:[#allocation2 + $0x18d]] }
 0x11e   :  { %v1562_v53 = vmul.f32 %v1561_v37, %v3070_v44  ;;  %v1566_v58 = vstv %s3837_s8  ;;  %v1569_v48 = vstv %s3839_s15  ;;  %v1564_v21 = vmul.f32 %v1563_v11, %v3072_v45  ;;  %s3979_s13 = sld [smem:[#allocation2 + $0x1a6]]  ;;  %s3991_s8 = sld [smem:[#allocation2 + $0x1af]] }
 0x11f   :  { %v1486_v59 = vadd.f32 %v3799_v33, %v1483_v30  ;;  %v1524_v2 = vadd.f32 %v1523_v13, %v1521_v25  ;;  %v1567_v17 = vmul.f32 %v1566_v58, %v3077_v28  ;;  %v3911_v23 = vmax.f32 %v1435_v63, 0.0  ;;  %s3997_s15 = sld [smem:[#allocation2 + $0x196]] }
 0x120   :  { %v3914_v24 = vmul.f32 %v1546_v61, %v3496_v14  ;;  %v1570_v44 = vmul.f32 %v1569_v48, %v3085_v51  ;;  %v1572_v47 = vstv %s3848_s17  ;;  %v1565_v6 = vadd.f32 %v1564_v21, %v1562_v53  ;;  %s3999_s17 = sld [smem:[#allocation2 + $0x1b8]] }
 0x121   :  { %v1489_v31 = vadd.f32 %v3811_v54, %v1486_v59  ;;  %v1527_v33 = vadd.f32 %v1526_v34, %v1524_v2  ;;  %v1575_v1 = vstv %s3856_s0  ;;  %v3925_v45 = vmul.f32 %v1549_v56, %v3511_v35  ;;  %s4007_s0 = sld [smem:[#allocation2 + $0x19f]] }
 0x122   :  { %v3928_v28 = vmul.f32 %v1552_v42, %v3531_v49  ;;  %v1555_v51 = vstv %s3863_s20  ;;  %v1578_v0 = vstv %s3861_s19  ;;  %v1568_v13 = vadd.f32 %v1567_v17, %v1565_v6  ;;  %s4014_s19 = sld [smem:[#allocation2 + $0x1a7]]  ;;  %s4022_s20 = sld [smem:[#allocation2 + $0x18e]] }
 0x123   :  { %v1492_v54 = vadd.f32 %v3814_v41, %v1489_v31  ;;  %v1530_v29 = vadd.f32 %v1529_v38, %v1527_v33  ;;  %v1573_v32 = vmul.f32 %v1572_v47, %v3087_v52  ;;  %v1558_v5 = vstv %s3881_s23  ;;  %s4094_s23 = sld [smem:[#allocation2 + $0x1a2]] }
 0x124   :  { %v1576_v8 = vmul.f32 %v1575_v1, %v3095_v55  ;;  %v1581_v60 = vstv %s3871_s21  ;;  %v1584_v50 = vstv %s3879_s22  ;;  %v1571_v38 = vadd.f32 %v1570_v44, %v1568_v13  ;;  %s4024_s21 = sld [smem:[#allocation2 + $0x197]]  ;;  %s4031_s22 = sld [smem:[#allocation2 + $0x1a0]] }
 0x125   :  { %v1495_v41 = vadd.f32 %v3851_v22, %v1492_v54  ;;  %v1533_v34 = vadd.f32 %v1532_v36, %v1530_v29  ;;  %v1587_v63 = vstv %s3891_s7  ;;  %v1579_v52 = vmul.f32 %v1578_v0, %v3121_v16  ;;  %s4036_s7 = sld [smem:[#allocation2 + $0x18f]] }
 0x126   :  { %v1590_v39 = vstv %s3893_s18  ;;  %v1593_v7 = vstv %s3898_s24  ;;  %v1596_v61 = vstv %s3900_s25  ;;  %v1574_v22 = vadd.f32 %v1573_v32, %v1571_v38  ;;  %s4043_s18 = sld [smem:[#allocation2 + $0x1b0]]  ;;  %s4045_s24 = sld [smem:[#allocation2 + $0x1b9]] }
 0x127   :  { %v1497_v55 = vadd.f32 %v1496_v46, %v1495_v41  ;;  %v1536_v56 = vadd.f32 %v3869_v57, %v1533_v34  ;;  %v1599_v36 = vstv %s3906_s26  ;;  %v3967_v30 = vmul.f32 %v1555_v51, %v3597_v3  ;;  %s4053_s25 = sld [smem:[#allocation2 + $0x198]]  ;;  %s4055_s26 = sld [smem:[#allocation2 + $0x1a9]] }
 0x128   :  { %v1582_v16 = vmul.f32 %v1581_v60, %v3123_v12  ;;  %v1585_v25 = vmul.f32 %v1584_v50, %v3131_v18  ;;  %v1588_v42 = vmul.f32 %v1587_v63, %v3133_v19  ;;  %v1577_v57 = vadd.f32 %v1576_v8, %v1574_v22 }
 0x129   :  { %v1539_v46 = vadd.f32 %v3877_v4, %v1536_v56  ;;  %v1591_v37 = vmul.f32 %v1590_v39, %v3140_v26  ;;  %v1602_v53 = vstv %s3918_s27  ;;  %v1594_v12 = vmul.f32 %v1593_v7, %v3221_v43  ;;  %s4060_s27 = sld [smem:[#allocation2 + $0x1a8]] }
 0x12a   :  { %v3983_v18 = vmul.f32 %v1596_v61, %v3312_v10  ;;  %v3986_v19 = vmul.f32 %v1599_v36, %v3323_v27  ;;  %v1605_v4 = vstv %s3922_s29  ;;  %v3993_v26 = vmax.f32 %v1497_v55, 0.0  ;;  %s4062_s29 = sld [smem:[#allocation2 + $0x1b1]] }
 0x12b   :  { %v1542_v11 = vadd.f32 %v3884_v20, %v1539_v46  ;;  %v1580_v58 = vadd.f32 %v1579_v52, %v1577_v57  ;;  %v1608_v48 = vstv %s3932_s30  ;;  %v4002_v43 = vmul.f32 %v1602_v53, %v3361_v62  ;;  %s4067_s30 = sld [smem:[#allocation2 + $0x1b2]] }
 0x12c   :  { %v1611_v10 = vstv %s3934_s3  ;;  %v1623_v27 = vstv %s3938_s4  ;;  %v1625_v59 = vstv %s3940_s6  ;;  %v4011_v21 = vmul.f32 %v1605_v4, %v3450_v15  ;;  %s4072_s3 = sld [smem:[#allocation2 + $0x1a1]]  ;;  %s4077_s4 = sld [smem:[#allocation2 + $0x1bb]] }
 0x12d   :  { %v1545_v2 = vadd.f32 %v3887_v40, %v1542_v11  ;;  %v1583_v20 = vadd.f32 %v1582_v16, %v1580_v58  ;;  %v1624_v17 = vmul.f32 %v1623_v27, %v3826_v9  ;;  %v4017_v62 = vmul.f32 %v1608_v48, %v3496_v14  ;;  %s4084_s6 = sld [smem:[#allocation2 + $0x190]] }
 0x12e   :  { %v1614_v44 = vstv %s3948_s16  ;;  %v1626_v47 = vmul.f32 %v1625_v59, %v3911_v23  ;;  %v1628_v31 = vstv %s3950_s9  ;;  %v4028_v33 = vmul.f32 %v1611_v10, %v3511_v35  ;;  %s4086_s16 = sld [smem:[#allocation2 + $0x1aa]]  ;;  %s4092_s9 = sld [smem:[#allocation2 + $0x199]] }
 0x12f   :  { %v1548_v15 = vadd.f32 %v3914_v24, %v1545_v2  ;;  %v1586_v40 = vadd.f32 %v1585_v25, %v1583_v20  ;;  %v1617_v6 = vstv %s3956_s5  ;;  %v1629_v1 = vmul.f32 %v1628_v31, %v3993_v26  ;;  %s4100_s5 = sld [smem:[#allocation2 + $0x1b3]] }
 0x130   :  { %v1627_v14 = vadd.f32 %v1626_v47, %v1624_v17  ;;  %v1639_v51 = vstv %s3962_s10  ;;  %v1641_v0 = vstv %s3964_s11  ;;  %v4040_v29 = vmul.f32 %v1614_v44, %v3531_v49  ;;  %s4104_s10 = sld [smem:[#allocation2 + $0x1ab]]  ;;  %s4106_s11 = sld [smem:[#allocation2 + $0x1bc]] }
 0x131   :  { %v1551_v54 = vadd.f32 %v3925_v45, %v1548_v15  ;;  %v1589_v24 = vadd.f32 %v1588_v42, %v1586_v40  ;;  %v1620_v35 = vstv %s3972_s28  ;;  %v4048_v13 = vmul.f32 %v1617_v6, %v3597_v3  ;;  %s4192_s28 = sld [smem:[#allocation2 + $0x1a5]] }
 0x132   :  { %v1631_v32 = vstv %s3979_s13  ;;  %v1640_v8 = vmul.f32 %v1639_v51, %v3826_v9  ;;  %v1642_v45 = vmul.f32 %v1641_v0, %v3911_v23  ;;  %v1634_v50 = vstv %s3991_s8  ;;  %s4114_s13 = sld [smem:[#allocation2 + $0x19a]]  ;;  %s4211_s8 = sld [smem:[#allocation2 + $0x1bf]] }
 0x133   :  { %v1554_v49 = vadd.f32 %v3928_v28, %v1551_v54  ;;  %v1592_v60 = vadd.f32 %v1591_v37, %v1589_v24  ;;  %v1644_v41 = vstv %s3989_s14  ;;  %v1630_v3 = vadd.f32 %v1629_v1, %v1627_v14  ;;  %s4120_s14 = sld [smem:[#allocation2 + $0x1a3]] }
 0x134   :  { %v1637_v34 = vstv %s3999_s17  ;;  %v1655_v38 = vstv %s3977_s12  ;;  %v1657_v63 = vstv %s3997_s15  ;;  %v1660_v7 = vstv %s4007_s0  ;;  %s4112_s12 = sld [smem:[#allocation2 + $0x191]]  ;;  %s4126_s15 = sld [smem:[#allocation2 + $0x192]] }
 0x135   :  { %v1557_v52 = vadd.f32 %v3967_v30, %v1554_v49  ;;  %v1595_v28 = vadd.f32 %v1594_v12, %v1592_v60  ;;  %v1656_v39 = vmul.f32 %v1655_v38, %v3826_v9  ;;  %v1643_v61 = vadd.f32 %v1642_v45, %v1640_v8  ;;  %s4128_s0 = sld [smem:[#allocation2 + $0x1ac]] }
 0x136   :  { %v1645_v55 = vmul.f32 %v1644_v41, %v3993_v26  ;;  %v1647_v56 = vstv %s4014_s19  ;;  %v1658_v22 = vmul.f32 %v1657_v63, %v3911_v23  ;;  %v1671_v30 = vstv %s4022_s20  ;;  %s4134_s19 = sld [smem:[#allocation2 + $0x1b4]]  ;;  %s4136_s20 = sld [smem:[#allocation2 + $0x1bd]] }
 0x137   :  { %v1559_v36 = vadd.f32 %v1558_v5, %v1557_v52  ;;  %v1598_v16 = vadd.f32 %v3983_v18, %v1595_v28  ;;  %v1673_v25 = vstv %s4024_s21  ;;  %v1661_v42 = vmul.f32 %v1660_v7, %v3993_v26  ;;  %s4144_s21 = sld [smem:[#allocation2 + $0x19b]] }
 0x138   :  { %v1672_v46 = vmul.f32 %v1671_v30, %v3826_v9  ;;  %v1674_v57 = vmul.f32 %v1673_v25, %v3911_v23  ;;  %v1676_v37 = vstv %s4031_s22  ;;  %v1659_v12 = vadd.f32 %v1658_v22, %v1656_v39  ;;  %s4146_s22 = sld [smem:[#allocation2 + $0x1a4]] }
 0x139   :  { %v4096_v5 = vmax.f32 %v1559_v36, 0.0  ;;  %v1601_v53 = vadd.f32 %v3986_v19, %v1598_v16  ;;  %v1677_v18 = vmul.f32 %v1676_v37, %v3993_v26  ;;  %v1646_v4 = vadd.f32 %v1645_v55, %v1643_v61 }
 0x13a   :  { %v1650_v11 = vstv %s4043_s18  ;;  %v1653_v58 = vstv %s4045_s24  ;;  %v1675_v48 = vadd.f32 %v1674_v57, %v1672_v46  ;;  %v1679_v59 = vstv %s4055_s26  ;;  %s4168_s26 = sld [smem:[#allocation2 + $0x1ad]]  ;;  %s4221_s18 = sld [smem:[#allocation2 + $0x1c0]] }
 0x13b   :  { %v1604_v19 = vadd.f32 %v4002_v43, %v1601_v53  ;;  %v1632_v10 = vmul.f32 %v1631_v32, %v4096_v5  ;;  %v1648_v27 = vmul.f32 %v1647_v56, %v4096_v5  ;;  %v1663_v2 = vstv %s4060_s27 }
 0x13c   :  { %v1666_v20 = vstv %s4062_s29  ;;  %v1687_v17 = vstv %s4036_s7  ;;  %v1689_v44 = vstv %s4053_s25  ;;  %v4123_v43 = vadd.f32 %v1661_v42, %v1659_v12  ;;  %s4151_s7 = sld [smem:[#allocation2 + $0x1b5]]  ;;  %s4157_s25 = sld [smem:[#allocation2 + $0x1be]] }
 0x13d   :  { %v1607_v47 = vadd.f32 %v4011_v21, %v1604_v19  ;;  %v1678_v31 = vadd.f32 %v1677_v18, %v1675_v48  ;;  %v1682_v15 = vstv %s4067_s30  ;;  %v1680_v40 = vmul.f32 %v1679_v59, %v4096_v5 }
 0x13e   :  { %v1688_v6 = vmul.f32 %v1687_v17, %v3826_v9  ;;  %v1690_v14 = vmul.f32 %v1689_v44, %v3911_v23  ;;  %v1692_v1 = vstv %s4072_s3  ;;  %v4139_v51 = vadd.f32 %v1632_v10, %v1630_v3  ;;  %s4170_s3 = sld [smem:[#allocation2 + $0x1b6]] }
 0x13f   :  { %v1610_v21 = vadd.f32 %v4017_v62, %v1607_v47  ;;  %v4141_v0 = vadd.f32 %v1648_v27, %v1646_v4  ;;  %v1685_v54 = vstv %s4077_s4  ;;  %v1693_v32 = vmul.f32 %v1692_v1, %v3993_v26 }
 0x140   :  { %v1691_v24 = vadd.f32 %v1690_v14, %v1688_v6  ;;  %v1695_v8 = vstv %s4086_s16  ;;  %v1703_v45 = vstv %s4084_s6  ;;  %v1705_v60 = vstv %s4092_s9  ;;  %s4187_s6 = sld [smem:[#allocation2 + $0x193]]  ;;  %s4189_s16 = sld [smem:[#allocation2 + $0x19c]] }
 0x141   :  { %v1613_v62 = vadd.f32 %v4028_v33, %v1610_v21  ;;  %v1704_v49 = vmul.f32 %v1703_v45, %v3826_v9  ;;  %v1708_v41 = vstv %s4094_s23  ;;  %v1681_v3 = vadd.f32 %v1680_v40, %v1678_v31  ;;  %s4194_s9 = sld [smem:[#allocation2 + $0x1ae]]  ;;  %s4199_s23 = sld [smem:[#allocation2 + $0x1b7]] }
 0x142   :  { %v1698_v38 = vstv %s4100_s5  ;;  %v1706_v63 = vmul.f32 %v1705_v60, %v3911_v23  ;;  %v1709_v52 = vmul.f32 %v1708_v41, %v3993_v26  ;;  %v1696_v39 = vmul.f32 %v1695_v8, %v4096_v5  ;;  %s2229_s5 = sld [smem:[#allocation2 + $0x1ba]] }
 0x143   :  { %v1616_v28 = vadd.f32 %v4040_v29, %v1613_v62  ;;  %v1701_v33 = vstv %s4106_s11  ;;  %v1711_v7 = vstv %s4104_s10  ;;  %v1694_v61 = vadd.f32 %v1693_v32, %v1691_v24 }
 0x144   :  { %v1707_v55 = vadd.f32 %v1706_v63, %v1704_v49  ;;  %v1719_v56 = vstv %s4112_s12  ;;  %v1721_v22 = vstv %s4114_s13  ;;  %v1724_v30 = vstv %s4120_s14 }
 0x145   :  { %v1619_v29 = vadd.f32 %v4048_v13, %v1616_v28  ;;  %v1720_v36 = vmul.f32 %v1719_v56, %v3826_v9  ;;  %v1722_v16 = vmul.f32 %v1721_v22, %v3911_v23  ;;  %v1712_v42 = vmul.f32 %v1711_v7, %v4096_v5 }
 0x146   :  { %v1710_v25 = vadd.f32 %v1709_v52, %v1707_v55  ;;  %v1725_v46 = vmul.f32 %v1724_v30, %v3993_v26  ;;  %v1727_v57 = vstv %s4128_s0  ;;  %v1714_v53 = vstv %s4134_s19 }
 0x147   :  { %v1621_v37 = vadd.f32 %v1620_v35, %v1619_v29  ;;  %v1717_v12 = vstv %s4136_s20  ;;  %v1723_v18 = vadd.f32 %v1722_v16, %v1720_v36  ;;  %v1728_v13 = vmul.f32 %v1727_v57, %v4096_v5 }
 0x148   :  { %v1735_v4 = vstv %s4126_s15  ;;  %v1737_v48 = vstv %s4144_s21  ;;  %v1740_v19 = vstv %s4146_s22  ;;  %v1697_v27 = vadd.f32 %v1696_v39, %v1694_v61 }
 0x149   :  { %v1622_v10 = vmax.f32 %v1621_v37, 0.0  ;;  %v1726_v59 = vadd.f32 %v1725_v46, %v1723_v18  ;;  %v1730_v35 = vstv %s4151_s7  ;;  %v1713_v17 = vadd.f32 %v1712_v42, %v1710_v25 }
 0x14a   :  { %v1733_v44 = vstv %s4157_s25  ;;  %v1736_v47 = vmul.f32 %v1735_v4, %v3826_v9  ;;  %v1738_v31 = vmul.f32 %v1737_v48, %v3911_v23  ;;  %v1741_v1 = vmul.f32 %v1740_v19, %v3993_v26 }
 0x14b   :  { %v1635_v40 = vmul.f32 %v1634_v50, %v1622_v10  ;;  %v1651_v6 = vmul.f32 %v1650_v11, %v1622_v10  ;;  %v1683_v14 = vmul.f32 %v1682_v15, %v1622_v10  ;;  %v1699_v21 = vmul.f32 %v1698_v38, %v1622_v10 }
 0x14c   :  { %v1715_v24 = vmul.f32 %v1714_v53, %v1622_v10  ;;  %v1729_v32 = vadd.f32 %v1728_v13, %v1726_v59  ;;  %v1731_v8 = vmul.f32 %v1730_v35, %v1622_v10  ;;  %v1743_v49 = vstv %s4168_s26 }
 0x14d   :  { %v1636_v45 = vadd.f32 %v1635_v40, %v4139_v51  ;;  %v1684_v62 = vadd.f32 %v1683_v14, %v1681_v3  ;;  %v1746_v60 = vstv %s4170_s3  ;;  %v1700_v41 = vadd.f32 %v1699_v21, %v1697_v27 }
 0x14e   :  { %v1716_v50 = vadd.f32 %v1715_v24, %v1713_v17  ;;  %v1732_v11 = vadd.f32 %v1731_v8, %v1729_v32  ;;  %v1739_v63 = vadd.f32 %v1738_v31, %v1736_v47  ;;  %v1652_v38 = vadd.f32 %v1651_v6, %v4141_v0 }
 0x14f   :  { %v1638_v15 = vadd.f32 %v1637_v34, %v1636_v45  ;;  %v1664_v52 = vmul.f32 %v1663_v2, %v4096_v5  ;;  %v1686_v51 = vadd.f32 %v1685_v54, %v1684_v62  ;;  %v1702_v3 = vadd.f32 %v1701_v33, %v1700_v41  ;;  %v2236_v34 = vld [vmem:[%s4256_s1 + $0x8] sm:$0x1f]  ;;  %v2237_v54 = vld [vmem:[%s4256_s1 + $0x10] sm:$0x1f] }
 0x150   :  { %v1718_v28 = vadd.f32 %v1717_v12, %v1716_v50  ;;  %v1734_v39 = vadd.f32 %v1733_v44, %v1732_v11  ;;  %v1742_v7 = vadd.f32 %v1741_v1, %v1739_v63  ;;  %v1744_v0 = vmul.f32 %v1743_v49, %v4096_v5 }
 0x151   :  { %v1747_v61 = vmul.f32 %v1746_v60, %v1622_v10  ;;  %v1751_v55 = vstv %s4187_s6  ;;  %v1753_v2 = vstv %s4189_s16  ;;  %v1756_v22 = vstv %s4192_s28 }
 0x152   :  { %v1752_v33 = vmul.f32 %v1751_v55, %v3826_v9  ;;  %v1754_v56 = vmul.f32 %v1753_v2, %v3911_v23  ;;  %v1759_v29 = vstv %s4194_s9  ;;  %v1654_v36 = vadd.f32 %v1653_v58, %v1652_v38 }
 0x153   :  { %v1745_v16 = vadd.f32 %v1744_v0, %v1742_v7  ;;  %v1757_v30 = vmul.f32 %v1756_v22, %v3993_v26  ;;  %v1762_v25 = vstv %s4199_s23  ;;  %v1665_v42 = vadd.f32 %v1664_v52, %v4123_v43 }
 0x154   :  { %v1755_v46 = vadd.f32 %v1754_v56, %v1752_v33  ;;  %v1760_v57 = vmul.f32 %v1759_v29, %v4096_v5  ;;  %v1767_v37 = vmul.f32 %v2236_v34, %v1686_v51  ;;  %v1667_v9 = vmul.f32 %v1666_v20, %v1622_v10 }
 0x155   :  { %v1769_v23 = vmul.f32 %v2237_v54, %v1702_v3  ;;  %v1771_v53 = vmul.f32 %v2236_v34, %v1718_v28  ;;  %v1773_v12 = vmul.f32 %v2237_v54, %v1734_v39  ;;  %v1748_v18 = vadd.f32 %v1747_v61, %v1745_v16 }
 0x156   :  { %v1758_v13 = vadd.f32 %v1757_v30, %v1755_v46  ;;  %v1763_v58 = vmul.f32 %v1762_v25, %v1622_v10  ;;  %v1768_v4 = vadd.f32 %v1767_v37, %v1638_v15  ;;  %v1749_v48 = vstv %s4211_s8 }
 0x157   :  { %v1772_v19 = vadd.f32 %v1771_v53, %v1654_v36  ;;  %v1765_v59 = vstv %s4221_s18  ;;  %v1668_v35 = vadd.f32 %v1667_v9, %v1665_v42  ;;  %v1750_v17 = vadd.f32 %v1749_v48, %v1748_v18 }
 0x158   :  { %v1761_v26 = vadd.f32 %v1760_v57, %v1758_v13  ;;  %v1770_v27 = vadd.f32 %v1769_v23, %v1768_v4  ;;  %v1669_v5 = vstv %s2229_s5 }
 0x159   :  { %v1774_v43 = vadd.f32 %v1773_v12, %v1772_v19  ;;  %v1670_v10 = vadd.f32 %v1669_v5, %v1668_v35 }
 0x15a   :  { %v1764_v44 = vadd.f32 %v1763_v58, %v1761_v26  ;;  %1778 = vst [vmem:[%s4257_s2] sm:$0x1f] %v1770_v27 }
 0x15b   :  { %2238 = vst [vmem:[%s4257_s2 + $0x8] sm:$0x1f] %v1774_v43 }
 0x15c   :  { %v1766_v20 = vadd.f32 %v1765_v59, %v1764_v44 }
 0x15e   :  { %v1775_v47 = vadd.f32 %v1766_v20, %v1750_v17 }
 0x160   :  { %v1776_v31 = vmul.f32 %v2236_v34, %v1775_v47 }
 0x162   :  { %v1777_v40 = vadd.f32 %v1776_v31, %v1670_v10 }
 0x164   :  { %2239 = vst [vmem:[%s4257_s2 + $0x10] sm:$0x1f] %v1777_v40 }
 0x165   :  { %1787 = vsyncpa [#allocation3], 1 }

</bundles_post_ra>
